<compile_context>
chip_gen: v7x
topology: tpu7x:2x2x1
jax: 0.10.0
libtpu: 0.0.40
codegen_flags: <defaults>
</compile_context>

<pallas_src>
import jax
import jax.numpy as jnp
import numpy as np
from jax import lax
from jax.experimental import pallas as pl
from jax.experimental.pallas import tpu as pltpu

INPUT_SIZE = 8
HIDDEN_SIZE = 32
OUTPUT_SIZE = 4
NUM_LAYERS = 3
SEQ_LEN = 8
BATCH = 2
LN_EPS = 1e-5

# MXU operand dtype (accumulation stays f32). bf16 avoids multi-pass f32 MXU issue
# on every generation (v5e/v6e/v7x) and halves weight bytes.
MATMUL_DTYPE = jnp.bfloat16

_VMEM = pl.BlockSpec(memory_space=pltpu.MemorySpace.VMEM)


# ----------------------------- Fused Pallas kernel ---------------------------

def _esrnn_fused_kernel(x_ref, w_ih_ref, w_hh_ref, b_ref, head_ref, out_ref):
    # x_ref:    (T*BP, H)   bf16, time-major; real input features in lanes [:Din],
    #                        real batch rows in sublanes [:B] of each BP group.
    # w_ih_ref: (L, H, 3H)  bf16, fused input->gate weights, gate cols [r|z|n]
    #                        (layer 0 rows [Din:] are zero).
    # w_hh_ref: (L, H, 3H)  bf16, fused hidden->gate weights, gate cols [r|z|n].
    # b_ref:    (L, 1, 4H)  f32  [b_ir+b_hr | b_iz+b_hz | b_in | b_hn].
    # head_ref: (H+8, H)    f32  rows[:H]=fc_w^T (lanes [:O] valid), row H = gamma,
    #                        row H+1 = beta, row H+2 = fc bias (lanes [:O] valid).
    # out_ref:  (BP, H)     f32  lanes [:O] valid.
    H = w_hh_ref.shape[1]
    G = 3 * H
    L = w_hh_ref.shape[0]
    BP = out_ref.shape[0]
    T = x_ref.shape[0] // BP

    # Hoisted per-layer weight / bias loads (nothing re-sliced inside the 24 steps).
    w_hh = [w_hh_ref[l] for l in range(L)]                     # (H, 3H) bf16
    w_ih = [w_ih_ref[l] for l in range(1, L)]                  # layers 1..L-1
    b_gi = [b_ref[l, :, :G] for l in range(L)]                 # (1, 3H)
    b_hn = [jnp.broadcast_to(b_ref[l, :, G:], (BP, H)) for l in range(L)]

    # Layer-0 input projection for ALL timesteps: one (T*BP,H)x(H,3H) matmul,
    # completely off the recurrence dependency chain.
    gi0 = jnp.dot(x_ref[...], w_ih_ref[0],
                  preferred_element_type=jnp.float32) + b_gi[0]   # (T*BP, 3H)

    h = [jnp.zeros((BP, H), jnp.float32) for _ in range(L)]       # h0 == zeros

    # Wavefront schedule: fully static unroll; h[l]_t depends only on h[l]_{t-1}
    # and h[l-1]_t, so the dependent chain is the T+L-1 staircase.
    for t in range(T):
        gi = gi0[t * BP:(t + 1) * BP]                             # aligned (BP, 3H)
        for l in range(L):
            gh = jnp.dot(h[l].astype(MATMUL_DTYPE), w_hh[l],
                         preferred_element_type=jnp.float32)      # (BP, 3H), 1 matmul
            rz = jax.nn.sigmoid(gi[:, :2 * H] + gh[:, :2 * H])    # one EUP slab (r|z)
            r = rz[:, :H]
            z = rz[:, H:]
            n = jnp.tanh(gi[:, 2 * H:] + r * (gh[:, 2 * H:] + b_hn[l]))
            h[l] = (1.0 - z) * n + z * h[l]
            if l + 1 < L:
                # Next layer's input projection for this same timestep.
                gi = jnp.dot(h[l].astype(MATMUL_DTYPE), w_ih[l],
                             preferred_element_type=jnp.float32) + b_gi[l + 1]

    # Head on the top layer's last hidden state: LayerNorm -> dropout(=id) -> fc.
    h_top = h[L - 1]
    mean = jnp.mean(h_top, axis=-1, keepdims=True)
    var = jnp.mean(jnp.square(h_top - mean), axis=-1, keepdims=True)
    ln = (h_top - mean) * lax.rsqrt(var + LN_EPS)
    ln = ln * head_ref[H:H + 1, :] + head_ref[H + 1:H + 2, :]
    w_fcT = head_ref[:H, :].astype(MATMUL_DTYPE)                  # (H, H), cols [O:] = 0
    out = jnp.dot(ln.astype(MATMUL_DTYPE), w_fcT,
                  preferred_element_type=jnp.float32) + head_ref[H + 2:H + 3, :]
    out_ref[...] = out.astype(out_ref.dtype)


# ------------------------- Load-time parameter packing -----------------------

def pack_params(params):
    """One-time repack of PyTorch-layout params into kernel slabs (NOT jitted,
    NOT inside the forward path). Gate order in torch GRU tensors is [r; z; n]."""
    H, G, O = HIDDEN_SIZE, 3 * HIDDEN_SIZE, OUTPUT_SIZE
    L = len(params["gru"])
    w_ih_all = np.zeros((L, H, G), np.float32)
    w_hh_all = np.zeros((L, H, G), np.float32)
    b_all = np.zeros((L, 1, 4 * H), np.float32)
    for l, (w_ih, w_hh, b_ih, b_hh) in enumerate(params["gru"]):
        w_ih, w_hh = np.asarray(w_ih), np.asarray(w_hh)
        b_ih, b_hh = np.asarray(b_ih), np.asarray(b_hh)
        din = w_ih.shape[1]
        w_ih_all[l, :din, :] = w_ih.T                       # gate columns [r|z|n]
        w_hh_all[l, :, :] = w_hh.T
        b_all[l, 0, 0:H] = b_ih[0:H] + b_hh[0:H]            # r bias (folded)
        b_all[l, 0, H:2 * H] = b_ih[H:2 * H] + b_hh[H:2 * H]  # z bias (folded)
        b_all[l, 0, 2 * H:G] = b_ih[2 * H:G]                # n input bias
        b_all[l, 0, G:4 * H] = b_hh[2 * H:G]                # n hidden bias
    head = np.zeros((H + 8, H), np.float32)
    head[:H, :O] = np.asarray(params["fc_w"]).T
    head[H, :] = np.asarray(params["gamma"])
    head[H + 1, :] = np.asarray(params["beta"])
    head[H + 2, :O] = np.asarray(params["fc_b"])
    return (jnp.asarray(w_ih_all, MATMUL_DTYPE),
            jnp.asarray(w_hh_all, MATMUL_DTYPE),
            jnp.asarray(b_all, jnp.float32),
            jnp.asarray(head, jnp.float32))


# ---------------------------------- Wrapper -----------------------------------

@jax.jit
def esrnn_forward(x, w_ih, w_hh, b_all, head):
    """x: (B, T, input_size) -> (B, output_size). Single fused Pallas call."""
    B, T, Din = x.shape
    H = w_hh.shape[1]
    BP = max(8, ((B + 7) // 8) * 8)          # pad batch to sublane granularity
    # Time-major, batch-padded, feature-padded (to H) layout; cast to MXU dtype.
    x_tm = jnp.transpose(x, (1, 0, 2)).astype(jnp.float32)          # (T, B, Din)
    x_pad = jnp.zeros((T, BP, H), jnp.float32).at[:, :B, :Din].set(x_tm)
    x_pad = x_pad.reshape(T * BP, H).astype(MATMUL_DTYPE)
    out = pl.pallas_call(
        _esrnn_fused_kernel,
        out_shape=jax.ShapeDtypeStruct((BP, H), jnp.float32),
        in_specs=[_VMEM] * 5,
        out_specs=_VMEM,
    )(x_pad, w_ih, w_hh, b_all, head)
    return out[:B, :OUTPUT_SIZE]


# ---------------------- Deterministic parameter init -------------------------

def init_params(key, input_size, hidden_size, output_size, num_layers):
    k = 1.0 / np.sqrt(hidden_size)
    gru = []
    for layer in range(num_layers):
        din = input_size if layer == 0 else hidden_size
        key, k1, k2, k3, k4 = jax.random.split(key, 5)
        w_ih = jax.random.uniform(k1, (3 * hidden_size, din), jnp.float32, -k, k)
        w_hh = jax.random.uniform(k2, (3 * hidden_size, hidden_size), jnp.float32, -k, k)
        b_ih = jax.random.uniform(k3, (3 * hidden_size,), jnp.float32, -k, k)
        b_hh = jax.random.uniform(k4, (3 * hidden_size,), jnp.float32, -k, k)
        gru.append((w_ih, w_hh, b_ih, b_hh))
    key, k5, k6, k7, k8 = jax.random.split(key, 5)
    fc_w = jax.random.uniform(k5, (output_size, hidden_size), jnp.float32, -k, k)
    fc_b = jax.random.uniform(k6, (output_size,), jnp.float32, -k, k)
    gamma = jax.random.uniform(k7, (hidden_size,), jnp.float32, 0.5, 1.5)
    beta = jax.random.uniform(k8, (hidden_size,), jnp.float32, -0.1, 0.1)
    return {"gru": gru, "fc_w": fc_w, "fc_b": fc_b, "gamma": gamma, "beta": beta}


# ------------------ Pure-JAX reference (bf16-consistent check) ----------------

def esrnn_ref(x, params, mm_dtype=MATMUL_DTYPE):
    """Reference with the same precision policy as the kernel: matmul operands in
    `mm_dtype`, f32 accumulation, f32 state/gates/LayerNorm."""
    def mm(a, b):
        return jnp.dot(a.astype(mm_dtype), b.astype(mm_dtype),
                       preferred_element_type=jnp.float32)

    B = x.shape[0]
    seq = jnp.transpose(x, (1, 0, 2)).astype(jnp.float32)   # (T, B, Din)
    for (w_ih, w_hh, b_ih, b_hh) in params["gru"]:
        H = w_hh.shape[1]

        def step(h, x_t):
            gi = mm(x_t, w_ih.T) + b_ih
            gh = mm(h, w_hh.T) + b_hh
            i_r, i_z, i_n = jnp.split(gi, 3, axis=-1)
            h_r, h_z, h_n = jnp.split(gh, 3, axis=-1)
            r = jax.nn.sigmoid(i_r + h_r)
            z = jax.nn.sigmoid(i_z + h_z)
            n = jnp.tanh(i_n + r * h_n)
            h_new = (1.0 - z) * n + z * h
            return h_new, h_new

        h0 = jnp.zeros((B, H), jnp.float32)
        _, seq = lax.scan(step, h0, seq)
    h_last = seq[-1]
    mean = h_last.mean(-1, keepdims=True)
    var = ((h_last - mean) ** 2).mean(-1, keepdims=True)
    ln = (h_last - mean) / jnp.sqrt(var + LN_EPS) * params["gamma"] + params["beta"]
    return mm(ln, params["fc_w"].T) + params["fc_b"]


# ----------------------------------- Main -------------------------------------

if __name__ == "__main__":
    key = jax.random.PRNGKey(0)
    key, kx, kp = jax.random.split(key, 3)
    x = jax.random.normal(kx, (BATCH, SEQ_LEN, INPUT_SIZE), jnp.float32)
    params = init_params(kp, INPUT_SIZE, HIDDEN_SIZE, OUTPUT_SIZE, NUM_LAYERS)

    packed = pack_params(params)          # once, at model-load time (outside jit)

    out = jax.block_until_ready(esrnn_forward(x, *packed))
    ref = jax.block_until_ready(esrnn_ref(x, params))
    # Tolerance covers Mosaic-vs-XLA transcendental / accumulation-order deltas on
    # top of the shared bf16 operand rounding (both paths use bf16 matmul operands).
    np.testing.assert_allclose(np.asarray(out), np.asarray(ref), rtol=1e-2, atol=1e-2)

    assert out.shape == (BATCH, OUTPUT_SIZE)
    print("KERNEL_OK")
</pallas_src>

<mosaic_0001>
module attributes {stable_mosaic.version = 11 : i64} {
  func.func @_esrnn_fused_kernel(%arg0: memref<64x32xbf16, #tpu.memory_space<vmem>>, %arg1: memref<3x32x96xbf16, #tpu.memory_space<vmem>>, %arg2: memref<3x32x96xbf16, #tpu.memory_space<vmem>>, %arg3: memref<3x1x128xf32, #tpu.memory_space<vmem>>, %arg4: memref<40x32xf32, #tpu.memory_space<vmem>>, %arg5: memref<8x32xf32, #tpu.memory_space<vmem>>) attributes {dimension_semantics = [], scalar_prefetch = 0 : i64, scratch_operands = 0 : i64, tpu.core_type = #tpu.core_type<tc>} {
    %c0 = arith.constant 0 : index
    %c0_0 = arith.constant 0 : index
    %c0_1 = arith.constant 0 : index
    %0 = vector.load %arg2[%c0, %c0_0, %c0_1] : memref<3x32x96xbf16, #tpu.memory_space<vmem>>, vector<1x32x96xbf16>
    %1 = vector.shape_cast %0 : vector<1x32x96xbf16> to vector<32x96xbf16>
    %c1 = arith.constant 1 : index
    %c0_2 = arith.constant 0 : index
    %c0_3 = arith.constant 0 : index
    %2 = vector.load %arg2[%c1, %c0_2, %c0_3] : memref<3x32x96xbf16, #tpu.memory_space<vmem>>, vector<1x32x96xbf16>
    %3 = vector.shape_cast %2 : vector<1x32x96xbf16> to vector<32x96xbf16>
    %c2 = arith.constant 2 : index
    %c0_4 = arith.constant 0 : index
    %c0_5 = arith.constant 0 : index
    %4 = vector.load %arg2[%c2, %c0_4, %c0_5] : memref<3x32x96xbf16, #tpu.memory_space<vmem>>, vector<1x32x96xbf16>
    %5 = vector.shape_cast %4 : vector<1x32x96xbf16> to vector<32x96xbf16>
    %c1_6 = arith.constant 1 : index
    %c0_7 = arith.constant 0 : index
    %c0_8 = arith.constant 0 : index
    %6 = vector.load %arg1[%c1_6, %c0_7, %c0_8] : memref<3x32x96xbf16, #tpu.memory_space<vmem>>, vector<1x32x96xbf16>
    %7 = vector.shape_cast %6 : vector<1x32x96xbf16> to vector<32x96xbf16>
    %c2_9 = arith.constant 2 : index
    %c0_10 = arith.constant 0 : index
    %c0_11 = arith.constant 0 : index
    %8 = vector.load %arg1[%c2_9, %c0_10, %c0_11] : memref<3x32x96xbf16, #tpu.memory_space<vmem>>, vector<1x32x96xbf16>
    %9 = vector.shape_cast %8 : vector<1x32x96xbf16> to vector<32x96xbf16>
    %c0_12 = arith.constant 0 : index
    %c0_13 = arith.constant 0 : index
    %c0_14 = arith.constant 0 : index
    %10 = vector.load %arg3[%c0_12, %c0_13, %c0_14] : memref<3x1x128xf32, #tpu.memory_space<vmem>>, vector<1x1x96xf32>
    %11 = vector.shape_cast %10 : vector<1x1x96xf32> to vector<1x96xf32>
    %c1_15 = arith.constant 1 : index
    %c0_16 = arith.constant 0 : index
    %c0_17 = arith.constant 0 : index
    %12 = vector.load %arg3[%c1_15, %c0_16, %c0_17] : memref<3x1x128xf32, #tpu.memory_space<vmem>>, vector<1x1x96xf32>
    %13 = vector.shape_cast %12 : vector<1x1x96xf32> to vector<1x96xf32>
    %c2_18 = arith.constant 2 : index
    %c0_19 = arith.constant 0 : index
    %c0_20 = arith.constant 0 : index
    %14 = vector.load %arg3[%c2_18, %c0_19, %c0_20] : memref<3x1x128xf32, #tpu.memory_space<vmem>>, vector<1x1x96xf32>
    %15 = vector.shape_cast %14 : vector<1x1x96xf32> to vector<1x96xf32>
    %c0_21 = arith.constant 0 : index
    %c0_22 = arith.constant 0 : index
    %c96 = arith.constant 96 : index
    %16 = vector.load %arg3[%c0_21, %c0_22, %c96] : memref<3x1x128xf32, #tpu.memory_space<vmem>>, vector<1x1x32xf32>
    %17 = vector.shape_cast %16 : vector<1x1x32xf32> to vector<1x32xf32>
    %18 = vector.shape_cast %17 : vector<1x32xf32> to vector<1x32xf32>
    %19 = vector.broadcast %18 : vector<1x32xf32> to vector<8x32xf32>
    %c1_23 = arith.constant 1 : index
    %c0_24 = arith.constant 0 : index
    %c96_25 = arith.constant 96 : index
    %20 = vector.load %arg3[%c1_23, %c0_24, %c96_25] : memref<3x1x128xf32, #tpu.memory_space<vmem>>, vector<1x1x32xf32>
    %21 = vector.shape_cast %20 : vector<1x1x32xf32> to vector<1x32xf32>
    %22 = vector.shape_cast %21 : vector<1x32xf32> to vector<1x32xf32>
    %23 = vector.broadcast %22 : vector<1x32xf32> to vector<8x32xf32>
    %c2_26 = arith.constant 2 : index
    %c0_27 = arith.constant 0 : index
    %c96_28 = arith.constant 96 : index
    %24 = vector.load %arg3[%c2_26, %c0_27, %c96_28] : memref<3x1x128xf32, #tpu.memory_space<vmem>>, vector<1x1x32xf32>
    %25 = vector.shape_cast %24 : vector<1x1x32xf32> to vector<1x32xf32>
    %26 = vector.shape_cast %25 : vector<1x32xf32> to vector<1x32xf32>
    %27 = vector.broadcast %26 : vector<1x32xf32> to vector<8x32xf32>
    %c0_29 = arith.constant 0 : index
    %c0_30 = arith.constant 0 : index
    %28 = vector.load %arg0[%c0_29, %c0_30] : memref<64x32xbf16, #tpu.memory_space<vmem>>, vector<64x32xbf16>
    %c0_31 = arith.constant 0 : index
    %c0_32 = arith.constant 0 : index
    %c0_33 = arith.constant 0 : index
    %29 = vector.load %arg1[%c0_31, %c0_32, %c0_33] : memref<3x32x96xbf16, #tpu.memory_space<vmem>>, vector<1x32x96xbf16>
    %30 = vector.shape_cast %29 : vector<1x32x96xbf16> to vector<32x96xbf16>
    %cst = arith.constant dense<0.000000e+00> : vector<64x96xf32>
    %31 = tpu.matmul %28, %30, %cst {dimension_numbers = #tpu.dot_dimension_numbers<[1], [0], [0], [1], [0, 0, 1, 1], [], []>} : vector<64x32xbf16>, vector<32x96xbf16>, vector<64x96xf32> -> vector<64x96xf32>
    %32 = vector.broadcast %11 : vector<1x96xf32> to vector<64x96xf32>
    %33 = arith.addf %31, %32 : vector<64x96xf32>
    %cst_34 = arith.constant 0.000000e+00 : f32
    %34 = vector.broadcast %cst_34 : f32 to vector<8x32xf32>
    %cst_35 = arith.constant 0.000000e+00 : f32
    %35 = vector.broadcast %cst_35 : f32 to vector<8x32xf32>
    %cst_36 = arith.constant 0.000000e+00 : f32
    %36 = vector.broadcast %cst_36 : f32 to vector<8x32xf32>
    %37 = vector.extract_strided_slice %33 {offsets = [0, 0], sizes = [8, 96], strides = [1, 1]} : vector<64x96xf32> to vector<8x96xf32>
    %38 = arith.truncf %34 : vector<8x32xf32> to vector<8x32xbf16>
    %cst_37 = arith.constant dense<0.000000e+00> : vector<8x96xf32>
    %39 = tpu.matmul %38, %1, %cst_37 {dimension_numbers = #tpu.dot_dimension_numbers<[1], [0], [0], [1], [0, 0, 1, 1], [], []>} : vector<8x32xbf16>, vector<32x96xbf16>, vector<8x96xf32> -> vector<8x96xf32>
    %40 = vector.extract_strided_slice %37 {offsets = [0, 0], sizes = [8, 64], strides = [1, 1]} : vector<8x96xf32> to vector<8x64xf32>
    %41 = vector.extract_strided_slice %39 {offsets = [0, 0], sizes = [8, 64], strides = [1, 1]} : vector<8x96xf32> to vector<8x64xf32>
    %42 = arith.addf %40, %41 : vector<8x64xf32>
    %43 = arith.negf %42 : vector<8x64xf32>
    %44 = math.exp %43 : vector<8x64xf32>
    %cst_38 = arith.constant 1.000000e+00 : f32
    %45 = vector.broadcast %cst_38 : f32 to vector<8x64xf32>
    %46 = arith.addf %45, %44 : vector<8x64xf32>
    %47 = arith.divf %45, %46 : vector<8x64xf32>
    %48 = vector.extract_strided_slice %47 {offsets = [0, 0], sizes = [8, 32], strides = [1, 1]} : vector<8x64xf32> to vector<8x32xf32>
    %49 = vector.extract_strided_slice %47 {offsets = [0, 32], sizes = [8, 32], strides = [1, 1]} : vector<8x64xf32> to vector<8x32xf32>
    %50 = vector.extract_strided_slice %37 {offsets = [0, 64], sizes = [8, 32], strides = [1, 1]} : vector<8x96xf32> to vector<8x32xf32>
    %51 = vector.extract_strided_slice %39 {offsets = [0, 64], sizes = [8, 32], strides = [1, 1]} : vector<8x96xf32> to vector<8x32xf32>
    %52 = arith.addf %51, %19 : vector<8x32xf32>
    %53 = arith.mulf %48, %52 : vector<8x32xf32>
    %54 = arith.addf %50, %53 : vector<8x32xf32>
    %55 = math.tanh %54 : vector<8x32xf32>
    %cst_39 = arith.constant 1.000000e+00 : f32
    %56 = vector.broadcast %cst_39 : f32 to vector<8x32xf32>
    %57 = arith.subf %56, %49 : vector<8x32xf32>
    %58 = arith.mulf %57, %55 : vector<8x32xf32>
    %59 = arith.mulf %49, %34 : vector<8x32xf32>
    %60 = arith.addf %58, %59 : vector<8x32xf32>
    %61 = arith.truncf %60 : vector<8x32xf32> to vector<8x32xbf16>
    %cst_40 = arith.constant dense<0.000000e+00> : vector<8x96xf32>
    %62 = tpu.matmul %61, %7, %cst_40 {dimension_numbers = #tpu.dot_dimension_numbers<[1], [0], [0], [1], [0, 0, 1, 1], [], []>} : vector<8x32xbf16>, vector<32x96xbf16>, vector<8x96xf32> -> vector<8x96xf32>
    %63 = vector.broadcast %13 : vector<1x96xf32> to vector<8x96xf32>
    %64 = arith.addf %62, %63 : vector<8x96xf32>
    %65 = arith.truncf %35 : vector<8x32xf32> to vector<8x32xbf16>
    %cst_41 = arith.constant dense<0.000000e+00> : vector<8x96xf32>
    %66 = tpu.matmul %65, %3, %cst_41 {dimension_numbers = #tpu.dot_dimension_numbers<[1], [0], [0], [1], [0, 0, 1, 1], [], []>} : vector<8x32xbf16>, vector<32x96xbf16>, vector<8x96xf32> -> vector<8x96xf32>
    %67 = vector.extract_strided_slice %64 {offsets = [0, 0], sizes = [8, 64], strides = [1, 1]} : vector<8x96xf32> to vector<8x64xf32>
    %68 = vector.extract_strided_slice %66 {offsets = [0, 0], sizes = [8, 64], strides = [1, 1]} : vector<8x96xf32> to vector<8x64xf32>
    %69 = arith.addf %67, %68 : vector<8x64xf32>
    %70 = arith.negf %69 : vector<8x64xf32>
    %71 = math.exp %70 : vector<8x64xf32>
    %cst_42 = arith.constant 1.000000e+00 : f32
    %72 = vector.broadcast %cst_42 : f32 to vector<8x64xf32>
    %73 = arith.addf %72, %71 : vector<8x64xf32>
    %74 = arith.divf %72, %73 : vector<8x64xf32>
    %75 = vector.extract_strided_slice %74 {offsets = [0, 0], sizes = [8, 32], strides = [1, 1]} : vector<8x64xf32> to vector<8x32xf32>
    %76 = vector.extract_strided_slice %74 {offsets = [0, 32], sizes = [8, 32], strides = [1, 1]} : vector<8x64xf32> to vector<8x32xf32>
    %77 = vector.extract_strided_slice %64 {offsets = [0, 64], sizes = [8, 32], strides = [1, 1]} : vector<8x96xf32> to vector<8x32xf32>
    %78 = vector.extract_strided_slice %66 {offsets = [0, 64], sizes = [8, 32], strides = [1, 1]} : vector<8x96xf32> to vector<8x32xf32>
    %79 = arith.addf %78, %23 : vector<8x32xf32>
    %80 = arith.mulf %75, %79 : vector<8x32xf32>
    %81 = arith.addf %77, %80 : vector<8x32xf32>
    %82 = math.tanh %81 : vector<8x32xf32>
    %cst_43 = arith.constant 1.000000e+00 : f32
    %83 = vector.broadcast %cst_43 : f32 to vector<8x32xf32>
    %84 = arith.subf %83, %76 : vector<8x32xf32>
    %85 = arith.mulf %84, %82 : vector<8x32xf32>
    %86 = arith.mulf %76, %35 : vector<8x32xf32>
    %87 = arith.addf %85, %86 : vector<8x32xf32>
    %88 = arith.truncf %87 : vector<8x32xf32> to vector<8x32xbf16>
    %cst_44 = arith.constant dense<0.000000e+00> : vector<8x96xf32>
    %89 = tpu.matmul %88, %9, %cst_44 {dimension_numbers = #tpu.dot_dimension_numbers<[1], [0], [0], [1], [0, 0, 1, 1], [], []>} : vector<8x32xbf16>, vector<32x96xbf16>, vector<8x96xf32> -> vector<8x96xf32>
    %90 = vector.broadcast %15 : vector<1x96xf32> to vector<8x96xf32>
    %91 = arith.addf %89, %90 : vector<8x96xf32>
    %92 = arith.truncf %36 : vector<8x32xf32> to vector<8x32xbf16>
    %cst_45 = arith.constant dense<0.000000e+00> : vector<8x96xf32>
    %93 = tpu.matmul %92, %5, %cst_45 {dimension_numbers = #tpu.dot_dimension_numbers<[1], [0], [0], [1], [0, 0, 1, 1], [], []>} : vector<8x32xbf16>, vector<32x96xbf16>, vector<8x96xf32> -> vector<8x96xf32>
    %94 = vector.extract_strided_slice %91 {offsets = [0, 0], sizes = [8, 64], strides = [1, 1]} : vector<8x96xf32> to vector<8x64xf32>
    %95 = vector.extract_strided_slice %93 {offsets = [0, 0], sizes = [8, 64], strides = [1, 1]} : vector<8x96xf32> to vector<8x64xf32>
    %96 = arith.addf %94, %95 : vector<8x64xf32>
    %97 = arith.negf %96 : vector<8x64xf32>
    %98 = math.exp %97 : vector<8x64xf32>
    %cst_46 = arith.constant 1.000000e+00 : f32
    %99 = vector.broadcast %cst_46 : f32 to vector<8x64xf32>
    %100 = arith.addf %99, %98 : vector<8x64xf32>
    %101 = arith.divf %99, %100 : vector<8x64xf32>
    %102 = vector.extract_strided_slice %101 {offsets = [0, 0], sizes = [8, 32], strides = [1, 1]} : vector<8x64xf32> to vector<8x32xf32>
    %103 = vector.extract_strided_slice %101 {offsets = [0, 32], sizes = [8, 32], strides = [1, 1]} : vector<8x64xf32> to vector<8x32xf32>
    %104 = vector.extract_strided_slice %91 {offsets = [0, 64], sizes = [8, 32], strides = [1, 1]} : vector<8x96xf32> to vector<8x32xf32>
    %105 = vector.extract_strided_slice %93 {offsets = [0, 64], sizes = [8, 32], strides = [1, 1]} : vector<8x96xf32> to vector<8x32xf32>
    %106 = arith.addf %105, %27 : vector<8x32xf32>
    %107 = arith.mulf %102, %106 : vector<8x32xf32>
    %108 = arith.addf %104, %107 : vector<8x32xf32>
    %109 = math.tanh %108 : vector<8x32xf32>
    %cst_47 = arith.constant 1.000000e+00 : f32
    %110 = vector.broadcast %cst_47 : f32 to vector<8x32xf32>
    %111 = arith.subf %110, %103 : vector<8x32xf32>
    %112 = arith.mulf %111, %109 : vector<8x32xf32>
    %113 = arith.mulf %103, %36 : vector<8x32xf32>
    %114 = arith.addf %112, %113 : vector<8x32xf32>
    %115 = vector.extract_strided_slice %33 {offsets = [8, 0], sizes = [8, 96], strides = [1, 1]} : vector<64x96xf32> to vector<8x96xf32>
    %116 = arith.truncf %60 : vector<8x32xf32> to vector<8x32xbf16>
    %cst_48 = arith.constant dense<0.000000e+00> : vector<8x96xf32>
    %117 = tpu.matmul %116, %1, %cst_48 {dimension_numbers = #tpu.dot_dimension_numbers<[1], [0], [0], [1], [0, 0, 1, 1], [], []>} : vector<8x32xbf16>, vector<32x96xbf16>, vector<8x96xf32> -> vector<8x96xf32>
    %118 = vector.extract_strided_slice %115 {offsets = [0, 0], sizes = [8, 64], strides = [1, 1]} : vector<8x96xf32> to vector<8x64xf32>
    %119 = vector.extract_strided_slice %117 {offsets = [0, 0], sizes = [8, 64], strides = [1, 1]} : vector<8x96xf32> to vector<8x64xf32>
    %120 = arith.addf %118, %119 : vector<8x64xf32>
    %121 = arith.negf %120 : vector<8x64xf32>
    %122 = math.exp %121 : vector<8x64xf32>
    %cst_49 = arith.constant 1.000000e+00 : f32
    %123 = vector.broadcast %cst_49 : f32 to vector<8x64xf32>
    %124 = arith.addf %123, %122 : vector<8x64xf32>
    %125 = arith.divf %123, %124 : vector<8x64xf32>
    %126 = vector.extract_strided_slice %125 {offsets = [0, 0], sizes = [8, 32], strides = [1, 1]} : vector<8x64xf32> to vector<8x32xf32>
    %127 = vector.extract_strided_slice %125 {offsets = [0, 32], sizes = [8, 32], strides = [1, 1]} : vector<8x64xf32> to vector<8x32xf32>
    %128 = vector.extract_strided_slice %115 {offsets = [0, 64], sizes = [8, 32], strides = [1, 1]} : vector<8x96xf32> to vector<8x32xf32>
    %129 = vector.extract_strided_slice %117 {offsets = [0, 64], sizes = [8, 32], strides = [1, 1]} : vector<8x96xf32> to vector<8x32xf32>
    %130 = arith.addf %129, %19 : vector<8x32xf32>
    %131 = arith.mulf %126, %130 : vector<8x32xf32>
    %132 = arith.addf %128, %131 : vector<8x32xf32>
    %133 = math.tanh %132 : vector<8x32xf32>
    %cst_50 = arith.constant 1.000000e+00 : f32
    %134 = vector.broadcast %cst_50 : f32 to vector<8x32xf32>
    %135 = arith.subf %134, %127 : vector<8x32xf32>
    %136 = arith.mulf %135, %133 : vector<8x32xf32>
    %137 = arith.mulf %127, %60 : vector<8x32xf32>
    %138 = arith.addf %136, %137 : vector<8x32xf32>
    %139 = arith.truncf %138 : vector<8x32xf32> to vector<8x32xbf16>
    %cst_51 = arith.constant dense<0.000000e+00> : vector<8x96xf32>
    %140 = tpu.matmul %139, %7, %cst_51 {dimension_numbers = #tpu.dot_dimension_numbers<[1], [0], [0], [1], [0, 0, 1, 1], [], []>} : vector<8x32xbf16>, vector<32x96xbf16>, vector<8x96xf32> -> vector<8x96xf32>
    %141 = vector.broadcast %13 : vector<1x96xf32> to vector<8x96xf32>
    %142 = arith.addf %140, %141 : vector<8x96xf32>
    %143 = arith.truncf %87 : vector<8x32xf32> to vector<8x32xbf16>
    %cst_52 = arith.constant dense<0.000000e+00> : vector<8x96xf32>
    %144 = tpu.matmul %143, %3, %cst_52 {dimension_numbers = #tpu.dot_dimension_numbers<[1], [0], [0], [1], [0, 0, 1, 1], [], []>} : vector<8x32xbf16>, vector<32x96xbf16>, vector<8x96xf32> -> vector<8x96xf32>
    %145 = vector.extract_strided_slice %142 {offsets = [0, 0], sizes = [8, 64], strides = [1, 1]} : vector<8x96xf32> to vector<8x64xf32>
    %146 = vector.extract_strided_slice %144 {offsets = [0, 0], sizes = [8, 64], strides = [1, 1]} : vector<8x96xf32> to vector<8x64xf32>
    %147 = arith.addf %145, %146 : vector<8x64xf32>
    %148 = arith.negf %147 : vector<8x64xf32>
    %149 = math.exp %148 : vector<8x64xf32>
    %cst_53 = arith.constant 1.000000e+00 : f32
    %150 = vector.broadcast %cst_53 : f32 to vector<8x64xf32>
    %151 = arith.addf %150, %149 : vector<8x64xf32>
    %152 = arith.divf %150, %151 : vector<8x64xf32>
    %153 = vector.extract_strided_slice %152 {offsets = [0, 0], sizes = [8, 32], strides = [1, 1]} : vector<8x64xf32> to vector<8x32xf32>
    %154 = vector.extract_strided_slice %152 {offsets = [0, 32], sizes = [8, 32], strides = [1, 1]} : vector<8x64xf32> to vector<8x32xf32>
    %155 = vector.extract_strided_slice %142 {offsets = [0, 64], sizes = [8, 32], strides = [1, 1]} : vector<8x96xf32> to vector<8x32xf32>
    %156 = vector.extract_strided_slice %144 {offsets = [0, 64], sizes = [8, 32], strides = [1, 1]} : vector<8x96xf32> to vector<8x32xf32>
    %157 = arith.addf %156, %23 : vector<8x32xf32>
    %158 = arith.mulf %153, %157 : vector<8x32xf32>
    %159 = arith.addf %155, %158 : vector<8x32xf32>
    %160 = math.tanh %159 : vector<8x32xf32>
    %cst_54 = arith.constant 1.000000e+00 : f32
    %161 = vector.broadcast %cst_54 : f32 to vector<8x32xf32>
    %162 = arith.subf %161, %154 : vector<8x32xf32>
    %163 = arith.mulf %162, %160 : vector<8x32xf32>
    %164 = arith.mulf %154, %87 : vector<8x32xf32>
    %165 = arith.addf %163, %164 : vector<8x32xf32>
    %166 = arith.truncf %165 : vector<8x32xf32> to vector<8x32xbf16>
    %cst_55 = arith.constant dense<0.000000e+00> : vector<8x96xf32>
    %167 = tpu.matmul %166, %9, %cst_55 {dimension_numbers = #tpu.dot_dimension_numbers<[1], [0], [0], [1], [0, 0, 1, 1], [], []>} : vector<8x32xbf16>, vector<32x96xbf16>, vector<8x96xf32> -> vector<8x96xf32>
    %168 = vector.broadcast %15 : vector<1x96xf32> to vector<8x96xf32>
    %169 = arith.addf %167, %168 : vector<8x96xf32>
    %170 = arith.truncf %114 : vector<8x32xf32> to vector<8x32xbf16>
    %cst_56 = arith.constant dense<0.000000e+00> : vector<8x96xf32>
    %171 = tpu.matmul %170, %5, %cst_56 {dimension_numbers = #tpu.dot_dimension_numbers<[1], [0], [0], [1], [0, 0, 1, 1], [], []>} : vector<8x32xbf16>, vector<32x96xbf16>, vector<8x96xf32> -> vector<8x96xf32>
    %172 = vector.extract_strided_slice %169 {offsets = [0, 0], sizes = [8, 64], strides = [1, 1]} : vector<8x96xf32> to vector<8x64xf32>
    %173 = vector.extract_strided_slice %171 {offsets = [0, 0], sizes = [8, 64], strides = [1, 1]} : vector<8x96xf32> to vector<8x64xf32>
    %174 = arith.addf %172, %173 : vector<8x64xf32>
    %175 = arith.negf %174 : vector<8x64xf32>
    %176 = math.exp %175 : vector<8x64xf32>
    %cst_57 = arith.constant 1.000000e+00 : f32
    %177 = vector.broadcast %cst_57 : f32 to vector<8x64xf32>
    %178 = arith.addf %177, %176 : vector<8x64xf32>
    %179 = arith.divf %177, %178 : vector<8x64xf32>
    %180 = vector.extract_strided_slice %179 {offsets = [0, 0], sizes = [8, 32], strides = [1, 1]} : vector<8x64xf32> to vector<8x32xf32>
    %181 = vector.extract_strided_slice %179 {offsets = [0, 32], sizes = [8, 32], strides = [1, 1]} : vector<8x64xf32> to vector<8x32xf32>
    %182 = vector.extract_strided_slice %169 {offsets = [0, 64], sizes = [8, 32], strides = [1, 1]} : vector<8x96xf32> to vector<8x32xf32>
    %183 = vector.extract_strided_slice %171 {offsets = [0, 64], sizes = [8, 32], strides = [1, 1]} : vector<8x96xf32> to vector<8x32xf32>
    %184 = arith.addf %183, %27 : vector<8x32xf32>
    %185 = arith.mulf %180, %184 : vector<8x32xf32>
    %186 = arith.addf %182, %185 : vector<8x32xf32>
    %187 = math.tanh %186 : vector<8x32xf32>
    %cst_58 = arith.constant 1.000000e+00 : f32
    %188 = vector.broadcast %cst_58 : f32 to vector<8x32xf32>
    %189 = arith.subf %188, %181 : vector<8x32xf32>
    %190 = arith.mulf %189, %187 : vector<8x32xf32>
    %191 = arith.mulf %181, %114 : vector<8x32xf32>
    %192 = arith.addf %190, %191 : vector<8x32xf32>
    %193 = vector.extract_strided_slice %33 {offsets = [16, 0], sizes = [8, 96], strides = [1, 1]} : vector<64x96xf32> to vector<8x96xf32>
    %194 = arith.truncf %138 : vector<8x32xf32> to vector<8x32xbf16>
    %cst_59 = arith.constant dense<0.000000e+00> : vector<8x96xf32>
    %195 = tpu.matmul %194, %1, %cst_59 {dimension_numbers = #tpu.dot_dimension_numbers<[1], [0], [0], [1], [0, 0, 1, 1], [], []>} : vector<8x32xbf16>, vector<32x96xbf16>, vector<8x96xf32> -> vector<8x96xf32>
    %196 = vector.extract_strided_slice %193 {offsets = [0, 0], sizes = [8, 64], strides = [1, 1]} : vector<8x96xf32> to vector<8x64xf32>
    %197 = vector.extract_strided_slice %195 {offsets = [0, 0], sizes = [8, 64], strides = [1, 1]} : vector<8x96xf32> to vector<8x64xf32>
    %198 = arith.addf %196, %197 : vector<8x64xf32>
    %199 = arith.negf %198 : vector<8x64xf32>
    %200 = math.exp %199 : vector<8x64xf32>
    %cst_60 = arith.constant 1.000000e+00 : f32
    %201 = vector.broadcast %cst_60 : f32 to vector<8x64xf32>
    %202 = arith.addf %201, %200 : vector<8x64xf32>
    %203 = arith.divf %201, %202 : vector<8x64xf32>
    %204 = vector.extract_strided_slice %203 {offsets = [0, 0], sizes = [8, 32], strides = [1, 1]} : vector<8x64xf32> to vector<8x32xf32>
    %205 = vector.extract_strided_slice %203 {offsets = [0, 32], sizes = [8, 32], strides = [1, 1]} : vector<8x64xf32> to vector<8x32xf32>
    %206 = vector.extract_strided_slice %193 {offsets = [0, 64], sizes = [8, 32], strides = [1, 1]} : vector<8x96xf32> to vector<8x32xf32>
    %207 = vector.extract_strided_slice %195 {offsets = [0, 64], sizes = [8, 32], strides = [1, 1]} : vector<8x96xf32> to vector<8x32xf32>
    %208 = arith.addf %207, %19 : vector<8x32xf32>
    %209 = arith.mulf %204, %208 : vector<8x32xf32>
    %210 = arith.addf %206, %209 : vector<8x32xf32>
    %211 = math.tanh %210 : vector<8x32xf32>
    %cst_61 = arith.constant 1.000000e+00 : f32
    %212 = vector.broadcast %cst_61 : f32 to vector<8x32xf32>
    %213 = arith.subf %212, %205 : vector<8x32xf32>
    %214 = arith.mulf %213, %211 : vector<8x32xf32>
    %215 = arith.mulf %205, %138 : vector<8x32xf32>
    %216 = arith.addf %214, %215 : vector<8x32xf32>
    %217 = arith.truncf %216 : vector<8x32xf32> to vector<8x32xbf16>
    %cst_62 = arith.constant dense<0.000000e+00> : vector<8x96xf32>
    %218 = tpu.matmul %217, %7, %cst_62 {dimension_numbers = #tpu.dot_dimension_numbers<[1], [0], [0], [1], [0, 0, 1, 1], [], []>} : vector<8x32xbf16>, vector<32x96xbf16>, vector<8x96xf32> -> vector<8x96xf32>
    %219 = vector.broadcast %13 : vector<1x96xf32> to vector<8x96xf32>
    %220 = arith.addf %218, %219 : vector<8x96xf32>
    %221 = arith.truncf %165 : vector<8x32xf32> to vector<8x32xbf16>
    %cst_63 = arith.constant dense<0.000000e+00> : vector<8x96xf32>
    %222 = tpu.matmul %221, %3, %cst_63 {dimension_numbers = #tpu.dot_dimension_numbers<[1], [0], [0], [1], [0, 0, 1, 1], [], []>} : vector<8x32xbf16>, vector<32x96xbf16>, vector<8x96xf32> -> vector<8x96xf32>
    %223 = vector.extract_strided_slice %220 {offsets = [0, 0], sizes = [8, 64], strides = [1, 1]} : vector<8x96xf32> to vector<8x64xf32>
    %224 = vector.extract_strided_slice %222 {offsets = [0, 0], sizes = [8, 64], strides = [1, 1]} : vector<8x96xf32> to vector<8x64xf32>
    %225 = arith.addf %223, %224 : vector<8x64xf32>
    %226 = arith.negf %225 : vector<8x64xf32>
    %227 = math.exp %226 : vector<8x64xf32>
    %cst_64 = arith.constant 1.000000e+00 : f32
    %228 = vector.broadcast %cst_64 : f32 to vector<8x64xf32>
    %229 = arith.addf %228, %227 : vector<8x64xf32>
    %230 = arith.divf %228, %229 : vector<8x64xf32>
    %231 = vector.extract_strided_slice %230 {offsets = [0, 0], sizes = [8, 32], strides = [1, 1]} : vector<8x64xf32> to vector<8x32xf32>
    %232 = vector.extract_strided_slice %230 {offsets = [0, 32], sizes = [8, 32], strides = [1, 1]} : vector<8x64xf32> to vector<8x32xf32>
    %233 = vector.extract_strided_slice %220 {offsets = [0, 64], sizes = [8, 32], strides = [1, 1]} : vector<8x96xf32> to vector<8x32xf32>
    %234 = vector.extract_strided_slice %222 {offsets = [0, 64], sizes = [8, 32], strides = [1, 1]} : vector<8x96xf32> to vector<8x32xf32>
    %235 = arith.addf %234, %23 : vector<8x32xf32>
    %236 = arith.mulf %231, %235 : vector<8x32xf32>
    %237 = arith.addf %233, %236 : vector<8x32xf32>
    %238 = math.tanh %237 : vector<8x32xf32>
    %cst_65 = arith.constant 1.000000e+00 : f32
    %239 = vector.broadcast %cst_65 : f32 to vector<8x32xf32>
    %240 = arith.subf %239, %232 : vector<8x32xf32>
    %241 = arith.mulf %240, %238 : vector<8x32xf32>
    %242 = arith.mulf %232, %165 : vector<8x32xf32>
    %243 = arith.addf %241, %242 : vector<8x32xf32>
    %244 = arith.truncf %243 : vector<8x32xf32> to vector<8x32xbf16>
    %cst_66 = arith.constant dense<0.000000e+00> : vector<8x96xf32>
    %245 = tpu.matmul %244, %9, %cst_66 {dimension_numbers = #tpu.dot_dimension_numbers<[1], [0], [0], [1], [0, 0, 1, 1], [], []>} : vector<8x32xbf16>, vector<32x96xbf16>, vector<8x96xf32> -> vector<8x96xf32>
    %246 = vector.broadcast %15 : vector<1x96xf32> to vector<8x96xf32>
    %247 = arith.addf %245, %246 : vector<8x96xf32>
    %248 = arith.truncf %192 : vector<8x32xf32> to vector<8x32xbf16>
    %cst_67 = arith.constant dense<0.000000e+00> : vector<8x96xf32>
    %249 = tpu.matmul %248, %5, %cst_67 {dimension_numbers = #tpu.dot_dimension_numbers<[1], [0], [0], [1], [0, 0, 1, 1], [], []>} : vector<8x32xbf16>, vector<32x96xbf16>, vector<8x96xf32> -> vector<8x96xf32>
    %250 = vector.extract_strided_slice %247 {offsets = [0, 0], sizes = [8, 64], strides = [1, 1]} : vector<8x96xf32> to vector<8x64xf32>
    %251 = vector.extract_strided_slice %249 {offsets = [0, 0], sizes = [8, 64], strides = [1, 1]} : vector<8x96xf32> to vector<8x64xf32>
    %252 = arith.addf %250, %251 : vector<8x64xf32>
    %253 = arith.negf %252 : vector<8x64xf32>
    %254 = math.exp %253 : vector<8x64xf32>
    %cst_68 = arith.constant 1.000000e+00 : f32
    %255 = vector.broadcast %cst_68 : f32 to vector<8x64xf32>
    %256 = arith.addf %255, %254 : vector<8x64xf32>
    %257 = arith.divf %255, %256 : vector<8x64xf32>
    %258 = vector.extract_strided_slice %257 {offsets = [0, 0], sizes = [8, 32], strides = [1, 1]} : vector<8x64xf32> to vector<8x32xf32>
    %259 = vector.extract_strided_slice %257 {offsets = [0, 32], sizes = [8, 32], strides = [1, 1]} : vector<8x64xf32> to vector<8x32xf32>
    %260 = vector.extract_strided_slice %247 {offsets = [0, 64], sizes = [8, 32], strides = [1, 1]} : vector<8x96xf32> to vector<8x32xf32>
    %261 = vector.extract_strided_slice %249 {offsets = [0, 64], sizes = [8, 32], strides = [1, 1]} : vector<8x96xf32> to vector<8x32xf32>
    %262 = arith.addf %261, %27 : vector<8x32xf32>
    %263 = arith.mulf %258, %262 : vector<8x32xf32>
    %264 = arith.addf %260, %263 : vector<8x32xf32>
    %265 = math.tanh %264 : vector<8x32xf32>
    %cst_69 = arith.constant 1.000000e+00 : f32
    %266 = vector.broadcast %cst_69 : f32 to vector<8x32xf32>
    %267 = arith.subf %266, %259 : vector<8x32xf32>
    %268 = arith.mulf %267, %265 : vector<8x32xf32>
    %269 = arith.mulf %259, %192 : vector<8x32xf32>
    %270 = arith.addf %268, %269 : vector<8x32xf32>
    %271 = vector.extract_strided_slice %33 {offsets = [24, 0], sizes = [8, 96], strides = [1, 1]} : vector<64x96xf32> to vector<8x96xf32>
    %272 = arith.truncf %216 : vector<8x32xf32> to vector<8x32xbf16>
    %cst_70 = arith.constant dense<0.000000e+00> : vector<8x96xf32>
    %273 = tpu.matmul %272, %1, %cst_70 {dimension_numbers = #tpu.dot_dimension_numbers<[1], [0], [0], [1], [0, 0, 1, 1], [], []>} : vector<8x32xbf16>, vector<32x96xbf16>, vector<8x96xf32> -> vector<8x96xf32>
    %274 = vector.extract_strided_slice %271 {offsets = [0, 0], sizes = [8, 64], strides = [1, 1]} : vector<8x96xf32> to vector<8x64xf32>
    %275 = vector.extract_strided_slice %273 {offsets = [0, 0], sizes = [8, 64], strides = [1, 1]} : vector<8x96xf32> to vector<8x64xf32>
    %276 = arith.addf %274, %275 : vector<8x64xf32>
    %277 = arith.negf %276 : vector<8x64xf32>
    %278 = math.exp %277 : vector<8x64xf32>
    %cst_71 = arith.constant 1.000000e+00 : f32
    %279 = vector.broadcast %cst_71 : f32 to vector<8x64xf32>
    %280 = arith.addf %279, %278 : vector<8x64xf32>
    %281 = arith.divf %279, %280 : vector<8x64xf32>
    %282 = vector.extract_strided_slice %281 {offsets = [0, 0], sizes = [8, 32], strides = [1, 1]} : vector<8x64xf32> to vector<8x32xf32>
    %283 = vector.extract_strided_slice %281 {offsets = [0, 32], sizes = [8, 32], strides = [1, 1]} : vector<8x64xf32> to vector<8x32xf32>
    %284 = vector.extract_strided_slice %271 {offsets = [0, 64], sizes = [8, 32], strides = [1, 1]} : vector<8x96xf32> to vector<8x32xf32>
    %285 = vector.extract_strided_slice %273 {offsets = [0, 64], sizes = [8, 32], strides = [1, 1]} : vector<8x96xf32> to vector<8x32xf32>
    %286 = arith.addf %285, %19 : vector<8x32xf32>
    %287 = arith.mulf %282, %286 : vector<8x32xf32>
    %288 = arith.addf %284, %287 : vector<8x32xf32>
    %289 = math.tanh %288 : vector<8x32xf32>
    %cst_72 = arith.constant 1.000000e+00 : f32
    %290 = vector.broadcast %cst_72 : f32 to vector<8x32xf32>
    %291 = arith.subf %290, %283 : vector<8x32xf32>
    %292 = arith.mulf %291, %289 : vector<8x32xf32>
    %293 = arith.mulf %283, %216 : vector<8x32xf32>
    %294 = arith.addf %292, %293 : vector<8x32xf32>
    %295 = arith.truncf %294 : vector<8x32xf32> to vector<8x32xbf16>
    %cst_73 = arith.constant dense<0.000000e+00> : vector<8x96xf32>
    %296 = tpu.matmul %295, %7, %cst_73 {dimension_numbers = #tpu.dot_dimension_numbers<[1], [0], [0], [1], [0, 0, 1, 1], [], []>} : vector<8x32xbf16>, vector<32x96xbf16>, vector<8x96xf32> -> vector<8x96xf32>
    %297 = vector.broadcast %13 : vector<1x96xf32> to vector<8x96xf32>
    %298 = arith.addf %296, %297 : vector<8x96xf32>
    %299 = arith.truncf %243 : vector<8x32xf32> to vector<8x32xbf16>
    %cst_74 = arith.constant dense<0.000000e+00> : vector<8x96xf32>
    %300 = tpu.matmul %299, %3, %cst_74 {dimension_numbers = #tpu.dot_dimension_numbers<[1], [0], [0], [1], [0, 0, 1, 1], [], []>} : vector<8x32xbf16>, vector<32x96xbf16>, vector<8x96xf32> -> vector<8x96xf32>
    %301 = vector.extract_strided_slice %298 {offsets = [0, 0], sizes = [8, 64], strides = [1, 1]} : vector<8x96xf32> to vector<8x64xf32>
    %302 = vector.extract_strided_slice %300 {offsets = [0, 0], sizes = [8, 64], strides = [1, 1]} : vector<8x96xf32> to vector<8x64xf32>
    %303 = arith.addf %301, %302 : vector<8x64xf32>
    %304 = arith.negf %303 : vector<8x64xf32>
    %305 = math.exp %304 : vector<8x64xf32>
    %cst_75 = arith.constant 1.000000e+00 : f32
    %306 = vector.broadcast %cst_75 : f32 to vector<8x64xf32>
    %307 = arith.addf %306, %305 : vector<8x64xf32>
    %308 = arith.divf %306, %307 : vector<8x64xf32>
    %309 = vector.extract_strided_slice %308 {offsets = [0, 0], sizes = [8, 32], strides = [1, 1]} : vector<8x64xf32> to vector<8x32xf32>
    %310 = vector.extract_strided_slice %308 {offsets = [0, 32], sizes = [8, 32], strides = [1, 1]} : vector<8x64xf32> to vector<8x32xf32>
    %311 = vector.extract_strided_slice %298 {offsets = [0, 64], sizes = [8, 32], strides = [1, 1]} : vector<8x96xf32> to vector<8x32xf32>
    %312 = vector.extract_strided_slice %300 {offsets = [0, 64], sizes = [8, 32], strides = [1, 1]} : vector<8x96xf32> to vector<8x32xf32>
    %313 = arith.addf %312, %23 : vector<8x32xf32>
    %314 = arith.mulf %309, %313 : vector<8x32xf32>
    %315 = arith.addf %311, %314 : vector<8x32xf32>
    %316 = math.tanh %315 : vector<8x32xf32>
    %cst_76 = arith.constant 1.000000e+00 : f32
    %317 = vector.broadcast %cst_76 : f32 to vector<8x32xf32>
    %318 = arith.subf %317, %310 : vector<8x32xf32>
    %319 = arith.mulf %318, %316 : vector<8x32xf32>
    %320 = arith.mulf %310, %243 : vector<8x32xf32>
    %321 = arith.addf %319, %320 : vector<8x32xf32>
    %322 = arith.truncf %321 : vector<8x32xf32> to vector<8x32xbf16>
    %cst_77 = arith.constant dense<0.000000e+00> : vector<8x96xf32>
    %323 = tpu.matmul %322, %9, %cst_77 {dimension_numbers = #tpu.dot_dimension_numbers<[1], [0], [0], [1], [0, 0, 1, 1], [], []>} : vector<8x32xbf16>, vector<32x96xbf16>, vector<8x96xf32> -> vector<8x96xf32>
    %324 = vector.broadcast %15 : vector<1x96xf32> to vector<8x96xf32>
    %325 = arith.addf %323, %324 : vector<8x96xf32>
    %326 = arith.truncf %270 : vector<8x32xf32> to vector<8x32xbf16>
    %cst_78 = arith.constant dense<0.000000e+00> : vector<8x96xf32>
    %327 = tpu.matmul %326, %5, %cst_78 {dimension_numbers = #tpu.dot_dimension_numbers<[1], [0], [0], [1], [0, 0, 1, 1], [], []>} : vector<8x32xbf16>, vector<32x96xbf16>, vector<8x96xf32> -> vector<8x96xf32>
    %328 = vector.extract_strided_slice %325 {offsets = [0, 0], sizes = [8, 64], strides = [1, 1]} : vector<8x96xf32> to vector<8x64xf32>
    %329 = vector.extract_strided_slice %327 {offsets = [0, 0], sizes = [8, 64], strides = [1, 1]} : vector<8x96xf32> to vector<8x64xf32>
    %330 = arith.addf %328, %329 : vector<8x64xf32>
    %331 = arith.negf %330 : vector<8x64xf32>
    %332 = math.exp %331 : vector<8x64xf32>
    %cst_79 = arith.constant 1.000000e+00 : f32
    %333 = vector.broadcast %cst_79 : f32 to vector<8x64xf32>
    %334 = arith.addf %333, %332 : vector<8x64xf32>
    %335 = arith.divf %333, %334 : vector<8x64xf32>
    %336 = vector.extract_strided_slice %335 {offsets = [0, 0], sizes = [8, 32], strides = [1, 1]} : vector<8x64xf32> to vector<8x32xf32>
    %337 = vector.extract_strided_slice %335 {offsets = [0, 32], sizes = [8, 32], strides = [1, 1]} : vector<8x64xf32> to vector<8x32xf32>
    %338 = vector.extract_strided_slice %325 {offsets = [0, 64], sizes = [8, 32], strides = [1, 1]} : vector<8x96xf32> to vector<8x32xf32>
    %339 = vector.extract_strided_slice %327 {offsets = [0, 64], sizes = [8, 32], strides = [1, 1]} : vector<8x96xf32> to vector<8x32xf32>
    %340 = arith.addf %339, %27 : vector<8x32xf32>
    %341 = arith.mulf %336, %340 : vector<8x32xf32>
    %342 = arith.addf %338, %341 : vector<8x32xf32>
    %343 = math.tanh %342 : vector<8x32xf32>
    %cst_80 = arith.constant 1.000000e+00 : f32
    %344 = vector.broadcast %cst_80 : f32 to vector<8x32xf32>
    %345 = arith.subf %344, %337 : vector<8x32xf32>
    %346 = arith.mulf %345, %343 : vector<8x32xf32>
    %347 = arith.mulf %337, %270 : vector<8x32xf32>
    %348 = arith.addf %346, %347 : vector<8x32xf32>
    %349 = vector.extract_strided_slice %33 {offsets = [32, 0], sizes = [8, 96], strides = [1, 1]} : vector<64x96xf32> to vector<8x96xf32>
    %350 = arith.truncf %294 : vector<8x32xf32> to vector<8x32xbf16>
    %cst_81 = arith.constant dense<0.000000e+00> : vector<8x96xf32>
    %351 = tpu.matmul %350, %1, %cst_81 {dimension_numbers = #tpu.dot_dimension_numbers<[1], [0], [0], [1], [0, 0, 1, 1], [], []>} : vector<8x32xbf16>, vector<32x96xbf16>, vector<8x96xf32> -> vector<8x96xf32>
    %352 = vector.extract_strided_slice %349 {offsets = [0, 0], sizes = [8, 64], strides = [1, 1]} : vector<8x96xf32> to vector<8x64xf32>
    %353 = vector.extract_strided_slice %351 {offsets = [0, 0], sizes = [8, 64], strides = [1, 1]} : vector<8x96xf32> to vector<8x64xf32>
    %354 = arith.addf %352, %353 : vector<8x64xf32>
    %355 = arith.negf %354 : vector<8x64xf32>
    %356 = math.exp %355 : vector<8x64xf32>
    %cst_82 = arith.constant 1.000000e+00 : f32
    %357 = vector.broadcast %cst_82 : f32 to vector<8x64xf32>
    %358 = arith.addf %357, %356 : vector<8x64xf32>
    %359 = arith.divf %357, %358 : vector<8x64xf32>
    %360 = vector.extract_strided_slice %359 {offsets = [0, 0], sizes = [8, 32], strides = [1, 1]} : vector<8x64xf32> to vector<8x32xf32>
    %361 = vector.extract_strided_slice %359 {offsets = [0, 32], sizes = [8, 32], strides = [1, 1]} : vector<8x64xf32> to vector<8x32xf32>
    %362 = vector.extract_strided_slice %349 {offsets = [0, 64], sizes = [8, 32], strides = [1, 1]} : vector<8x96xf32> to vector<8x32xf32>
    %363 = vector.extract_strided_slice %351 {offsets = [0, 64], sizes = [8, 32], strides = [1, 1]} : vector<8x96xf32> to vector<8x32xf32>
    %364 = arith.addf %363, %19 : vector<8x32xf32>
    %365 = arith.mulf %360, %364 : vector<8x32xf32>
    %366 = arith.addf %362, %365 : vector<8x32xf32>
    %367 = math.tanh %366 : vector<8x32xf32>
    %cst_83 = arith.constant 1.000000e+00 : f32
    %368 = vector.broadcast %cst_83 : f32 to vector<8x32xf32>
    %369 = arith.subf %368, %361 : vector<8x32xf32>
    %370 = arith.mulf %369, %367 : vector<8x32xf32>
    %371 = arith.mulf %361, %294 : vector<8x32xf32>
    %372 = arith.addf %370, %371 : vector<8x32xf32>
    %373 = arith.truncf %372 : vector<8x32xf32> to vector<8x32xbf16>
    %cst_84 = arith.constant dense<0.000000e+00> : vector<8x96xf32>
    %374 = tpu.matmul %373, %7, %cst_84 {dimension_numbers = #tpu.dot_dimension_numbers<[1], [0], [0], [1], [0, 0, 1, 1], [], []>} : vector<8x32xbf16>, vector<32x96xbf16>, vector<8x96xf32> -> vector<8x96xf32>
    %375 = vector.broadcast %13 : vector<1x96xf32> to vector<8x96xf32>
    %376 = arith.addf %374, %375 : vector<8x96xf32>
    %377 = arith.truncf %321 : vector<8x32xf32> to vector<8x32xbf16>
    %cst_85 = arith.constant dense<0.000000e+00> : vector<8x96xf32>
    %378 = tpu.matmul %377, %3, %cst_85 {dimension_numbers = #tpu.dot_dimension_numbers<[1], [0], [0], [1], [0, 0, 1, 1], [], []>} : vector<8x32xbf16>, vector<32x96xbf16>, vector<8x96xf32> -> vector<8x96xf32>
    %379 = vector.extract_strided_slice %376 {offsets = [0, 0], sizes = [8, 64], strides = [1, 1]} : vector<8x96xf32> to vector<8x64xf32>
    %380 = vector.extract_strided_slice %378 {offsets = [0, 0], sizes = [8, 64], strides = [1, 1]} : vector<8x96xf32> to vector<8x64xf32>
    %381 = arith.addf %379, %380 : vector<8x64xf32>
    %382 = arith.negf %381 : vector<8x64xf32>
    %383 = math.exp %382 : vector<8x64xf32>
    %cst_86 = arith.constant 1.000000e+00 : f32
    %384 = vector.broadcast %cst_86 : f32 to vector<8x64xf32>
    %385 = arith.addf %384, %383 : vector<8x64xf32>
    %386 = arith.divf %384, %385 : vector<8x64xf32>
    %387 = vector.extract_strided_slice %386 {offsets = [0, 0], sizes = [8, 32], strides = [1, 1]} : vector<8x64xf32> to vector<8x32xf32>
    %388 = vector.extract_strided_slice %386 {offsets = [0, 32], sizes = [8, 32], strides = [1, 1]} : vector<8x64xf32> to vector<8x32xf32>
    %389 = vector.extract_strided_slice %376 {offsets = [0, 64], sizes = [8, 32], strides = [1, 1]} : vector<8x96xf32> to vector<8x32xf32>
    %390 = vector.extract_strided_slice %378 {offsets = [0, 64], sizes = [8, 32], strides = [1, 1]} : vector<8x96xf32> to vector<8x32xf32>
    %391 = arith.addf %390, %23 : vector<8x32xf32>
    %392 = arith.mulf %387, %391 : vector<8x32xf32>
    %393 = arith.addf %389, %392 : vector<8x32xf32>
    %394 = math.tanh %393 : vector<8x32xf32>
    %cst_87 = arith.constant 1.000000e+00 : f32
    %395 = vector.broadcast %cst_87 : f32 to vector<8x32xf32>
    %396 = arith.subf %395, %388 : vector<8x32xf32>
    %397 = arith.mulf %396, %394 : vector<8x32xf32>
    %398 = arith.mulf %388, %321 : vector<8x32xf32>
    %399 = arith.addf %397, %398 : vector<8x32xf32>
    %400 = arith.truncf %399 : vector<8x32xf32> to vector<8x32xbf16>
    %cst_88 = arith.constant dense<0.000000e+00> : vector<8x96xf32>
    %401 = tpu.matmul %400, %9, %cst_88 {dimension_numbers = #tpu.dot_dimension_numbers<[1], [0], [0], [1], [0, 0, 1, 1], [], []>} : vector<8x32xbf16>, vector<32x96xbf16>, vector<8x96xf32> -> vector<8x96xf32>
    %402 = vector.broadcast %15 : vector<1x96xf32> to vector<8x96xf32>
    %403 = arith.addf %401, %402 : vector<8x96xf32>
    %404 = arith.truncf %348 : vector<8x32xf32> to vector<8x32xbf16>
    %cst_89 = arith.constant dense<0.000000e+00> : vector<8x96xf32>
    %405 = tpu.matmul %404, %5, %cst_89 {dimension_numbers = #tpu.dot_dimension_numbers<[1], [0], [0], [1], [0, 0, 1, 1], [], []>} : vector<8x32xbf16>, vector<32x96xbf16>, vector<8x96xf32> -> vector<8x96xf32>
    %406 = vector.extract_strided_slice %403 {offsets = [0, 0], sizes = [8, 64], strides = [1, 1]} : vector<8x96xf32> to vector<8x64xf32>
    %407 = vector.extract_strided_slice %405 {offsets = [0, 0], sizes = [8, 64], strides = [1, 1]} : vector<8x96xf32> to vector<8x64xf32>
    %408 = arith.addf %406, %407 : vector<8x64xf32>
    %409 = arith.negf %408 : vector<8x64xf32>
    %410 = math.exp %409 : vector<8x64xf32>
    %cst_90 = arith.constant 1.000000e+00 : f32
    %411 = vector.broadcast %cst_90 : f32 to vector<8x64xf32>
    %412 = arith.addf %411, %410 : vector<8x64xf32>
    %413 = arith.divf %411, %412 : vector<8x64xf32>
    %414 = vector.extract_strided_slice %413 {offsets = [0, 0], sizes = [8, 32], strides = [1, 1]} : vector<8x64xf32> to vector<8x32xf32>
    %415 = vector.extract_strided_slice %413 {offsets = [0, 32], sizes = [8, 32], strides = [1, 1]} : vector<8x64xf32> to vector<8x32xf32>
    %416 = vector.extract_strided_slice %403 {offsets = [0, 64], sizes = [8, 32], strides = [1, 1]} : vector<8x96xf32> to vector<8x32xf32>
    %417 = vector.extract_strided_slice %405 {offsets = [0, 64], sizes = [8, 32], strides = [1, 1]} : vector<8x96xf32> to vector<8x32xf32>
    %418 = arith.addf %417, %27 : vector<8x32xf32>
    %419 = arith.mulf %414, %418 : vector<8x32xf32>
    %420 = arith.addf %416, %419 : vector<8x32xf32>
    %421 = math.tanh %420 : vector<8x32xf32>
    %cst_91 = arith.constant 1.000000e+00 : f32
    %422 = vector.broadcast %cst_91 : f32 to vector<8x32xf32>
    %423 = arith.subf %422, %415 : vector<8x32xf32>
    %424 = arith.mulf %423, %421 : vector<8x32xf32>
    %425 = arith.mulf %415, %348 : vector<8x32xf32>
    %426 = arith.addf %424, %425 : vector<8x32xf32>
    %427 = vector.extract_strided_slice %33 {offsets = [40, 0], sizes = [8, 96], strides = [1, 1]} : vector<64x96xf32> to vector<8x96xf32>
    %428 = arith.truncf %372 : vector<8x32xf32> to vector<8x32xbf16>
    %cst_92 = arith.constant dense<0.000000e+00> : vector<8x96xf32>
    %429 = tpu.matmul %428, %1, %cst_92 {dimension_numbers = #tpu.dot_dimension_numbers<[1], [0], [0], [1], [0, 0, 1, 1], [], []>} : vector<8x32xbf16>, vector<32x96xbf16>, vector<8x96xf32> -> vector<8x96xf32>
    %430 = vector.extract_strided_slice %427 {offsets = [0, 0], sizes = [8, 64], strides = [1, 1]} : vector<8x96xf32> to vector<8x64xf32>
    %431 = vector.extract_strided_slice %429 {offsets = [0, 0], sizes = [8, 64], strides = [1, 1]} : vector<8x96xf32> to vector<8x64xf32>
    %432 = arith.addf %430, %431 : vector<8x64xf32>
    %433 = arith.negf %432 : vector<8x64xf32>
    %434 = math.exp %433 : vector<8x64xf32>
    %cst_93 = arith.constant 1.000000e+00 : f32
    %435 = vector.broadcast %cst_93 : f32 to vector<8x64xf32>
    %436 = arith.addf %435, %434 : vector<8x64xf32>
    %437 = arith.divf %435, %436 : vector<8x64xf32>
    %438 = vector.extract_strided_slice %437 {offsets = [0, 0], sizes = [8, 32], strides = [1, 1]} : vector<8x64xf32> to vector<8x32xf32>
    %439 = vector.extract_strided_slice %437 {offsets = [0, 32], sizes = [8, 32], strides = [1, 1]} : vector<8x64xf32> to vector<8x32xf32>
    %440 = vector.extract_strided_slice %427 {offsets = [0, 64], sizes = [8, 32], strides = [1, 1]} : vector<8x96xf32> to vector<8x32xf32>
    %441 = vector.extract_strided_slice %429 {offsets = [0, 64], sizes = [8, 32], strides = [1, 1]} : vector<8x96xf32> to vector<8x32xf32>
    %442 = arith.addf %441, %19 : vector<8x32xf32>
    %443 = arith.mulf %438, %442 : vector<8x32xf32>
    %444 = arith.addf %440, %443 : vector<8x32xf32>
    %445 = math.tanh %444 : vector<8x32xf32>
    %cst_94 = arith.constant 1.000000e+00 : f32
    %446 = vector.broadcast %cst_94 : f32 to vector<8x32xf32>
    %447 = arith.subf %446, %439 : vector<8x32xf32>
    %448 = arith.mulf %447, %445 : vector<8x32xf32>
    %449 = arith.mulf %439, %372 : vector<8x32xf32>
    %450 = arith.addf %448, %449 : vector<8x32xf32>
    %451 = arith.truncf %450 : vector<8x32xf32> to vector<8x32xbf16>
    %cst_95 = arith.constant dense<0.000000e+00> : vector<8x96xf32>
    %452 = tpu.matmul %451, %7, %cst_95 {dimension_numbers = #tpu.dot_dimension_numbers<[1], [0], [0], [1], [0, 0, 1, 1], [], []>} : vector<8x32xbf16>, vector<32x96xbf16>, vector<8x96xf32> -> vector<8x96xf32>
    %453 = vector.broadcast %13 : vector<1x96xf32> to vector<8x96xf32>
    %454 = arith.addf %452, %453 : vector<8x96xf32>
    %455 = arith.truncf %399 : vector<8x32xf32> to vector<8x32xbf16>
    %cst_96 = arith.constant dense<0.000000e+00> : vector<8x96xf32>
    %456 = tpu.matmul %455, %3, %cst_96 {dimension_numbers = #tpu.dot_dimension_numbers<[1], [0], [0], [1], [0, 0, 1, 1], [], []>} : vector<8x32xbf16>, vector<32x96xbf16>, vector<8x96xf32> -> vector<8x96xf32>
    %457 = vector.extract_strided_slice %454 {offsets = [0, 0], sizes = [8, 64], strides = [1, 1]} : vector<8x96xf32> to vector<8x64xf32>
    %458 = vector.extract_strided_slice %456 {offsets = [0, 0], sizes = [8, 64], strides = [1, 1]} : vector<8x96xf32> to vector<8x64xf32>
    %459 = arith.addf %457, %458 : vector<8x64xf32>
    %460 = arith.negf %459 : vector<8x64xf32>
    %461 = math.exp %460 : vector<8x64xf32>
    %cst_97 = arith.constant 1.000000e+00 : f32
    %462 = vector.broadcast %cst_97 : f32 to vector<8x64xf32>
    %463 = arith.addf %462, %461 : vector<8x64xf32>
    %464 = arith.divf %462, %463 : vector<8x64xf32>
    %465 = vector.extract_strided_slice %464 {offsets = [0, 0], sizes = [8, 32], strides = [1, 1]} : vector<8x64xf32> to vector<8x32xf32>
    %466 = vector.extract_strided_slice %464 {offsets = [0, 32], sizes = [8, 32], strides = [1, 1]} : vector<8x64xf32> to vector<8x32xf32>
    %467 = vector.extract_strided_slice %454 {offsets = [0, 64], sizes = [8, 32], strides = [1, 1]} : vector<8x96xf32> to vector<8x32xf32>
    %468 = vector.extract_strided_slice %456 {offsets = [0, 64], sizes = [8, 32], strides = [1, 1]} : vector<8x96xf32> to vector<8x32xf32>
    %469 = arith.addf %468, %23 : vector<8x32xf32>
    %470 = arith.mulf %465, %469 : vector<8x32xf32>
    %471 = arith.addf %467, %470 : vector<8x32xf32>
    %472 = math.tanh %471 : vector<8x32xf32>
    %cst_98 = arith.constant 1.000000e+00 : f32
    %473 = vector.broadcast %cst_98 : f32 to vector<8x32xf32>
    %474 = arith.subf %473, %466 : vector<8x32xf32>
    %475 = arith.mulf %474, %472 : vector<8x32xf32>
    %476 = arith.mulf %466, %399 : vector<8x32xf32>
    %477 = arith.addf %475, %476 : vector<8x32xf32>
    %478 = arith.truncf %477 : vector<8x32xf32> to vector<8x32xbf16>
    %cst_99 = arith.constant dense<0.000000e+00> : vector<8x96xf32>
    %479 = tpu.matmul %478, %9, %cst_99 {dimension_numbers = #tpu.dot_dimension_numbers<[1], [0], [0], [1], [0, 0, 1, 1], [], []>} : vector<8x32xbf16>, vector<32x96xbf16>, vector<8x96xf32> -> vector<8x96xf32>
    %480 = vector.broadcast %15 : vector<1x96xf32> to vector<8x96xf32>
    %481 = arith.addf %479, %480 : vector<8x96xf32>
    %482 = arith.truncf %426 : vector<8x32xf32> to vector<8x32xbf16>
    %cst_100 = arith.constant dense<0.000000e+00> : vector<8x96xf32>
    %483 = tpu.matmul %482, %5, %cst_100 {dimension_numbers = #tpu.dot_dimension_numbers<[1], [0], [0], [1], [0, 0, 1, 1], [], []>} : vector<8x32xbf16>, vector<32x96xbf16>, vector<8x96xf32> -> vector<8x96xf32>
    %484 = vector.extract_strided_slice %481 {offsets = [0, 0], sizes = [8, 64], strides = [1, 1]} : vector<8x96xf32> to vector<8x64xf32>
    %485 = vector.extract_strided_slice %483 {offsets = [0, 0], sizes = [8, 64], strides = [1, 1]} : vector<8x96xf32> to vector<8x64xf32>
    %486 = arith.addf %484, %485 : vector<8x64xf32>
    %487 = arith.negf %486 : vector<8x64xf32>
    %488 = math.exp %487 : vector<8x64xf32>
    %cst_101 = arith.constant 1.000000e+00 : f32
    %489 = vector.broadcast %cst_101 : f32 to vector<8x64xf32>
    %490 = arith.addf %489, %488 : vector<8x64xf32>
    %491 = arith.divf %489, %490 : vector<8x64xf32>
    %492 = vector.extract_strided_slice %491 {offsets = [0, 0], sizes = [8, 32], strides = [1, 1]} : vector<8x64xf32> to vector<8x32xf32>
    %493 = vector.extract_strided_slice %491 {offsets = [0, 32], sizes = [8, 32], strides = [1, 1]} : vector<8x64xf32> to vector<8x32xf32>
    %494 = vector.extract_strided_slice %481 {offsets = [0, 64], sizes = [8, 32], strides = [1, 1]} : vector<8x96xf32> to vector<8x32xf32>
    %495 = vector.extract_strided_slice %483 {offsets = [0, 64], sizes = [8, 32], strides = [1, 1]} : vector<8x96xf32> to vector<8x32xf32>
    %496 = arith.addf %495, %27 : vector<8x32xf32>
    %497 = arith.mulf %492, %496 : vector<8x32xf32>
    %498 = arith.addf %494, %497 : vector<8x32xf32>
    %499 = math.tanh %498 : vector<8x32xf32>
    %cst_102 = arith.constant 1.000000e+00 : f32
    %500 = vector.broadcast %cst_102 : f32 to vector<8x32xf32>
    %501 = arith.subf %500, %493 : vector<8x32xf32>
    %502 = arith.mulf %501, %499 : vector<8x32xf32>
    %503 = arith.mulf %493, %426 : vector<8x32xf32>
    %504 = arith.addf %502, %503 : vector<8x32xf32>
    %505 = vector.extract_strided_slice %33 {offsets = [48, 0], sizes = [8, 96], strides = [1, 1]} : vector<64x96xf32> to vector<8x96xf32>
    %506 = arith.truncf %450 : vector<8x32xf32> to vector<8x32xbf16>
    %cst_103 = arith.constant dense<0.000000e+00> : vector<8x96xf32>
    %507 = tpu.matmul %506, %1, %cst_103 {dimension_numbers = #tpu.dot_dimension_numbers<[1], [0], [0], [1], [0, 0, 1, 1], [], []>} : vector<8x32xbf16>, vector<32x96xbf16>, vector<8x96xf32> -> vector<8x96xf32>
    %508 = vector.extract_strided_slice %505 {offsets = [0, 0], sizes = [8, 64], strides = [1, 1]} : vector<8x96xf32> to vector<8x64xf32>
    %509 = vector.extract_strided_slice %507 {offsets = [0, 0], sizes = [8, 64], strides = [1, 1]} : vector<8x96xf32> to vector<8x64xf32>
    %510 = arith.addf %508, %509 : vector<8x64xf32>
    %511 = arith.negf %510 : vector<8x64xf32>
    %512 = math.exp %511 : vector<8x64xf32>
    %cst_104 = arith.constant 1.000000e+00 : f32
    %513 = vector.broadcast %cst_104 : f32 to vector<8x64xf32>
    %514 = arith.addf %513, %512 : vector<8x64xf32>
    %515 = arith.divf %513, %514 : vector<8x64xf32>
    %516 = vector.extract_strided_slice %515 {offsets = [0, 0], sizes = [8, 32], strides = [1, 1]} : vector<8x64xf32> to vector<8x32xf32>
    %517 = vector.extract_strided_slice %515 {offsets = [0, 32], sizes = [8, 32], strides = [1, 1]} : vector<8x64xf32> to vector<8x32xf32>
    %518 = vector.extract_strided_slice %505 {offsets = [0, 64], sizes = [8, 32], strides = [1, 1]} : vector<8x96xf32> to vector<8x32xf32>
    %519 = vector.extract_strided_slice %507 {offsets = [0, 64], sizes = [8, 32], strides = [1, 1]} : vector<8x96xf32> to vector<8x32xf32>
    %520 = arith.addf %519, %19 : vector<8x32xf32>
    %521 = arith.mulf %516, %520 : vector<8x32xf32>
    %522 = arith.addf %518, %521 : vector<8x32xf32>
    %523 = math.tanh %522 : vector<8x32xf32>
    %cst_105 = arith.constant 1.000000e+00 : f32
    %524 = vector.broadcast %cst_105 : f32 to vector<8x32xf32>
    %525 = arith.subf %524, %517 : vector<8x32xf32>
    %526 = arith.mulf %525, %523 : vector<8x32xf32>
    %527 = arith.mulf %517, %450 : vector<8x32xf32>
    %528 = arith.addf %526, %527 : vector<8x32xf32>
    %529 = arith.truncf %528 : vector<8x32xf32> to vector<8x32xbf16>
    %cst_106 = arith.constant dense<0.000000e+00> : vector<8x96xf32>
    %530 = tpu.matmul %529, %7, %cst_106 {dimension_numbers = #tpu.dot_dimension_numbers<[1], [0], [0], [1], [0, 0, 1, 1], [], []>} : vector<8x32xbf16>, vector<32x96xbf16>, vector<8x96xf32> -> vector<8x96xf32>
    %531 = vector.broadcast %13 : vector<1x96xf32> to vector<8x96xf32>
    %532 = arith.addf %530, %531 : vector<8x96xf32>
    %533 = arith.truncf %477 : vector<8x32xf32> to vector<8x32xbf16>
    %cst_107 = arith.constant dense<0.000000e+00> : vector<8x96xf32>
    %534 = tpu.matmul %533, %3, %cst_107 {dimension_numbers = #tpu.dot_dimension_numbers<[1], [0], [0], [1], [0, 0, 1, 1], [], []>} : vector<8x32xbf16>, vector<32x96xbf16>, vector<8x96xf32> -> vector<8x96xf32>
    %535 = vector.extract_strided_slice %532 {offsets = [0, 0], sizes = [8, 64], strides = [1, 1]} : vector<8x96xf32> to vector<8x64xf32>
    %536 = vector.extract_strided_slice %534 {offsets = [0, 0], sizes = [8, 64], strides = [1, 1]} : vector<8x96xf32> to vector<8x64xf32>
    %537 = arith.addf %535, %536 : vector<8x64xf32>
    %538 = arith.negf %537 : vector<8x64xf32>
    %539 = math.exp %538 : vector<8x64xf32>
    %cst_108 = arith.constant 1.000000e+00 : f32
    %540 = vector.broadcast %cst_108 : f32 to vector<8x64xf32>
    %541 = arith.addf %540, %539 : vector<8x64xf32>
    %542 = arith.divf %540, %541 : vector<8x64xf32>
    %543 = vector.extract_strided_slice %542 {offsets = [0, 0], sizes = [8, 32], strides = [1, 1]} : vector<8x64xf32> to vector<8x32xf32>
    %544 = vector.extract_strided_slice %542 {offsets = [0, 32], sizes = [8, 32], strides = [1, 1]} : vector<8x64xf32> to vector<8x32xf32>
    %545 = vector.extract_strided_slice %532 {offsets = [0, 64], sizes = [8, 32], strides = [1, 1]} : vector<8x96xf32> to vector<8x32xf32>
    %546 = vector.extract_strided_slice %534 {offsets = [0, 64], sizes = [8, 32], strides = [1, 1]} : vector<8x96xf32> to vector<8x32xf32>
    %547 = arith.addf %546, %23 : vector<8x32xf32>
    %548 = arith.mulf %543, %547 : vector<8x32xf32>
    %549 = arith.addf %545, %548 : vector<8x32xf32>
    %550 = math.tanh %549 : vector<8x32xf32>
    %cst_109 = arith.constant 1.000000e+00 : f32
    %551 = vector.broadcast %cst_109 : f32 to vector<8x32xf32>
    %552 = arith.subf %551, %544 : vector<8x32xf32>
    %553 = arith.mulf %552, %550 : vector<8x32xf32>
    %554 = arith.mulf %544, %477 : vector<8x32xf32>
    %555 = arith.addf %553, %554 : vector<8x32xf32>
    %556 = arith.truncf %555 : vector<8x32xf32> to vector<8x32xbf16>
    %cst_110 = arith.constant dense<0.000000e+00> : vector<8x96xf32>
    %557 = tpu.matmul %556, %9, %cst_110 {dimension_numbers = #tpu.dot_dimension_numbers<[1], [0], [0], [1], [0, 0, 1, 1], [], []>} : vector<8x32xbf16>, vector<32x96xbf16>, vector<8x96xf32> -> vector<8x96xf32>
    %558 = vector.broadcast %15 : vector<1x96xf32> to vector<8x96xf32>
    %559 = arith.addf %557, %558 : vector<8x96xf32>
    %560 = arith.truncf %504 : vector<8x32xf32> to vector<8x32xbf16>
    %cst_111 = arith.constant dense<0.000000e+00> : vector<8x96xf32>
    %561 = tpu.matmul %560, %5, %cst_111 {dimension_numbers = #tpu.dot_dimension_numbers<[1], [0], [0], [1], [0, 0, 1, 1], [], []>} : vector<8x32xbf16>, vector<32x96xbf16>, vector<8x96xf32> -> vector<8x96xf32>
    %562 = vector.extract_strided_slice %559 {offsets = [0, 0], sizes = [8, 64], strides = [1, 1]} : vector<8x96xf32> to vector<8x64xf32>
    %563 = vector.extract_strided_slice %561 {offsets = [0, 0], sizes = [8, 64], strides = [1, 1]} : vector<8x96xf32> to vector<8x64xf32>
    %564 = arith.addf %562, %563 : vector<8x64xf32>
    %565 = arith.negf %564 : vector<8x64xf32>
    %566 = math.exp %565 : vector<8x64xf32>
    %cst_112 = arith.constant 1.000000e+00 : f32
    %567 = vector.broadcast %cst_112 : f32 to vector<8x64xf32>
    %568 = arith.addf %567, %566 : vector<8x64xf32>
    %569 = arith.divf %567, %568 : vector<8x64xf32>
    %570 = vector.extract_strided_slice %569 {offsets = [0, 0], sizes = [8, 32], strides = [1, 1]} : vector<8x64xf32> to vector<8x32xf32>
    %571 = vector.extract_strided_slice %569 {offsets = [0, 32], sizes = [8, 32], strides = [1, 1]} : vector<8x64xf32> to vector<8x32xf32>
    %572 = vector.extract_strided_slice %559 {offsets = [0, 64], sizes = [8, 32], strides = [1, 1]} : vector<8x96xf32> to vector<8x32xf32>
    %573 = vector.extract_strided_slice %561 {offsets = [0, 64], sizes = [8, 32], strides = [1, 1]} : vector<8x96xf32> to vector<8x32xf32>
    %574 = arith.addf %573, %27 : vector<8x32xf32>
    %575 = arith.mulf %570, %574 : vector<8x32xf32>
    %576 = arith.addf %572, %575 : vector<8x32xf32>
    %577 = math.tanh %576 : vector<8x32xf32>
    %cst_113 = arith.constant 1.000000e+00 : f32
    %578 = vector.broadcast %cst_113 : f32 to vector<8x32xf32>
    %579 = arith.subf %578, %571 : vector<8x32xf32>
    %580 = arith.mulf %579, %577 : vector<8x32xf32>
    %581 = arith.mulf %571, %504 : vector<8x32xf32>
    %582 = arith.addf %580, %581 : vector<8x32xf32>
    %583 = vector.extract_strided_slice %33 {offsets = [56, 0], sizes = [8, 96], strides = [1, 1]} : vector<64x96xf32> to vector<8x96xf32>
    %584 = arith.truncf %528 : vector<8x32xf32> to vector<8x32xbf16>
    %cst_114 = arith.constant dense<0.000000e+00> : vector<8x96xf32>
    %585 = tpu.matmul %584, %1, %cst_114 {dimension_numbers = #tpu.dot_dimension_numbers<[1], [0], [0], [1], [0, 0, 1, 1], [], []>} : vector<8x32xbf16>, vector<32x96xbf16>, vector<8x96xf32> -> vector<8x96xf32>
    %586 = vector.extract_strided_slice %583 {offsets = [0, 0], sizes = [8, 64], strides = [1, 1]} : vector<8x96xf32> to vector<8x64xf32>
    %587 = vector.extract_strided_slice %585 {offsets = [0, 0], sizes = [8, 64], strides = [1, 1]} : vector<8x96xf32> to vector<8x64xf32>
    %588 = arith.addf %586, %587 : vector<8x64xf32>
    %589 = arith.negf %588 : vector<8x64xf32>
    %590 = math.exp %589 : vector<8x64xf32>
    %cst_115 = arith.constant 1.000000e+00 : f32
    %591 = vector.broadcast %cst_115 : f32 to vector<8x64xf32>
    %592 = arith.addf %591, %590 : vector<8x64xf32>
    %593 = arith.divf %591, %592 : vector<8x64xf32>
    %594 = vector.extract_strided_slice %593 {offsets = [0, 0], sizes = [8, 32], strides = [1, 1]} : vector<8x64xf32> to vector<8x32xf32>
    %595 = vector.extract_strided_slice %593 {offsets = [0, 32], sizes = [8, 32], strides = [1, 1]} : vector<8x64xf32> to vector<8x32xf32>
    %596 = vector.extract_strided_slice %583 {offsets = [0, 64], sizes = [8, 32], strides = [1, 1]} : vector<8x96xf32> to vector<8x32xf32>
    %597 = vector.extract_strided_slice %585 {offsets = [0, 64], sizes = [8, 32], strides = [1, 1]} : vector<8x96xf32> to vector<8x32xf32>
    %598 = arith.addf %597, %19 : vector<8x32xf32>
    %599 = arith.mulf %594, %598 : vector<8x32xf32>
    %600 = arith.addf %596, %599 : vector<8x32xf32>
    %601 = math.tanh %600 : vector<8x32xf32>
    %cst_116 = arith.constant 1.000000e+00 : f32
    %602 = vector.broadcast %cst_116 : f32 to vector<8x32xf32>
    %603 = arith.subf %602, %595 : vector<8x32xf32>
    %604 = arith.mulf %603, %601 : vector<8x32xf32>
    %605 = arith.mulf %595, %528 : vector<8x32xf32>
    %606 = arith.addf %604, %605 : vector<8x32xf32>
    %607 = arith.truncf %606 : vector<8x32xf32> to vector<8x32xbf16>
    %cst_117 = arith.constant dense<0.000000e+00> : vector<8x96xf32>
    %608 = tpu.matmul %607, %7, %cst_117 {dimension_numbers = #tpu.dot_dimension_numbers<[1], [0], [0], [1], [0, 0, 1, 1], [], []>} : vector<8x32xbf16>, vector<32x96xbf16>, vector<8x96xf32> -> vector<8x96xf32>
    %609 = vector.broadcast %13 : vector<1x96xf32> to vector<8x96xf32>
    %610 = arith.addf %608, %609 : vector<8x96xf32>
    %611 = arith.truncf %555 : vector<8x32xf32> to vector<8x32xbf16>
    %cst_118 = arith.constant dense<0.000000e+00> : vector<8x96xf32>
    %612 = tpu.matmul %611, %3, %cst_118 {dimension_numbers = #tpu.dot_dimension_numbers<[1], [0], [0], [1], [0, 0, 1, 1], [], []>} : vector<8x32xbf16>, vector<32x96xbf16>, vector<8x96xf32> -> vector<8x96xf32>
    %613 = vector.extract_strided_slice %610 {offsets = [0, 0], sizes = [8, 64], strides = [1, 1]} : vector<8x96xf32> to vector<8x64xf32>
    %614 = vector.extract_strided_slice %612 {offsets = [0, 0], sizes = [8, 64], strides = [1, 1]} : vector<8x96xf32> to vector<8x64xf32>
    %615 = arith.addf %613, %614 : vector<8x64xf32>
    %616 = arith.negf %615 : vector<8x64xf32>
    %617 = math.exp %616 : vector<8x64xf32>
    %cst_119 = arith.constant 1.000000e+00 : f32
    %618 = vector.broadcast %cst_119 : f32 to vector<8x64xf32>
    %619 = arith.addf %618, %617 : vector<8x64xf32>
    %620 = arith.divf %618, %619 : vector<8x64xf32>
    %621 = vector.extract_strided_slice %620 {offsets = [0, 0], sizes = [8, 32], strides = [1, 1]} : vector<8x64xf32> to vector<8x32xf32>
    %622 = vector.extract_strided_slice %620 {offsets = [0, 32], sizes = [8, 32], strides = [1, 1]} : vector<8x64xf32> to vector<8x32xf32>
    %623 = vector.extract_strided_slice %610 {offsets = [0, 64], sizes = [8, 32], strides = [1, 1]} : vector<8x96xf32> to vector<8x32xf32>
    %624 = vector.extract_strided_slice %612 {offsets = [0, 64], sizes = [8, 32], strides = [1, 1]} : vector<8x96xf32> to vector<8x32xf32>
    %625 = arith.addf %624, %23 : vector<8x32xf32>
    %626 = arith.mulf %621, %625 : vector<8x32xf32>
    %627 = arith.addf %623, %626 : vector<8x32xf32>
    %628 = math.tanh %627 : vector<8x32xf32>
    %cst_120 = arith.constant 1.000000e+00 : f32
    %629 = vector.broadcast %cst_120 : f32 to vector<8x32xf32>
    %630 = arith.subf %629, %622 : vector<8x32xf32>
    %631 = arith.mulf %630, %628 : vector<8x32xf32>
    %632 = arith.mulf %622, %555 : vector<8x32xf32>
    %633 = arith.addf %631, %632 : vector<8x32xf32>
    %634 = arith.truncf %633 : vector<8x32xf32> to vector<8x32xbf16>
    %cst_121 = arith.constant dense<0.000000e+00> : vector<8x96xf32>
    %635 = tpu.matmul %634, %9, %cst_121 {dimension_numbers = #tpu.dot_dimension_numbers<[1], [0], [0], [1], [0, 0, 1, 1], [], []>} : vector<8x32xbf16>, vector<32x96xbf16>, vector<8x96xf32> -> vector<8x96xf32>
    %636 = vector.broadcast %15 : vector<1x96xf32> to vector<8x96xf32>
    %637 = arith.addf %635, %636 : vector<8x96xf32>
    %638 = arith.truncf %582 : vector<8x32xf32> to vector<8x32xbf16>
    %cst_122 = arith.constant dense<0.000000e+00> : vector<8x96xf32>
    %639 = tpu.matmul %638, %5, %cst_122 {dimension_numbers = #tpu.dot_dimension_numbers<[1], [0], [0], [1], [0, 0, 1, 1], [], []>} : vector<8x32xbf16>, vector<32x96xbf16>, vector<8x96xf32> -> vector<8x96xf32>
    %640 = vector.extract_strided_slice %637 {offsets = [0, 0], sizes = [8, 64], strides = [1, 1]} : vector<8x96xf32> to vector<8x64xf32>
    %641 = vector.extract_strided_slice %639 {offsets = [0, 0], sizes = [8, 64], strides = [1, 1]} : vector<8x96xf32> to vector<8x64xf32>
    %642 = arith.addf %640, %641 : vector<8x64xf32>
    %643 = arith.negf %642 : vector<8x64xf32>
    %644 = math.exp %643 : vector<8x64xf32>
    %cst_123 = arith.constant 1.000000e+00 : f32
    %645 = vector.broadcast %cst_123 : f32 to vector<8x64xf32>
    %646 = arith.addf %645, %644 : vector<8x64xf32>
    %647 = arith.divf %645, %646 : vector<8x64xf32>
    %648 = vector.extract_strided_slice %647 {offsets = [0, 0], sizes = [8, 32], strides = [1, 1]} : vector<8x64xf32> to vector<8x32xf32>
    %649 = vector.extract_strided_slice %647 {offsets = [0, 32], sizes = [8, 32], strides = [1, 1]} : vector<8x64xf32> to vector<8x32xf32>
    %650 = vector.extract_strided_slice %637 {offsets = [0, 64], sizes = [8, 32], strides = [1, 1]} : vector<8x96xf32> to vector<8x32xf32>
    %651 = vector.extract_strided_slice %639 {offsets = [0, 64], sizes = [8, 32], strides = [1, 1]} : vector<8x96xf32> to vector<8x32xf32>
    %652 = arith.addf %651, %27 : vector<8x32xf32>
    %653 = arith.mulf %648, %652 : vector<8x32xf32>
    %654 = arith.addf %650, %653 : vector<8x32xf32>
    %655 = math.tanh %654 : vector<8x32xf32>
    %cst_124 = arith.constant 1.000000e+00 : f32
    %656 = vector.broadcast %cst_124 : f32 to vector<8x32xf32>
    %657 = arith.subf %656, %649 : vector<8x32xf32>
    %658 = arith.mulf %657, %655 : vector<8x32xf32>
    %659 = arith.mulf %649, %582 : vector<8x32xf32>
    %660 = arith.addf %658, %659 : vector<8x32xf32>
    %cst_125 = arith.constant dense<0.000000e+00> : vector<8xf32>
    %661 = vector.multi_reduction <add>, %660, %cst_125 [1] : vector<8x32xf32> to vector<8xf32>
    %662 = vector.shape_cast %661 : vector<8xf32> to vector<8x1xf32>
    %cst_126 = arith.constant 3.200000e+01 : f32
    %663 = vector.broadcast %cst_126 : f32 to vector<8x1xf32>
    %664 = arith.divf %662, %663 : vector<8x1xf32>
    %665 = vector.broadcast %664 : vector<8x1xf32> to vector<8x32xf32>
    %666 = arith.subf %660, %665 : vector<8x32xf32>
    %667 = arith.mulf %666, %666 : vector<8x32xf32>
    %cst_127 = arith.constant dense<0.000000e+00> : vector<8xf32>
    %668 = vector.multi_reduction <add>, %667, %cst_127 [1] : vector<8x32xf32> to vector<8xf32>
    %669 = vector.shape_cast %668 : vector<8xf32> to vector<8x1xf32>
    %cst_128 = arith.constant 3.200000e+01 : f32
    %670 = vector.broadcast %cst_128 : f32 to vector<8x1xf32>
    %671 = arith.divf %669, %670 : vector<8x1xf32>
    %672 = vector.broadcast %664 : vector<8x1xf32> to vector<8x32xf32>
    %673 = arith.subf %660, %672 : vector<8x32xf32>
    %cst_129 = arith.constant 9.99999974E-6 : f32
    %674 = vector.broadcast %cst_129 : f32 to vector<8x1xf32>
    %675 = arith.addf %671, %674 : vector<8x1xf32>
    %676 = math.rsqrt %675 : vector<8x1xf32>
    %677 = vector.broadcast %676 : vector<8x1xf32> to vector<8x32xf32>
    %678 = arith.mulf %673, %677 : vector<8x32xf32>
    %c32 = arith.constant 32 : index
    %c0_130 = arith.constant 0 : index
    %679 = vector.load %arg4[%c32, %c0_130] : memref<40x32xf32, #tpu.memory_space<vmem>>, vector<1x32xf32>
    %680 = vector.broadcast %679 : vector<1x32xf32> to vector<8x32xf32>
    %681 = arith.mulf %678, %680 : vector<8x32xf32>
    %c33 = arith.constant 33 : index
    %c0_131 = arith.constant 0 : index
    %682 = vector.load %arg4[%c33, %c0_131] : memref<40x32xf32, #tpu.memory_space<vmem>>, vector<1x32xf32>
    %683 = vector.broadcast %682 : vector<1x32xf32> to vector<8x32xf32>
    %684 = arith.addf %681, %683 : vector<8x32xf32>
    %c0_132 = arith.constant 0 : index
    %c0_133 = arith.constant 0 : index
    %685 = vector.load %arg4[%c0_132, %c0_133] : memref<40x32xf32, #tpu.memory_space<vmem>>, vector<32x32xf32>
    %686 = arith.truncf %685 : vector<32x32xf32> to vector<32x32xbf16>
    %687 = arith.truncf %684 : vector<8x32xf32> to vector<8x32xbf16>
    %cst_134 = arith.constant dense<0.000000e+00> : vector<8x32xf32>
    %688 = tpu.matmul %687, %686, %cst_134 {dimension_numbers = #tpu.dot_dimension_numbers<[1], [0], [0], [1], [0, 0, 1, 1], [], []>} : vector<8x32xbf16>, vector<32x32xbf16>, vector<8x32xf32> -> vector<8x32xf32>
    %c34 = arith.constant 34 : index
    %c0_135 = arith.constant 0 : index
    %689 = vector.load %arg4[%c34, %c0_135] : memref<40x32xf32, #tpu.memory_space<vmem>>, vector<1x32xf32>
    %690 = vector.broadcast %689 : vector<1x32xf32> to vector<8x32xf32>
    %691 = arith.addf %688, %690 : vector<8x32xf32>
    %c0_136 = arith.constant 0 : index
    %c0_137 = arith.constant 0 : index
    %692 = vector.load %arg5[%c0_136, %c0_137] : memref<8x32xf32, #tpu.memory_space<vmem>>, vector<8x32xf32>
    tpu.vector_store %arg5[%c0_136, %c0_137], %691 {strides = array<i32>} : memref<8x32xf32, #tpu.memory_space<vmem>>, vector<8x32xf32>,
    return
  }
}

</mosaic_0001>

<bundles_post_ra>
// kernel: esrnn_forward.1
= control target key start
LH: loop header
LB: loop body
LE: loop exit
PB: predicated region body
PF: predicated region fallthrough
CT: control target
= control target key end

     0   :  { %v3532_v0 = vmov 0.0   ;;  %vm3533_vm0 = vmmov 0   ;;  %vm110_vm1 = vcmask 261120   ;;  %s3534_s7 = smov 96   ;;  %v3535_v8 = vmov 0   ;;  %s3536_s8 = smov 64   ;;  %s4340_s1 = inlined_call_operand.vmem [shape: bf16[3,32,96], index: 1, kind: input, shape index: {}]   ;;  %s4341_s2 = inlined_call_operand.vmem [shape: bf16[3,32,96], index: 2, kind: input, shape index: {}]   ;;  %s4342_s0 = inlined_call_operand.vmem [shape: bf16[64,32], index: 0, kind: input, shape index: {}]   ;;  %s4343_s3 = inlined_call_operand.vmem [shape: f32[3,1,128], index: 3, kind: input, shape index: {}]   ;;  %s4344_s4 = inlined_call_operand.vmem [shape: f32[40,32], index: 4, kind: input, shape index: {}]   ;;  %s4345_s5 = inlined_call_operand.vmem [shape: f32[8,32], index: 5, kind: output, shape index: {}]  }
   0x1   :  { %3023 = vmatprep.subr.bf16.mxu1 %v3532_v0  ;;  %v3357_v1 = vld [vmem:[%s4340_s1] sm:$0xff]   ;;  %3027 = vmatprep.mubr.msk.bf16.mxu1 %vm3533_vm0, %v3532_v0  ;;  %v3359_v3 = vld [vmem:[%s4340_s1 + $0x8] sm:$0xff]   ;;  %v3625_v29 = vld [vmem:[%s4341_s2 + $0x10] sm:$0xff]  }
   0x2   :  { %v3577_v2 = vld [vmem:[%s4341_s2] sm:$0xff]   ;;  %3011 = vmatprep.subr.bf16.mxu0 %v3357_v1  ;;  %v3586_v4 = vld [vmem:[%s4341_s2 + $0x8] sm:$0xff]   ;;  %v3364_v30 = vld [vmem:[%s4342_s0 + $0x10] sm:$0xff]  }
   0x3   :  { %3024 = vmatpush3.bf16.msra.mxu1 %v3577_v2  ;;  %3012 = vmatpush3.bf16.msra.mxu0 %v3357_v1  ;;  %v3361_v5 = vld [vmem:[%s4342_s0] sm:$0xff]   ;;  %v3362_v6 = vld [vmem:[%s4342_s0 + $0x8] sm:$0xff]   ;;  %v3365_v31 = vld [vmem:[%s4342_s0 + $0x18] sm:$0xff]  }
   0x4   :  { %3025 = vmatprep.subr.bf16.mxu1 %v3532_v0  ;;  %3013 = vmatprep.subr.bf16.mxu0 %v3359_v3  ;;  %v3599_v7 = vld [vmem:[%s4343_s3] ss:$0 sm:$0xff]  ;;  %v3636_v32 = vld [vmem:[%s4340_s1 + $0x10] sm:$0xff]   ;;  %v3643_v33 = vld [vmem:[%s4341_s2 + $0x18] sm:$0xff]  }
   0x5   :  { %3015 = vmatprep.mubr.msk.bf16.mxu0 %vm110_vm1, %v3361_v5  ;;  %250 = vrot.lane.b32.xlu0 %v3599_v7, %s3534_s7  ;;  %v3653_v34 = vld [vmem:[%s4340_s1 + $0x18] sm:$0xff]   ;;  %v3667_v36 = vld [vmem:[%s4343_s3 + $0x1] ss:$0 sm:$0xff] }
   0x7   :  { %3026 = vmatpush3.bf16.msra.mxu1 %v3586_v4  ;;  %3014 = vmatpush3.bf16.msra.mxu0 %v3359_v3 }
   0x8   :  { %3039 = vmatprep.subr.bf16.mxu0 %v3532_v0  ;;  %3031 = vmatprep.subr.bf16.mxu1 %v3532_v0 }
   0xa   :  { %3028 = vmatmul.mubr.bf16.vlgmr.msra.gmra.mrb[0].mxu1 %v3535_v8  ;;  %3016 = vmatmul.mubr.msk.bf16.vlgmr.msra.gmra.mrb[0].mxu0 %vm110_vm1, %v3362_v6 }
   0xb   :  { %3035 = vmatprep.mubr.msk.bf16.mxu1 %vm3533_vm0, %v3532_v0  ;;  %3040 = vmatpush3.bf16.msra.mxu0 %v3625_v29 }
   0xc   :  { %3019 = vmatprep.mubr.msk.bf16.mxu0 %vm110_vm1, %v3364_v30  ;;  %3041 = vmatprep.subr.bf16.mxu0 %v3532_v0 }
   0xd   :  { %3032 = vmatpush3.bf16.msra.mxu1 %v3636_v32 }
   0xe   :  { %3033 = vmatprep.subr.bf16.mxu1 %v3532_v0 }
   0xf   :  { %3042 = vmatpush3.bf16.msra.mxu0 %v3643_v33 }
  0x10   :  { %3055 = vmatprep.subr.bf16.mxu0 %v3532_v0 }
  0x11   :  { %3034 = vmatpush3.bf16.msra.mxu1 %v3653_v34 }
  0x12   :  { %3020 = vmatmul.mubr.msk.bf16.gmra.mrb[4].mxu0 %vm110_vm1, %v3365_v31  ;;  %3047 = vmatprep.subr.bf16.mxu1 %v3532_v0 }
  0x13   :  { %3043 = vmatprep.mubr.msk.bf16.mxu0 %vm3533_vm0, %v3532_v0 }
  0x1a   :  { %3044 = vmatmul.mubr.bf16.vlgmr.msra.gmra.mrb[8].mxu0 %v3535_v8 }
  0x1b   :  { %3059 = vmatprep.mubr.msk.bf16.mxu0 %vm3533_vm0, %v3532_v0 }
  0x77   :  { %v3610_v9 = vpop.permute.xlu0 %250 }
  0xdd   :  { %v237_v10 = vpop.f32.mrb[0].mxu1  ;;  %v3612_v11 = vpop.f32.mrb[0].mxu0 }
  0xde   :  { %v253_v12 = vadd.f32 %v3610_v9, %v237_v10  ;;  %v3029_v13 = vpop.f32.mrb[1].mxu1  ;;  %v157_v14 = vpop.f32.mrb[1].mxu0 }
  0xdf   :  { %v240_v15 = vpop.f32.mrb[2].mxu1  ;;  %v3615_v16 = vpop.f32.mrb[2].mxu0  ;;  %v158_v19 = vadd.f32 %v3599_v7, %v157_v14  ;;  %v3708_v13 = vld [vmem:[%s4340_s1 + $0x28] sm:$0xff]  }
  0xe0   :  { %255 = vrot.lane.b32.xlu0 %v253_v12, %s3536_s8  ;;  %v3030_v17 = vpop.f32.mrb[3].mxu1  ;;  %v3618_v18 = vpop.f32.mrb[3].mxu0  ;;  %v3701_v12 = vld [vmem:[%s4341_s2 + $0x20] sm:$0xff]   ;;  %v3713_v14 = vld [vmem:[%s4341_s2 + $0x28] sm:$0xff]  }
  0xe1   :  { %v243_v20 = vadd.f32 %v237_v10, %v158_v19  ;;  %v3696_v10 = vld [vmem:[%s4340_s1 + $0x20] sm:$0xff]   ;;  %3056 = vmatpush3.bf16.msra.mxu0 %v3701_v12 }
  0xe2   :  { %3057 = vmatprep.subr.bf16.mxu0 %v3532_v0 }
  0xe3   :  { %v2809_v21 = vmul.f32 -1.442695, %v243_v20 }
  0xe5   :  { %3373 = vpow2.f32 %v2809_v21  ;;  %v3676_v43 = vpop.f32.mrb[4].mxu0  ;;  %3058 = vmatpush3.bf16.msra.mxu0 %v3713_v14 }
  0xe6   :  { %v3678_v44 = vpop.f32.mrb[5].mxu0  ;;  %3071 = vmatprep.subr.bf16.mxu0 %v3532_v0 }
  0xe7   :  { %v3680_v45 = vpop.f32.mrb[6].mxu0 }
  0xe8   :  { %v3682_v46 = vpop.f32.mrb[7].mxu0  ;;  %3060 = vmatmul.mubr.bf16.vlgmr.msra.gmra.mrb[12].mxu0 %v3535_v8 }
  0xe9   :  { %3072 = vmatpush3.bf16.msra.mxu0 %v3636_v32  ;;  %3075 = vmatprep.mubr.msk.bf16.mxu0 %vm3533_vm0, %v3532_v0 }
  0xea   :  { %3073 = vmatprep.subr.bf16.mxu0 %v3532_v0 }
  0xed   :  { %v379_v47 = vpop.f32.mrb[8].mxu0  ;;  %3074 = vmatpush3.bf16.msra.mxu0 %v3653_v34 }
  0xee   :  { %v3045_v48 = vpop.f32.mrb[9].mxu0  ;;  %3087 = vmatprep.subr.bf16.mxu0 %v3532_v0 }
  0xef   :  { %v3374_v22 = vpop.eup %3373  ;;  %v382_v49 = vpop.f32.mrb[10].mxu0 }
  0xf0   :  { %v247_v23 = vadd.f32 1.0, %v3374_v22  ;;  %v3046_v50 = vpop.f32.mrb[11].mxu0 }
  0xf2   :  { %3375 = vrcp.f32 %v247_v23 }
  0xfc   :  { %v3376_v24 = vpop.eup %3375 }
  0xfd   :  { %v265_v37 = vsub.f32 1.0, %v3376_v24  ;;  %v271_v39 = vmul.f32 0.0, %v3376_v24 }
 0x152   :  { %v256_v25 = vpop.permute.xlu0 %255 }
 0x153   :  { %v258_v26 = vmul.f32 %v3376_v24, %v256_v25 }
 0x155   :  { %260 = vrot.lane.b32.xlu1 %v258_v26, %s3536_s8 }
 0x1bb   :  { %v3755_v24 = vpop.f32.mrb[12].mxu0 }
 0x1bc   :  { %v3061_v25 = vpop.f32.mrb[13].mxu0 }
 0x1bd   :  { %v524_v26 = vpop.f32.mrb[14].mxu0 }
 0x1c7   :  { %v261_v27 = vpop.permute.xlu1 %260 }
 0x1c8   :  { %v263_v28 = vadd.f32 %v261_v27, %v158_v19  ;;  %v3062_v27 = vpop.f32.mrb[15].mxu0 }
 0x1ca   :  { %3377 = vtanh.f32 %v263_v28 }
 0x1d4   :  { %v3378_v35 = vpop.eup %3377 }
 0x1d5   :  { %267 = vrot.lane.b32.xlu1 %v3378_v35, %s3534_s7 }
 0x1d9   :  { %392 = vrot.lane.b32.xlu1 %v3667_v36, %s3534_s7 }
 0x247   :  { %v268_v38 = vpop.permute.xlu1 %267 }
 0x248   :  { %v270_v40 = vmul.f32 %v268_v38, %v265_v37 }
 0x24a   :  { %v3671_v41 = vadd.f32 %v271_v39, %v270_v40 }
 0x24b   :  { %v3684_v51 = vpop.permute.xlu1 %392 }
 0x24c   :  { %v273_v42 = vpack.c.bf16 %v3671_v41, %v3671_v41  ;;  %v395_v52 = vadd.f32 %v3684_v51, %v379_v47 }
 0x24e   :  { %276 = vrot.lane.b32.xlu0 %v273_v42, %s3534_s7 }
 0x252   :  { %397 = vrot.lane.b32.xlu0 %v395_v52, %s3536_s8  ;;  %v161_v52 = vadd.f32 %v3599_v7, %v3618_v18 }
 0x2c0   :  { %v277_v53 = vpop.permute.xlu0 %276 }
 0x2c1   :  { %3036 = vmatmul.mubr.msk.bf16.vlgmr.msra.gmra.mrb[4].mxu1 %vm110_vm1, %v277_v53 }
 0x2c2   :  { %3051 = vmatprep.mubr.msk.bf16.mxu1 %vm3533_vm0, %v3532_v0  ;;  %3048 = vmatpush3.bf16.msra.mxu1 %v3696_v10 }
 0x2c3   :  { %3049 = vmatprep.subr.bf16.mxu1 %v3532_v0 }
 0x2c4   :  { %v398_v63 = vpop.permute.xlu0 %397 }
 0x2c6   :  { %3050 = vmatpush3.bf16.msra.mxu1 %v3708_v13 }
 0x2c7   :  { %3063 = vmatprep.subr.bf16.mxu1 %v3532_v0 }
 0x394   :  { %v327_v54 = vpop.f32.mrb[4].mxu1 }
 0x395   :  { %v328_v55 = vadd.f32 %v3667_v36, %v327_v54  ;;  %v3037_v56 = vpop.f32.mrb[5].mxu1 }
 0x396   :  { %v330_v57 = vpop.f32.mrb[6].mxu1 }
 0x397   :  { %v385_v58 = vadd.f32 %v379_v47, %v328_v55  ;;  %v3038_v59 = vpop.f32.mrb[7].mxu1 }
 0x399   :  { %v2815_v60 = vmul.f32 -1.442695, %v385_v58 }
 0x39b   :  { %3379 = vpow2.f32 %v2815_v60 }
 0x3a5   :  { %v3380_v61 = vpop.eup %3379 }
 0x3a6   :  { %v389_v62 = vadd.f32 1.0, %v3380_v61 }
 0x3a8   :  { %3381 = vrcp.f32 %v389_v62 }
 0x3b2   :  { %v3382_v1 = vpop.eup %3381 }
 0x3b3   :  { %v400_v3 = vmul.f32 %v3382_v1, %v398_v63  ;;  %v407_v17 = vsub.f32 1.0, %v3382_v1  ;;  %v413_v20 = vmul.f32 0.0, %v3382_v1 }
 0x3b5   :  { %402 = vrot.lane.b32.xlu1 %v400_v3, %s3536_s8 }
 0x427   :  { %v403_v5 = vpop.permute.xlu1 %402 }
 0x428   :  { %v405_v6 = vadd.f32 %v403_v5, %v328_v55 }
 0x42a   :  { %3383 = vtanh.f32 %v405_v6 }
 0x434   :  { %v3384_v15 = vpop.eup %3383 }
 0x435   :  { %409 = vrot.lane.b32.xlu0 %v3384_v15, %s3534_s7 }
 0x4a7   :  { %v410_v19 = vpop.permute.xlu0 %409 }
 0x4a8   :  { %v412_v21 = vmul.f32 %v410_v19, %v407_v17 }
 0x4aa   :  { %v3729_v22 = vadd.f32 %v413_v20, %v412_v21 }
 0x4ac   :  { %v415_v8 = vpack.c.bf16 %v3729_v22, %v3729_v22 }
 0x4ae   :  { %418 = vrot.lane.b32.xlu1 %v415_v8, %s3534_s7 }
 0x520   :  { %v419_v23 = vpop.permute.xlu1 %418 }
 0x521   :  { %3052 = vmatmul.mubr.msk.bf16.vlgmr.msra.gmra.mrb[8].mxu1 %vm110_vm1, %v419_v23 }
 0x522   :  { %3064 = vmatpush3.bf16.msra.mxu1 %v3577_v2  ;;  %3067 = vmatprep.mubr.msk.bf16.mxu1 %vm3533_vm0, %v3532_v0 }
 0x523   :  { %3065 = vmatprep.subr.bf16.mxu1 %v3532_v0 }
 0x526   :  { %3066 = vmatpush3.bf16.msra.mxu1 %v3586_v4 }
 0x527   :  { %3079 = vmatprep.subr.bf16.mxu1 %v3532_v0 }
 0x529   :  { %3068 = vmatmul.mubr.msk.bf16.vlgmr.msra.gmra.mrb[12].mxu1 %vm110_vm1, %v277_v53 }
 0x52a   :  { %3080 = vmatpush3.bf16.msra.mxu1 %v3625_v29  ;;  %3083 = vmatprep.mubr.msk.bf16.mxu1 %vm3533_vm0, %v3532_v0 }
 0x52b   :  { %3081 = vmatprep.subr.bf16.mxu1 %v3532_v0 }
 0x52e   :  { %3082 = vmatpush3.bf16.msra.mxu1 %v3643_v33 }
 0x52f   :  { %3095 = vmatprep.subr.bf16.mxu1 %v3532_v0 }
 0x531   :  { %3084 = vmatmul.mubr.msk.bf16.vlgmr.msra.gmra.mrb[16].mxu1 %vm110_vm1, %v419_v23 }
 0x532   :  { %3096 = vmatpush3.bf16.msra.mxu1 %v3701_v12  ;;  %3099 = vmatprep.mubr.msk.bf16.mxu1 %vm3533_vm0, %v3532_v0 }
 0x533   :  { %3097 = vmatprep.subr.bf16.mxu1 %v3532_v0 }
 0x536   :  { %3098 = vmatpush3.bf16.msra.mxu1 %v3713_v14 }
 0x537   :  { %3111 = vmatprep.subr.bf16.mxu1 %v3532_v0 }
 0x5f4   :  { %v3757_v28 = vpop.f32.mrb[8].mxu1 }
 0x5f5   :  { %v3053_v30 = vpop.f32.mrb[9].mxu1 }
 0x5f6   :  { %v472_v31 = vpop.f32.mrb[10].mxu1 }
 0x5f7   :  { %v3054_v35 = vpop.f32.mrb[11].mxu1 }
 0x5fc   :  { %v591_v37 = vpop.f32.mrb[12].mxu1 }
 0x5fd   :  { %v604_v38 = vadd.f32 %v591_v37, %v3610_v9  ;;  %v3069_v39 = vpop.f32.mrb[13].mxu1  ;;  %v597_v53 = vadd.f32 %v591_v37, %v161_v52 }
 0x5fe   :  { %v594_v40 = vpop.f32.mrb[14].mxu1 }
 0x5ff   :  { %606 = vrot.lane.b32.xlu0 %v604_v38, %s3536_s8  ;;  %v3070_v42 = vpop.f32.mrb[15].mxu1  ;;  %v2823_v54 = vmul.f32 -1.442695, %v597_v53  ;;  %v3786_v40 = vld [vmem:[%s4343_s3 + $0x2] ss:$0 sm:$0xff] }
 0x601   :  { %3385 = vpow2.f32 %v2823_v54 }
 0x604   :  { %v705_v47 = vpop.f32.mrb[16].mxu1 }
 0x605   :  { %v3085_v48 = vpop.f32.mrb[17].mxu1  ;;  %v718_v63 = vadd.f32 %v705_v47, %v3684_v51 }
 0x606   :  { %v708_v49 = vpop.f32.mrb[18].mxu1 }
 0x607   :  { %v3086_v50 = vpop.f32.mrb[19].mxu1 }
 0x60b   :  { %v3386_v55 = vpop.eup %3385 }
 0x60c   :  { %v601_v56 = vadd.f32 1.0, %v3386_v55  ;;  %v470_v55 = vadd.f32 %v3786_v40, %v3757_v28 }
 0x60e   :  { %3387 = vrcp.f32 %v601_v56 }
 0x618   :  { %v3388_v57 = vpop.eup %3387 }
 0x619   :  { %v616_v18 = vsub.f32 1.0, %v3388_v57  ;;  %v622_v3 = vmul.f32 %v3388_v57, %v3671_v41 }
 0x671   :  { %v607_v58 = vpop.permute.xlu0 %606 }
 0x672   :  { %v609_v59 = vmul.f32 %v3388_v57, %v607_v58 }
 0x674   :  { %611 = vrot.lane.b32.xlu1 %v609_v59, %s3536_s8 }
 0x6e6   :  { %v612_v60 = vpop.permute.xlu1 %611 }
 0x6e7   :  { %v614_v61 = vadd.f32 %v612_v60, %v161_v52 }
 0x6e9   :  { %3389 = vtanh.f32 %v614_v61 }
 0x6f3   :  { %v3390_v62 = vpop.eup %3389 }
 0x6f4   :  { %618 = vrot.lane.b32.xlu0 %v3390_v62, %s3534_s7 }
 0x6f8   :  { %720 = vrot.lane.b32.xlu0 %v718_v63, %s3536_s8 }
 0x766   :  { %v619_v1 = vpop.permute.xlu0 %618 }
 0x767   :  { %v621_v5 = vmul.f32 %v619_v1, %v616_v18 }
 0x769   :  { %v3768_v6 = vadd.f32 %v622_v3, %v621_v5 }
 0x76a   :  { %v721_v31 = vpop.permute.xlu0 %720 }
 0x76b   :  { %v624_v15 = vpack.c.bf16 %v3768_v6, %v3768_v6 }
 0x76d   :  { %626 = vrot.lane.b32.xlu1 %v624_v15, %s3534_s7 }
 0x7df   :  { %v627_v17 = vpop.permute.xlu1 %626 }
 0x7e0   :  { %3076 = vmatmul.mubr.msk.bf16.vlgmr.msra.gmra.mrb[16].mxu0 %vm110_vm1, %v627_v17 }
 0x7e1   :  { %3088 = vmatpush3.bf16.msra.mxu0 %v3696_v10  ;;  %3091 = vmatprep.mubr.msk.bf16.mxu0 %vm3533_vm0, %v3532_v0 }
 0x7e2   :  { %3089 = vmatprep.subr.bf16.mxu0 %v3532_v0 }
 0x7e5   :  { %3090 = vmatpush3.bf16.msra.mxu0 %v3708_v13 }
 0x7e6   :  { %3103 = vmatprep.subr.bf16.mxu0 %v3532_v0 }
 0x8b3   :  { %v665_v41 = vpop.f32.mrb[16].mxu0 }
 0x8b4   :  { %v666_v19 = vadd.f32 %v3667_v36, %v665_v41  ;;  %v3077_v20 = vpop.f32.mrb[17].mxu0 }
 0x8b5   :  { %v668_v21 = vpop.f32.mrb[18].mxu0 }
 0x8b6   :  { %v711_v8 = vadd.f32 %v705_v47, %v666_v19  ;;  %v3078_v23 = vpop.f32.mrb[19].mxu0 }
 0x8b8   :  { %v2826_v25 = vmul.f32 -1.442695, %v711_v8 }
 0x8ba   :  { %3391 = vpow2.f32 %v2826_v25 }
 0x8c4   :  { %v3392_v26 = vpop.eup %3391 }
 0x8c5   :  { %v715_v27 = vadd.f32 1.0, %v3392_v26 }
 0x8c7   :  { %3393 = vrcp.f32 %v715_v27 }
 0x8d1   :  { %v3394_v30 = vpop.eup %3393 }
 0x8d2   :  { %v723_v35 = vmul.f32 %v3394_v30, %v721_v31  ;;  %v730_v42 = vsub.f32 1.0, %v3394_v30  ;;  %v736_v48 = vmul.f32 %v3394_v30, %v3729_v22  ;;  %v527_v22 = vadd.f32 %v3755_v24, %v470_v55 }
 0x8d4   :  { %725 = vrot.lane.b32.xlu1 %v723_v35, %s3536_s8  ;;  %v2821_v56 = vmul.f32 -1.442695, %v527_v22 }
 0x946   :  { %v726_v37 = vpop.permute.xlu1 %725 }
 0x947   :  { %v728_v38 = vadd.f32 %v726_v37, %v666_v19 }
 0x949   :  { %3395 = vtanh.f32 %v728_v38 }
 0x94a   :  { %3397 = vpow2.f32 %v2821_v56 }
 0x953   :  { %v3396_v39 = vpop.eup %3395 }
 0x954   :  { %732 = vrot.lane.b32.xlu0 %v3396_v39, %s3534_s7  ;;  %v3398_v57 = vpop.eup %3397  ;;  %v166_v39 = vadd.f32 %v3612_v11, %v3599_v7 }
 0x955   :  { %v531_v58 = vadd.f32 1.0, %v3398_v57 }
 0x957   :  { %3399 = vrcp.f32 %v531_v58 }
 0x958   :  { %534 = vrot.lane.b32.xlu0 %v3786_v40, %s3534_s7 }
 0x961   :  { %v3400_v60 = vpop.eup %3399 }
 0x962   :  { %v549_v26 = vsub.f32 1.0, %v3400_v60  ;;  %v555_v30 = vmul.f32 0.0, %v3400_v60 }
 0x9c6   :  { %v733_v47 = vpop.permute.xlu0 %732 }
 0x9c7   :  { %v735_v49 = vmul.f32 %v733_v47, %v730_v42 }
 0x9c9   :  { %v3791_v50 = vadd.f32 %v736_v48, %v735_v49 }
 0x9ca   :  { %v3795_v53 = vpop.permute.xlu0 %534 }
 0x9cb   :  { %v738_v52 = vpack.c.bf16 %v3791_v50, %v3791_v50  ;;  %v537_v54 = vadd.f32 %v3795_v53, %v3755_v24 }
 0x9cd   :  { %740 = vrot.lane.b32.xlu1 %v738_v52, %s3534_s7 }
 0x9d1   :  { %539 = vrot.lane.b32.xlu1 %v537_v54, %s3536_s8 }
 0xa3f   :  { %v741_v59 = vpop.permute.xlu1 %740 }
 0xa40   :  { %3092 = vmatmul.mubr.msk.bf16.vlgmr.msra.gmra.mrb[20].mxu0 %vm110_vm1, %v741_v59 }
 0xa41   :  { %3104 = vmatpush3.bf16.msra.mxu0 %v3577_v2  ;;  %3107 = vmatprep.mubr.msk.bf16.mxu0 %vm3533_vm0, %v3532_v0 }
 0xa42   :  { %3105 = vmatprep.subr.bf16.mxu0 %v3532_v0 }
 0xa43   :  { %v540_v61 = vpop.permute.xlu1 %539 }
 0xa44   :  { %v542_v28 = vmul.f32 %v3400_v60, %v540_v61 }
 0xa45   :  { %3106 = vmatpush3.bf16.msra.mxu0 %v3586_v4 }
 0xa46   :  { %544 = vrot.lane.b32.xlu1 %v542_v28, %s3536_s8  ;;  %3119 = vmatprep.subr.bf16.mxu0 %v3532_v0 }
 0xa48   :  { %3108 = vmatmul.mubr.msk.bf16.vlgmr.msra.gmra.mrb[24].mxu0 %vm110_vm1, %v627_v17 }
 0xa49   :  { %3120 = vmatpush3.bf16.msra.mxu0 %v3625_v29  ;;  %3123 = vmatprep.mubr.msk.bf16.mxu0 %vm3533_vm0, %v3532_v0 }
 0xa4a   :  { %3121 = vmatprep.subr.bf16.mxu0 %v3532_v0 }
 0xa4d   :  { %3122 = vmatpush3.bf16.msra.mxu0 %v3643_v33 }
 0xa4e   :  { %3135 = vmatprep.subr.bf16.mxu0 %v3532_v0 }
 0xa50   :  { %3124 = vmatmul.mubr.msk.bf16.vlgmr.msra.gmra.mrb[28].mxu0 %vm110_vm1, %v741_v59 }
 0xa51   :  { %3136 = vmatpush3.bf16.msra.mxu0 %v3701_v12  ;;  %3139 = vmatprep.mubr.msk.bf16.mxu0 %vm3533_vm0, %v3532_v0 }
 0xa52   :  { %3137 = vmatprep.subr.bf16.mxu0 %v3532_v0 }
 0xa55   :  { %3138 = vmatpush3.bf16.msra.mxu0 %v3713_v14 }
 0xa56   :  { %3151 = vmatprep.subr.bf16.mxu0 %v3532_v0 }
 0xab8   :  { %v545_v24 = vpop.permute.xlu1 %544 }
 0xab9   :  { %v547_v62 = vadd.f32 %v545_v24, %v470_v55 }
 0xabb   :  { %3401 = vtanh.f32 %v547_v62 }
 0xac5   :  { %v3402_v63 = vpop.eup %3401 }
 0xac6   :  { %551 = vrot.lane.b32.xlu1 %v3402_v63, %s3534_s7 }
 0xb13   :  { %v3827_v18 = vpop.f32.mrb[20].mxu0 }
 0xb14   :  { %v3093_v1 = vpop.f32.mrb[21].mxu0 }
 0xb15   :  { %v782_v3 = vpop.f32.mrb[22].mxu0 }
 0xb16   :  { %v3094_v5 = vpop.f32.mrb[23].mxu0 }
 0xb1b   :  { %v893_v15 = vpop.f32.mrb[24].mxu0 }
 0xb1c   :  { %v906_v17 = vadd.f32 %v893_v15, %v3610_v9  ;;  %v3109_v41 = vpop.f32.mrb[25].mxu0  ;;  %v899_v42 = vadd.f32 %v893_v15, %v166_v39 }
 0xb1d   :  { %v896_v19 = vpop.f32.mrb[26].mxu0 }
 0xb1e   :  { %908 = vrot.lane.b32.xlu0 %v906_v17, %s3536_s8  ;;  %v3110_v20 = vpop.f32.mrb[27].mxu0  ;;  %v2831_v47 = vmul.f32 -1.442695, %v899_v42 }
 0xb20   :  { %3403 = vpow2.f32 %v2831_v47 }
 0xb23   :  { %v1007_v21 = vpop.f32.mrb[28].mxu0 }
 0xb24   :  { %v3125_v8 = vpop.f32.mrb[29].mxu0  ;;  %v1020_v38 = vadd.f32 %v1007_v21, %v3684_v51 }
 0xb25   :  { %v1010_v23 = vpop.f32.mrb[30].mxu0 }
 0xb26   :  { %v3126_v25 = vpop.f32.mrb[31].mxu0 }
 0xb2a   :  { %v3404_v48 = vpop.eup %3403 }
 0xb2b   :  { %v903_v49 = vadd.f32 1.0, %v3404_v48 }
 0xb2d   :  { %3405 = vrcp.f32 %v903_v49 }
 0xb37   :  { %v3406_v52 = vpop.eup %3405 }
 0xb38   :  { %v552_v27 = vpop.permute.xlu1 %551  ;;  %v918_v58 = vsub.f32 1.0, %v3406_v52  ;;  %v924_v61 = vmul.f32 %v3406_v52, %v3768_v6 }
 0xb39   :  { %v554_v31 = vmul.f32 %v552_v27, %v549_v26 }
 0xb3b   :  { %v3831_v35 = vadd.f32 %v555_v30, %v554_v31 }
 0xb3d   :  { %v785_v37 = vpack.c.bf16 %v3831_v35, %v3831_v35 }
 0xb3f   :  { %787 = vrot.lane.b32.xlu1 %v785_v37, %s3534_s7 }
 0xb43   :  { %1022 = vrot.lane.b32.xlu1 %v1020_v38, %s3536_s8 }
 0xb90   :  { %v909_v54 = vpop.permute.xlu0 %908 }
 0xb91   :  { %v911_v55 = vmul.f32 %v3406_v52, %v909_v54 }
 0xb93   :  { %913 = vrot.lane.b32.xlu0 %v911_v55, %s3536_s8 }
 0xbb1   :  { %v788_v22 = vpop.permute.xlu1 %787 }
 0xbb2   :  { %3100 = vmatmul.mubr.msk.bf16.vlgmr.msra.gmra.mrb[20].mxu1 %vm110_vm1, %v788_v22 }
 0xbb3   :  { %3112 = vmatpush3.bf16.msra.mxu1 %v3636_v32  ;;  %3115 = vmatprep.mubr.msk.bf16.mxu1 %vm3533_vm0, %v3532_v0 }
 0xbb4   :  { %3113 = vmatprep.subr.bf16.mxu1 %v3532_v0 }
 0xbb5   :  { %v1023_v27 = vpop.permute.xlu1 %1022 }
 0xbb7   :  { %3114 = vmatpush3.bf16.msra.mxu1 %v3653_v34 }
 0xbb8   :  { %3127 = vmatprep.subr.bf16.mxu1 %v3532_v0 }
 0xc05   :  { %v914_v11 = vpop.permute.xlu0 %913 }
 0xc06   :  { %v916_v56 = vadd.f32 %v914_v11, %v166_v39 }
 0xc08   :  { %3407 = vtanh.f32 %v916_v56 }
 0xc12   :  { %v3408_v57 = vpop.eup %3407 }
 0xc13   :  { %920 = vrot.lane.b32.xlu0 %v3408_v57, %s3534_s7 }
 0xc85   :  { %v921_v59 = vpop.permute.xlu0 %920  ;;  %v826_v60 = vpop.f32.mrb[20].mxu1 }
 0xc86   :  { %v923_v28 = vmul.f32 %v921_v59, %v918_v58  ;;  %v3101_v24 = vpop.f32.mrb[21].mxu1  ;;  %v839_v39 = vadd.f32 %v826_v60, %v3795_v53 }
 0xc87   :  { %v829_v62 = vpop.f32.mrb[22].mxu1 }
 0xc88   :  { %v3850_v63 = vadd.f32 %v924_v61, %v923_v28  ;;  %v3102_v1 = vpop.f32.mrb[23].mxu1 }
 0xc8a   :  { %v926_v3 = vpack.c.bf16 %v3850_v63, %v3850_v63 }
 0xc8c   :  { %928 = vrot.lane.b32.xlu0 %v926_v3, %s3534_s7 }
 0xcfe   :  { %v929_v5 = vpop.permute.xlu0 %928 }
 0xcff   :  { %3116 = vmatmul.mubr.msk.bf16.vlgmr.msra.gmra.mrb[24].mxu1 %vm110_vm1, %v929_v5 }
 0xd00   :  { %3128 = vmatpush3.bf16.msra.mxu1 %v3696_v10  ;;  %3131 = vmatprep.mubr.msk.bf16.mxu1 %vm3533_vm0, %v3532_v0 }
 0xd01   :  { %3129 = vmatprep.subr.bf16.mxu1 %v3532_v0 }
 0xd04   :  { %3130 = vmatpush3.bf16.msra.mxu1 %v3708_v13 }
 0xd05   :  { %3143 = vmatprep.subr.bf16.mxu1 %v3532_v0 }
 0xdd2   :  { %v967_v6 = vpop.f32.mrb[24].mxu1 }
 0xdd3   :  { %v968_v15 = vadd.f32 %v3667_v36, %v967_v6  ;;  %v3117_v17 = vpop.f32.mrb[25].mxu1 }
 0xdd4   :  { %v970_v41 = vpop.f32.mrb[26].mxu1 }
 0xdd5   :  { %v1013_v19 = vadd.f32 %v1007_v21, %v968_v15  ;;  %v3118_v20 = vpop.f32.mrb[27].mxu1  ;;  %v780_v21 = vadd.f32 %v3786_v40, %v3827_v18 }
 0xdd7   :  { %v2834_v8 = vmul.f32 -1.442695, %v1013_v19  ;;  %v832_v42 = vadd.f32 %v826_v60, %v780_v21 }
 0xdd9   :  { %3409 = vpow2.f32 %v2834_v8  ;;  %v2829_v47 = vmul.f32 -1.442695, %v832_v42 }
 0xde3   :  { %v3410_v23 = vpop.eup %3409 }
 0xde4   :  { %v1017_v25 = vadd.f32 1.0, %v3410_v23 }
 0xde6   :  { %3411 = vrcp.f32 %v1017_v25 }
 0xdf0   :  { %v3412_v26 = vpop.eup %3411 }
 0xdf1   :  { %v1025_v30 = vmul.f32 %v3412_v26, %v1023_v27  ;;  %v1032_v52 = vsub.f32 1.0, %v3412_v26  ;;  %v1038_v55 = vmul.f32 %v3412_v26, %v3791_v50 }
 0xdf3   :  { %1027 = vrot.lane.b32.xlu0 %v1025_v30, %s3536_s8 }
 0xe65   :  { %v1028_v31 = vpop.permute.xlu0 %1027 }
 0xe66   :  { %v1030_v37 = vadd.f32 %v1028_v31, %v968_v15  ;;  %v169_v31 = vadd.f32 %v3615_v16, %v3599_v7 }
 0xe68   :  { %3413 = vtanh.f32 %v1030_v37 }
 0xe69   :  { %3415 = vpow2.f32 %v2829_v47 }
 0xe72   :  { %v3414_v38 = vpop.eup %3413 }
 0xe73   :  { %1034 = vrot.lane.b32.xlu1 %v3414_v38, %s3534_s7  ;;  %v3416_v48 = vpop.eup %3415 }
 0xe74   :  { %v836_v49 = vadd.f32 1.0, %v3416_v48 }
 0xe76   :  { %3417 = vrcp.f32 %v836_v49 }
 0xe77   :  { %841 = vrot.lane.b32.xlu1 %v839_v39, %s3536_s8 }
 0xe80   :  { %v3418_v56 = vpop.eup %3417 }
 0xe81   :  { %v857_v28 = vmul.f32 %v3418_v56, %v3831_v35 }
 0xee5   :  { %v1035_v54 = vpop.permute.xlu1 %1034 }
 0xee6   :  { %v1037_v22 = vmul.f32 %v1035_v54, %v1032_v52 }
 0xee8   :  { %v3870_v11 = vadd.f32 %v1038_v55, %v1037_v22 }
 0xee9   :  { %v842_v57 = vpop.permute.xlu1 %841 }
 0xeea   :  { %v844_v58 = vmul.f32 %v3418_v56, %v842_v57  ;;  %v1040_v59 = vpack.c.bf16 %v3870_v11, %v3870_v11 }
 0xeec   :  { %1042 = vrot.lane.b32.xlu0 %v1040_v59, %s3534_s7  ;;  %846 = vrot.lane.b32.xlu1 %v844_v58, %s3536_s8 }
 0xf5e   :  { %v1043_v18 = vpop.permute.xlu0 %1042  ;;  %v847_v60 = vpop.permute.xlu1 %846 }
 0xf5f   :  { %v849_v61 = vadd.f32 %v847_v60, %v780_v21  ;;  %3132 = vmatmul.mubr.msk.bf16.vlgmr.msra.gmra.mrb[28].mxu1 %vm110_vm1, %v1043_v18 }
 0xf60   :  { %3144 = vmatpush3.bf16.msra.mxu1 %v3577_v2  ;;  %3147 = vmatprep.mubr.msk.bf16.mxu1 %vm3533_vm0, %v3532_v0 }
 0xf61   :  { %3419 = vtanh.f32 %v849_v61  ;;  %3145 = vmatprep.subr.bf16.mxu1 %v3532_v0 }
 0xf64   :  { %3146 = vmatpush3.bf16.msra.mxu1 %v3586_v4  ;;  %v851_v4 = vsub.f32 1.0, %v3418_v56 }
 0xf65   :  { %3159 = vmatprep.subr.bf16.mxu1 %v3532_v0 }
 0xf67   :  { %3148 = vmatmul.mubr.msk.bf16.vlgmr.msra.gmra.mrb[32].mxu1 %vm110_vm1, %v929_v5 }
 0xf68   :  { %3160 = vmatpush3.bf16.msra.mxu1 %v3625_v29  ;;  %3163 = vmatprep.mubr.msk.bf16.mxu1 %vm3533_vm0, %v3532_v0 }
 0xf69   :  { %3161 = vmatprep.subr.bf16.mxu1 %v3532_v0 }
 0xf6b   :  { %v3420_v2 = vpop.eup %3419 }
 0xf6c   :  { %3162 = vmatpush3.bf16.msra.mxu1 %v3643_v33  ;;  %853 = vrot.lane.b32.xlu1 %v3420_v2, %s3534_s7 }
 0xf6d   :  { %3175 = vmatprep.subr.bf16.mxu1 %v3532_v0 }
 0xf6f   :  { %3164 = vmatmul.mubr.msk.bf16.vlgmr.msra.gmra.mrb[36].mxu1 %vm110_vm1, %v1043_v18 }
 0xf70   :  { %3176 = vmatpush3.bf16.msra.mxu1 %v3701_v12  ;;  %3179 = vmatprep.mubr.msk.bf16.mxu1 %vm3533_vm0, %v3532_v0 }
 0xf71   :  { %3177 = vmatprep.subr.bf16.mxu1 %v3532_v0 }
 0xf74   :  { %3178 = vmatpush3.bf16.msra.mxu1 %v3713_v14 }
 0xf75   :  { %3191 = vmatprep.subr.bf16.mxu1 %v3532_v0 }
 0xfde   :  { %v854_v50 = vpop.permute.xlu1 %853 }
 0xfdf   :  { %v856_v24 = vmul.f32 %v854_v50, %v851_v4 }
 0xfe1   :  { %v3899_v62 = vadd.f32 %v857_v28, %v856_v24 }
 0xfe3   :  { %v1087_v1 = vpack.c.bf16 %v3899_v62, %v3899_v62 }
 0xfe5   :  { %1089 = vrot.lane.b32.xlu1 %v1087_v1, %s3534_s7 }
0x1032   :  { %v3904_v3 = vpop.f32.mrb[28].mxu1 }
0x1033   :  { %v3133_v5 = vpop.f32.mrb[29].mxu1 }
0x1034   :  { %v1084_v6 = vpop.f32.mrb[30].mxu1 }
0x1035   :  { %v3134_v15 = vpop.f32.mrb[31].mxu1 }
0x103a   :  { %v1195_v17 = vpop.f32.mrb[32].mxu1 }
0x103b   :  { %v1208_v41 = vadd.f32 %v1195_v17, %v3610_v9  ;;  %v3149_v19 = vpop.f32.mrb[33].mxu1  ;;  %v1201_v37 = vadd.f32 %v1195_v17, %v169_v31 }
0x103c   :  { %v1198_v20 = vpop.f32.mrb[34].mxu1 }
0x103d   :  { %1210 = vrot.lane.b32.xlu0 %v1208_v41, %s3536_s8  ;;  %v3150_v35 = vpop.f32.mrb[35].mxu1  ;;  %v2839_v38 = vmul.f32 -1.442695, %v1201_v37 }
0x103f   :  { %3421 = vpow2.f32 %v2839_v38 }
0x1042   :  { %v1309_v8 = vpop.f32.mrb[36].mxu1 }
0x1043   :  { %v1322_v23 = vadd.f32 %v1309_v8, %v3684_v51  ;;  %v3165_v25 = vpop.f32.mrb[37].mxu1 }
0x1044   :  { %v1312_v26 = vpop.f32.mrb[38].mxu1 }
0x1045   :  { %1324 = vrot.lane.b32.xlu1 %v1322_v23, %s3536_s8  ;;  %v3166_v27 = vpop.f32.mrb[39].mxu1 }
0x1049   :  { %v3422_v39 = vpop.eup %3421 }
0x104a   :  { %v1205_v21 = vadd.f32 1.0, %v3422_v39 }
0x104c   :  { %3423 = vrcp.f32 %v1205_v21 }
0x1056   :  { %v3424_v42 = vpop.eup %3423 }
0x1057   :  { %v1090_v30 = vpop.permute.xlu1 %1089  ;;  %v1220_v7 = vsub.f32 1.0, %v3424_v42  ;;  %v1226_v58 = vmul.f32 %v3424_v42, %v3850_v63 }
0x1058   :  { %3140 = vmatmul.mubr.msk.bf16.vlgmr.msra.gmra.mrb[32].mxu0 %vm110_vm1, %v1090_v30 }
0x1059   :  { %3152 = vmatpush3.bf16.msra.mxu0 %v3636_v32  ;;  %3155 = vmatprep.mubr.msk.bf16.mxu0 %vm3533_vm0, %v3532_v0 }
0x105a   :  { %3153 = vmatprep.subr.bf16.mxu0 %v3532_v0 }
0x105d   :  { %3154 = vmatpush3.bf16.msra.mxu0 %v3653_v34 }
0x105e   :  { %3167 = vmatprep.subr.bf16.mxu0 %v3532_v0 }
0x10af   :  { %v1211_v47 = vpop.permute.xlu0 %1210 }
0x10b0   :  { %v1213_v48 = vmul.f32 %v3424_v42, %v1211_v47 }
0x10b2   :  { %1215 = vrot.lane.b32.xlu0 %v1213_v48, %s3536_s8 }
0x10b7   :  { %v1325_v17 = vpop.permute.xlu1 %1324 }
0x1124   :  { %v1216_v49 = vpop.permute.xlu0 %1215 }
0x1125   :  { %v1218_v52 = vadd.f32 %v1216_v49, %v169_v31 }
0x1127   :  { %3425 = vtanh.f32 %v1218_v52 }
0x112b   :  { %v1128_v54 = vpop.f32.mrb[32].mxu0 }
0x112c   :  { %v3141_v55 = vpop.f32.mrb[33].mxu0 }
0x112d   :  { %v1131_v22 = vpop.f32.mrb[34].mxu0 }
0x112e   :  { %v3142_v56 = vpop.f32.mrb[35].mxu0 }
0x1131   :  { %v3426_v57 = vpop.eup %3425 }
0x1132   :  { %1222 = vrot.lane.b32.xlu0 %v3426_v57, %s3534_s7 }
0x11a4   :  { %v1223_v16 = vpop.permute.xlu0 %1222 }
0x11a5   :  { %v1225_v59 = vmul.f32 %v1223_v16, %v1220_v7 }
0x11a7   :  { %v3922_v18 = vadd.f32 %v1226_v58, %v1225_v59 }
0x11a9   :  { %v1228_v60 = vpack.c.bf16 %v3922_v18, %v3922_v18 }
0x11ab   :  { %1230 = vrot.lane.b32.xlu0 %v1228_v60, %s3534_s7 }
0x121d   :  { %v1231_v61 = vpop.permute.xlu0 %1230 }
0x121e   :  { %3156 = vmatmul.mubr.msk.bf16.vlgmr.msra.gmra.mrb[36].mxu0 %vm110_vm1, %v1231_v61 }
0x121f   :  { %3168 = vmatpush3.bf16.msra.mxu0 %v3696_v10  ;;  %3171 = vmatprep.mubr.msk.bf16.mxu0 %vm3533_vm0, %v3532_v0 }
0x1220   :  { %3169 = vmatprep.subr.bf16.mxu0 %v3532_v0 }
0x1223   :  { %3170 = vmatpush3.bf16.msra.mxu0 %v3708_v13 }
0x1224   :  { %3183 = vmatprep.subr.bf16.mxu0 %v3532_v0 }
0x12f1   :  { %v1269_v63 = vpop.f32.mrb[36].mxu0 }
0x12f2   :  { %v1270_v2 = vadd.f32 %v3667_v36, %v1269_v63  ;;  %v3157_v4 = vpop.f32.mrb[37].mxu0  ;;  %v1141_v36 = vadd.f32 %v1128_v54, %v3795_v53 }
0x12f3   :  { %v1272_v50 = vpop.f32.mrb[38].mxu0 }
0x12f4   :  { %v1315_v28 = vadd.f32 %v1309_v8, %v1270_v2  ;;  %v3158_v24 = vpop.f32.mrb[39].mxu0  ;;  %v1082_v8 = vadd.f32 %v3786_v40, %v3904_v3 }
0x12f6   :  { %v2842_v1 = vmul.f32 -1.442695, %v1315_v28  ;;  %v1134_v23 = vadd.f32 %v1128_v54, %v1082_v8  ;;  %v3961_v54 = vld [vmem:[%s4341_s2 + $0x8] sm:$0xff]  }
0x12f8   :  { %3427 = vpow2.f32 %v2842_v1  ;;  %v2837_v25 = vmul.f32 -1.442695, %v1134_v23 }
0x1302   :  { %v3428_v5 = vpop.eup %3427 }
0x1303   :  { %v1319_v6 = vadd.f32 1.0, %v3428_v5  ;;  %v4002_v5 = vld [vmem:[%s4343_s3] ss:$0 sm:$0xff] }
0x1305   :  { %3429 = vrcp.f32 %v1319_v6  ;;  %v174_v6 = vadd.f32 %v4002_v5, %v3678_v44 }
0x130f   :  { %v3430_v15 = vpop.eup %3429 }
0x1310   :  { %v1327_v41 = vmul.f32 %v3430_v15, %v1325_v17  ;;  %v1334_v30 = vsub.f32 1.0, %v3430_v15  ;;  %v1340_v37 = vmul.f32 %v3430_v15, %v3870_v11  ;;  %v3952_v11 = vld [vmem:[%s4341_s2] sm:$0xff]  }
0x1312   :  { %1329 = vrot.lane.b32.xlu0 %v1327_v41, %s3536_s8 }
0x1384   :  { %v1330_v19 = vpop.permute.xlu0 %1329 }
0x1385   :  { %v1332_v20 = vadd.f32 %v1330_v19, %v1270_v2 }
0x1387   :  { %3431 = vtanh.f32 %v1332_v20 }
0x1388   :  { %3433 = vpow2.f32 %v2837_v25 }
0x1391   :  { %v3432_v35 = vpop.eup %3431 }
0x1392   :  { %1336 = vrot.lane.b32.xlu1 %v3432_v35, %s3534_s7  ;;  %v3434_v26 = vpop.eup %3433 }
0x1393   :  { %v1138_v27 = vadd.f32 1.0, %v3434_v26 }
0x1395   :  { %3435 = vrcp.f32 %v1138_v27 }
0x1396   :  { %1143 = vrot.lane.b32.xlu1 %v1141_v36, %s3536_s8 }
0x139f   :  { %v3436_v21 = vpop.eup %3435 }
0x1404   :  { %v1337_v31 = vpop.permute.xlu1 %1336 }
0x1405   :  { %v1339_v38 = vmul.f32 %v1337_v31, %v1334_v30 }
0x1407   :  { %v3942_v39 = vadd.f32 %v1340_v37, %v1339_v38 }
0x1408   :  { %v1144_v42 = vpop.permute.xlu1 %1143 }
0x1409   :  { %v1146_v47 = vmul.f32 %v3436_v21, %v1144_v42  ;;  %v1342_v48 = vpack.c.bf16 %v3942_v39, %v3942_v39 }
0x140b   :  { %1344 = vrot.lane.b32.xlu0 %v1342_v48, %s3534_s7  ;;  %1148 = vrot.lane.b32.xlu1 %v1146_v47, %s3536_s8  ;;  %v4024_v47 = vld [vmem:[%s4343_s3 + $0x1] ss:$0 sm:$0xff] }
0x147d   :  { %v1345_v3 = vpop.permute.xlu0 %1344  ;;  %v1149_v49 = vpop.permute.xlu1 %1148 }
0x147e   :  { %v1151_v52 = vadd.f32 %v1149_v49, %v1082_v8  ;;  %3172 = vmatmul.mubr.msk.bf16.vlgmr.msra.gmra.mrb[40].mxu0 %vm110_vm1, %v1345_v3 }
0x147f   :  { %3184 = vmatpush3.bf16.msra.mxu0 %v3952_v11  ;;  %3187 = vmatprep.mubr.msk.bf16.mxu0 %vm3533_vm0, %v3532_v0 }
0x1480   :  { %3437 = vtanh.f32 %v1151_v52  ;;  %3185 = vmatprep.subr.bf16.mxu0 %v3532_v0 }
0x1483   :  { %3186 = vmatpush3.bf16.msra.mxu0 %v3961_v54 }
0x1484   :  { %3199 = vmatprep.subr.bf16.mxu0 %v3532_v0 }
0x1486   :  { %3188 = vmatmul.mubr.msk.bf16.vlgmr.msra.gmra.mrb[44].mxu0 %vm110_vm1, %v1231_v61 }
0x1487   :  { %3200 = vmatpush3.bf16.msra.mxu0 %v3625_v29  ;;  %3203 = vmatprep.mubr.msk.bf16.mxu0 %vm3533_vm0, %v3532_v0  ;;  %v1153_v29 = vsub.f32 1.0, %v3436_v21 }
0x1488   :  { %3201 = vmatprep.subr.bf16.mxu0 %v3532_v0 }
0x148a   :  { %v3438_v55 = vpop.eup %3437 }
0x148b   :  { %3202 = vmatpush3.bf16.msra.mxu0 %v3643_v33  ;;  %1155 = vrot.lane.b32.xlu1 %v3438_v55, %s3534_s7  ;;  %v1159_v33 = vmul.f32 %v3436_v21, %v3899_v62 }
0x148c   :  { %3215 = vmatprep.subr.bf16.mxu0 %v3532_v0 }
0x148e   :  { %3204 = vmatmul.mubr.msk.bf16.vlgmr.msra.gmra.mrb[48].mxu0 %vm110_vm1, %v1345_v3 }
0x148f   :  { %3216 = vmatpush3.bf16.msra.mxu0 %v3701_v12  ;;  %3219 = vmatprep.mubr.msk.bf16.mxu0 %vm3533_vm0, %v3532_v0 }
0x1490   :  { %3217 = vmatprep.subr.bf16.mxu0 %v3532_v0 }
0x1493   :  { %3218 = vmatpush3.bf16.msra.mxu0 %v3713_v14 }
0x1494   :  { %3231 = vmatprep.subr.bf16.mxu0 %v3532_v0 }
0x14fd   :  { %v1156_v22 = vpop.permute.xlu1 %1155 }
0x14fe   :  { %v1158_v56 = vmul.f32 %v1156_v22, %v1153_v29 }
0x1500   :  { %v3981_v57 = vadd.f32 %v1159_v33, %v1158_v56 }
0x1502   :  { %v1389_v7 = vpack.c.bf16 %v3981_v57, %v3981_v57 }
0x1504   :  { %1391 = vrot.lane.b32.xlu1 %v1389_v7, %s3534_s7 }
0x1551   :  { %v3986_v12 = vpop.f32.mrb[40].mxu0 }
0x1552   :  { %v3173_v16 = vpop.f32.mrb[41].mxu0 }
0x1553   :  { %v1386_v58 = vpop.f32.mrb[42].mxu0 }
0x1554   :  { %v3174_v59 = vpop.f32.mrb[43].mxu0 }
0x1559   :  { %v1497_v14 = vpop.f32.mrb[44].mxu0 }
0x155a   :  { %v1510_v60 = vadd.f32 %v1497_v14, %v3610_v9  ;;  %v3189_v61 = vpop.f32.mrb[45].mxu0  ;;  %v1503_v15 = vadd.f32 %v1497_v14, %v174_v6  ;;  %v1384_v14 = vadd.f32 %v3786_v40, %v3986_v12 }
0x155b   :  { %v1500_v63 = vpop.f32.mrb[46].mxu0 }
0x155c   :  { %1512 = vrot.lane.b32.xlu0 %v1510_v60, %s3536_s8  ;;  %v3190_v62 = vpop.f32.mrb[47].mxu0  ;;  %v2847_v17 = vmul.f32 -1.442695, %v1503_v15 }
0x155e   :  { %3439 = vpow2.f32 %v2847_v17 }
0x1561   :  { %v1611_v2 = vpop.f32.mrb[48].mxu0 }
0x1562   :  { %v1624_v4 = vadd.f32 %v1611_v2, %v3684_v51  ;;  %v3205_v50 = vpop.f32.mrb[49].mxu0 }
0x1563   :  { %v1614_v28 = vpop.f32.mrb[50].mxu0 }
0x1564   :  { %v3206_v24 = vpop.f32.mrb[51].mxu0  ;;  %1626 = vrot.lane.b32.xlu1 %v1624_v4, %s3536_s8 }
0x1576   :  { %v1392_v1 = vpop.permute.xlu1 %1391 }
0x1577   :  { %3180 = vmatmul.mubr.msk.bf16.vlgmr.msra.gmra.mrb[40].mxu1 %vm110_vm1, %v1392_v1 }
0x1578   :  { %3192 = vmatpush3.bf16.msra.mxu1 %v3636_v32  ;;  %3195 = vmatprep.mubr.msk.bf16.mxu1 %vm3533_vm0, %v3532_v0  ;;  %v3440_v32 = vpop.eup %3439 }
0x1579   :  { %3193 = vmatprep.subr.bf16.mxu1 %v3532_v0  ;;  %v1507_v41 = vadd.f32 1.0, %v3440_v32 }
0x157b   :  { %3441 = vrcp.f32 %v1507_v41 }
0x157c   :  { %3194 = vmatpush3.bf16.msra.mxu1 %v3653_v34 }
0x157d   :  { %3207 = vmatprep.subr.bf16.mxu1 %v3532_v0 }
0x1585   :  { %v3442_v19 = vpop.eup %3441 }
0x1586   :  { %v1522_v44 = vsub.f32 1.0, %v3442_v19  ;;  %v1528_v31 = vmul.f32 %v3442_v19, %v3922_v18 }
0x15ce   :  { %v1513_v20 = vpop.permute.xlu0 %1512 }
0x15cf   :  { %v1515_v35 = vmul.f32 %v3442_v19, %v1513_v20  ;;  %v4060_v19 = vld [vmem:[%s4341_s2 + $0x18] sm:$0xff]   ;;  %v4069_v20 = vld [vmem:[%s4341_s2 + $0x20] sm:$0xff]  }
0x15d1   :  { %1517 = vrot.lane.b32.xlu0 %v1515_v35, %s3536_s8  ;;  %v4078_v35 = vld [vmem:[%s4341_s2 + $0x28] sm:$0xff]  }
0x15d6   :  { %v1627_v33 = vpop.permute.xlu1 %1626 }
0x1643   :  { %v1518_v34 = vpop.permute.xlu0 %1517 }
0x1644   :  { %v1520_v36 = vadd.f32 %v1518_v34, %v174_v6 }
0x1646   :  { %3443 = vtanh.f32 %v1520_v36 }
0x164a   :  { %v1430_v8 = vpop.f32.mrb[40].mxu1 }
0x164b   :  { %v3181_v23 = vpop.f32.mrb[41].mxu1  ;;  %v1443_v59 = vadd.f32 %v1430_v8, %v3795_v53  ;;  %v1436_v60 = vadd.f32 %v1430_v8, %v1384_v14 }
0x164c   :  { %v1433_v25 = vpop.f32.mrb[42].mxu1 }
0x164d   :  { %v3182_v26 = vpop.f32.mrb[43].mxu1  ;;  %v2845_v61 = vmul.f32 -1.442695, %v1436_v60 }
0x1650   :  { %v3444_v27 = vpop.eup %3443 }
0x1651   :  { %1524 = vrot.lane.b32.xlu0 %v3444_v27, %s3534_s7 }
0x16c3   :  { %v1525_v30 = vpop.permute.xlu0 %1524 }
0x16c4   :  { %v1527_v37 = vmul.f32 %v1525_v30, %v1522_v44 }
0x16c6   :  { %v4009_v38 = vadd.f32 %v1528_v31, %v1527_v37 }
0x16c8   :  { %v1530_v21 = vpack.c.bf16 %v4009_v38, %v4009_v38 }
0x16ca   :  { %1532 = vrot.lane.b32.xlu0 %v1530_v21, %s3534_s7 }
0x173c   :  { %v1533_v42 = vpop.permute.xlu0 %1532 }
0x173d   :  { %3196 = vmatmul.mubr.msk.bf16.vlgmr.msra.gmra.mrb[44].mxu1 %vm110_vm1, %v1533_v42 }
0x173e   :  { %3208 = vmatpush3.bf16.msra.mxu1 %v3696_v10  ;;  %3211 = vmatprep.mubr.msk.bf16.mxu1 %vm3533_vm0, %v3532_v0 }
0x173f   :  { %3209 = vmatprep.subr.bf16.mxu1 %v3532_v0 }
0x1742   :  { %3210 = vmatpush3.bf16.msra.mxu1 %v3708_v13 }
0x1743   :  { %3223 = vmatprep.subr.bf16.mxu1 %v3532_v0 }
0x1810   :  { %v1571_v18 = vpop.f32.mrb[44].mxu1 }
0x1811   :  { %v1572_v48 = vadd.f32 %v4024_v47, %v1571_v18  ;;  %v3197_v3 = vpop.f32.mrb[45].mxu1 }
0x1812   :  { %v1574_v49 = vpop.f32.mrb[46].mxu1 }
0x1813   :  { %v1617_v10 = vadd.f32 %v1611_v2, %v1572_v48  ;;  %v3198_v52 = vpop.f32.mrb[47].mxu1 }
0x1815   :  { %v2850_v55 = vmul.f32 -1.442695, %v1617_v10 }
0x1817   :  { %3445 = vpow2.f32 %v2850_v55 }
0x1821   :  { %v3446_v29 = vpop.eup %3445 }
0x1822   :  { %v1621_v22 = vadd.f32 1.0, %v3446_v29  ;;  %v4098_v29 = vld [vmem:[%s4340_s1 + $0x10] sm:$0xff]  }
0x1824   :  { %3447 = vrcp.f32 %v1621_v22  ;;  %v4107_v22 = vld [vmem:[%s4340_s1 + $0x18] sm:$0xff]  }
0x182e   :  { %v3448_v13 = vpop.eup %3447 }
0x182f   :  { %v1629_v56 = vmul.f32 %v3448_v13, %v1627_v33  ;;  %v1636_v2 = vsub.f32 1.0, %v3448_v13  ;;  %v1642_v50 = vmul.f32 %v3448_v13, %v3942_v39  ;;  %v4051_v39 = vld [vmem:[%s4341_s2 + $0x10] sm:$0xff]   ;;  %v177_v13 = vadd.f32 %v4002_v5, %v3682_v46 }
0x1831   :  { %1631 = vrot.lane.b32.xlu0 %v1629_v56, %s3536_s8 }
0x18a3   :  { %v1632_v7 = vpop.permute.xlu0 %1631 }
0x18a4   :  { %v1634_v16 = vadd.f32 %v1632_v7, %v1572_v48 }
0x18a6   :  { %3449 = vtanh.f32 %v1634_v16 }
0x18a7   :  { %3451 = vpow2.f32 %v2845_v61 }
0x18b0   :  { %v3450_v58 = vpop.eup %3449 }
0x18b1   :  { %1638 = vrot.lane.b32.xlu1 %v3450_v58, %s3534_s7  ;;  %v3452_v63 = vpop.eup %3451 }
0x18b2   :  { %v1440_v62 = vadd.f32 1.0, %v3452_v63 }
0x18b4   :  { %3453 = vrcp.f32 %v1440_v62 }
0x18b5   :  { %1445 = vrot.lane.b32.xlu1 %v1443_v59, %s3536_s8 }
0x18be   :  { %v3454_v1 = vpop.eup %3453 }
0x18bf   :  { %v1455_v34 = vsub.f32 1.0, %v3454_v1  ;;  %v1461_v8 = vmul.f32 %v3454_v1, %v3981_v57 }
0x1923   :  { %v1639_v4 = vpop.permute.xlu1 %1638 }
0x1924   :  { %v1641_v28 = vmul.f32 %v1639_v4, %v1636_v2 }
0x1926   :  { %v4034_v24 = vadd.f32 %v1642_v50, %v1641_v28 }
0x1927   :  { %v1446_v6 = vpop.permute.xlu1 %1445 }
0x1928   :  { %v1448_v15 = vmul.f32 %v3454_v1, %v1446_v6  ;;  %v1644_v17 = vpack.c.bf16 %v4034_v24, %v4034_v24 }
0x192a   :  { %1646 = vrot.lane.b32.xlu0 %v1644_v17, %s3534_s7  ;;  %1450 = vrot.lane.b32.xlu1 %v1448_v15, %s3536_s8 }
0x199c   :  { %v1647_v40 = vpop.permute.xlu0 %1646  ;;  %v1451_v12 = vpop.permute.xlu1 %1450 }
0x199d   :  { %v1453_v32 = vadd.f32 %v1451_v12, %v1384_v14  ;;  %3212 = vmatmul.mubr.msk.bf16.vlgmr.msra.gmra.mrb[48].mxu1 %vm110_vm1, %v1647_v40  ;;  %v4125_v12 = vld [vmem:[%s4340_s1 + $0x20] sm:$0xff]  }
0x199e   :  { %3224 = vmatpush3.bf16.msra.mxu1 %v3952_v11  ;;  %3227 = vmatprep.mubr.msk.bf16.mxu1 %vm3533_vm0, %v3532_v0 }
0x199f   :  { %3455 = vtanh.f32 %v1453_v32  ;;  %3225 = vmatprep.subr.bf16.mxu1 %v3532_v0 }
0x19a2   :  { %3226 = vmatpush3.bf16.msra.mxu1 %v3961_v54 }
0x19a3   :  { %3239 = vmatprep.subr.bf16.mxu1 %v3532_v0 }
0x19a5   :  { %3228 = vmatmul.mubr.msk.bf16.vlgmr.msra.gmra.mrb[52].mxu1 %vm110_vm1, %v1533_v42 }
0x19a6   :  { %3240 = vmatpush3.bf16.msra.mxu1 %v4051_v39  ;;  %3243 = vmatprep.mubr.msk.bf16.mxu1 %vm3533_vm0, %v3532_v0 }
0x19a7   :  { %3241 = vmatprep.subr.bf16.mxu1 %v3532_v0 }
0x19a9   :  { %v3456_v41 = vpop.eup %3455 }
0x19aa   :  { %3242 = vmatpush3.bf16.msra.mxu1 %v4060_v19  ;;  %1457 = vrot.lane.b32.xlu1 %v3456_v41, %s3534_s7 }
0x19ab   :  { %3255 = vmatprep.subr.bf16.mxu1 %v3532_v0 }
0x19ad   :  { %3244 = vmatmul.mubr.msk.bf16.vlgmr.msra.gmra.mrb[56].mxu1 %vm110_vm1, %v1647_v40 }
0x19ae   :  { %3256 = vmatpush3.bf16.msra.mxu1 %v4069_v20  ;;  %3259 = vmatprep.mubr.msk.bf16.mxu1 %vm3533_vm0, %v3532_v0 }
0x19af   :  { %3257 = vmatprep.subr.bf16.mxu1 %v3532_v0 }
0x19b2   :  { %3258 = vmatpush3.bf16.msra.mxu1 %v4078_v35 }
0x19b3   :  { %3271 = vmatprep.subr.bf16.mxu1 %v3532_v0 }
0x1a1c   :  { %v1458_v36 = vpop.permute.xlu1 %1457 }
0x1a1d   :  { %v1460_v23 = vmul.f32 %v1458_v36, %v1455_v34 }
0x1a1f   :  { %v4083_v25 = vadd.f32 %v1461_v8, %v1460_v23 }
0x1a21   :  { %v1691_v26 = vpack.c.bf16 %v4083_v25, %v4083_v25 }
0x1a23   :  { %1693 = vrot.lane.b32.xlu1 %v1691_v26, %s3534_s7 }
0x1a70   :  { %v4088_v27 = vpop.f32.mrb[48].mxu1 }
0x1a71   :  { %v3213_v44 = vpop.f32.mrb[49].mxu1 }
0x1a72   :  { %v1688_v30 = vpop.f32.mrb[50].mxu1 }
0x1a73   :  { %v3214_v31 = vpop.f32.mrb[51].mxu1 }
0x1a78   :  { %v1799_v37 = vpop.f32.mrb[52].mxu1 }
0x1a79   :  { %v1812_v21 = vadd.f32 %v1799_v37, %v3610_v9  ;;  %v3229_v42 = vpop.f32.mrb[53].mxu1  ;;  %v1805_v33 = vadd.f32 %v1799_v37, %v177_v13 }
0x1a7a   :  { %v1802_v18 = vpop.f32.mrb[54].mxu1 }
0x1a7b   :  { %1814 = vrot.lane.b32.xlu0 %v1812_v21, %s3536_s8  ;;  %v3230_v57 = vpop.f32.mrb[55].mxu1  ;;  %v2855_v56 = vmul.f32 -1.442695, %v1805_v33 }
0x1a7d   :  { %3457 = vpow2.f32 %v2855_v56 }
0x1a80   :  { %v1913_v48 = vpop.f32.mrb[56].mxu1 }
0x1a81   :  { %v1926_v3 = vadd.f32 %v1913_v48, %v3684_v51  ;;  %v3245_v49 = vpop.f32.mrb[57].mxu1 }
0x1a82   :  { %v1916_v10 = vpop.f32.mrb[58].mxu1 }
0x1a83   :  { %1928 = vrot.lane.b32.xlu1 %v1926_v3, %s3536_s8  ;;  %v3246_v52 = vpop.f32.mrb[59].mxu1 }
0x1a87   :  { %v3458_v7 = vpop.eup %3457 }
0x1a88   :  { %v1809_v16 = vadd.f32 1.0, %v3458_v7 }
0x1a8a   :  { %3459 = vrcp.f32 %v1809_v16 }
0x1a94   :  { %v3460_v58 = vpop.eup %3459 }
0x1a95   :  { %v1694_v55 = vpop.permute.xlu1 %1693  ;;  %v1824_v46 = vsub.f32 1.0, %v3460_v58  ;;  %v1830_v1 = vmul.f32 %v3460_v58, %v4009_v38  ;;  %v4134_v38 = vld [vmem:[%s4340_s1 + $0x28] sm:$0xff]  }
0x1a96   :  { %3220 = vmatmul.mubr.msk.bf16.vlgmr.msra.gmra.mrb[52].mxu0 %vm110_vm1, %v1694_v55 }
0x1a97   :  { %3232 = vmatpush3.bf16.msra.mxu0 %v4098_v29  ;;  %3235 = vmatprep.mubr.msk.bf16.mxu0 %vm3533_vm0, %v3532_v0 }
0x1a98   :  { %3233 = vmatprep.subr.bf16.mxu0 %v3532_v0 }
0x1a9b   :  { %3234 = vmatpush3.bf16.msra.mxu0 %v4107_v22 }
0x1a9c   :  { %3247 = vmatprep.subr.bf16.mxu0 %v3532_v0 }
0x1aed   :  { %v1815_v59 = vpop.permute.xlu0 %1814 }
0x1aee   :  { %v1817_v14 = vmul.f32 %v3460_v58, %v1815_v59 }
0x1af0   :  { %1819 = vrot.lane.b32.xlu0 %v1817_v14, %s3536_s8 }
0x1af5   :  { %v1929_v37 = vpop.permute.xlu1 %1928 }
0x1b62   :  { %v1820_v60 = vpop.permute.xlu0 %1819 }
0x1b63   :  { %v1822_v61 = vadd.f32 %v1820_v60, %v177_v13 }
0x1b65   :  { %3461 = vtanh.f32 %v1822_v61 }
0x1b69   :  { %v1732_v63 = vpop.f32.mrb[52].mxu0 }
0x1b6a   :  { %v3221_v62 = vpop.f32.mrb[53].mxu0  ;;  %v1745_v3 = vadd.f32 %v1732_v63, %v3795_v53 }
0x1b6b   :  { %v1735_v2 = vpop.f32.mrb[54].mxu0 }
0x1b6c   :  { %v3222_v4 = vpop.f32.mrb[55].mxu0 }
0x1b6f   :  { %v3462_v50 = vpop.eup %3461 }
0x1b70   :  { %1826 = vrot.lane.b32.xlu0 %v3462_v50, %s3534_s7 }
0x1be2   :  { %v1827_v28 = vpop.permute.xlu0 %1826 }
0x1be3   :  { %v1829_v6 = vmul.f32 %v1827_v28, %v1824_v46 }
0x1be5   :  { %v4116_v15 = vadd.f32 %v1830_v1, %v1829_v6 }
0x1be7   :  { %v1832_v17 = vpack.c.bf16 %v4116_v15, %v4116_v15 }
0x1be9   :  { %1834 = vrot.lane.b32.xlu0 %v1832_v17, %s3534_s7 }
0x1c5b   :  { %v1835_v40 = vpop.permute.xlu0 %1834 }
0x1c5c   :  { %3236 = vmatmul.mubr.msk.bf16.vlgmr.msra.gmra.mrb[56].mxu0 %vm110_vm1, %v1835_v40 }
0x1c5d   :  { %3248 = vmatpush3.bf16.msra.mxu0 %v4125_v12  ;;  %3251 = vmatprep.mubr.msk.bf16.mxu0 %vm3533_vm0, %v3532_v0 }
0x1c5e   :  { %3249 = vmatprep.subr.bf16.mxu0 %v3532_v0 }
0x1c61   :  { %3250 = vmatpush3.bf16.msra.mxu0 %v4134_v38 }
0x1c62   :  { %3263 = vmatprep.subr.bf16.mxu0 %v3532_v0 }
0x1d2f   :  { %v1873_v32 = vpop.f32.mrb[56].mxu0 }
0x1d30   :  { %v1874_v41 = vadd.f32 %v4024_v47, %v1873_v32  ;;  %v3237_v34 = vpop.f32.mrb[57].mxu0 }
0x1d31   :  { %v1876_v36 = vpop.f32.mrb[58].mxu0 }
0x1d32   :  { %v1919_v8 = vadd.f32 %v1913_v48, %v1874_v41  ;;  %v3238_v23 = vpop.f32.mrb[59].mxu0  ;;  %v4146_v48 = vld [vmem:[%s4343_s3 + $0x2] ss:$0 sm:$0xff] }
0x1d33   :  { %v1686_v49 = vadd.f32 %v4146_v48, %v4088_v27 }
0x1d34   :  { %v2858_v26 = vmul.f32 -1.442695, %v1919_v8 }
0x1d35   :  { %v1738_v10 = vadd.f32 %v1732_v63, %v1686_v49 }
0x1d36   :  { %3463 = vpow2.f32 %v2858_v26 }
0x1d37   :  { %v2853_v52 = vmul.f32 -1.442695, %v1738_v10 }
0x1d40   :  { %v3464_v44 = vpop.eup %3463 }
0x1d41   :  { %v1923_v30 = vadd.f32 1.0, %v3464_v44 }
0x1d43   :  { %3465 = vrcp.f32 %v1923_v30 }
0x1d4d   :  { %v3466_v31 = vpop.eup %3465 }
0x1d4e   :  { %v1931_v21 = vmul.f32 %v3466_v31, %v1929_v37  ;;  %v1938_v33 = vsub.f32 1.0, %v3466_v31  ;;  %v1944_v7 = vmul.f32 %v3466_v31, %v4034_v24 }
0x1d50   :  { %1933 = vrot.lane.b32.xlu0 %v1931_v21, %s3536_s8  ;;  %v182_v21 = vadd.f32 %v4002_v5, %v3676_v43 }
0x1dc2   :  { %v1934_v42 = vpop.permute.xlu0 %1933 }
0x1dc3   :  { %v1936_v18 = vadd.f32 %v1934_v42, %v1874_v41 }
0x1dc5   :  { %3467 = vtanh.f32 %v1936_v18 }
0x1dc6   :  { %3469 = vpow2.f32 %v2853_v52 }
0x1dcf   :  { %v3468_v57 = vpop.eup %3467 }
0x1dd0   :  { %1940 = vrot.lane.b32.xlu1 %v3468_v57, %s3534_s7  ;;  %v3470_v55 = vpop.eup %3469 }
0x1dd1   :  { %v1742_v13 = vadd.f32 1.0, %v3470_v55 }
0x1dd3   :  { %3471 = vrcp.f32 %v1742_v13 }
0x1dd4   :  { %1747 = vrot.lane.b32.xlu1 %v1745_v3, %s3536_s8 }
0x1ddd   :  { %v3472_v59 = vpop.eup %3471 }
0x1dde   :  { %v1757_v2 = vsub.f32 1.0, %v3472_v59  ;;  %v1763_v50 = vmul.f32 %v3472_v59, %v4083_v25 }
0x1e42   :  { %v1941_v56 = vpop.permute.xlu1 %1940 }
0x1e43   :  { %v1943_v16 = vmul.f32 %v1941_v56, %v1938_v33 }
0x1e45   :  { %v4151_v58 = vadd.f32 %v1944_v7, %v1943_v16 }
0x1e46   :  { %v1748_v14 = vpop.permute.xlu1 %1747 }
0x1e47   :  { %v1750_v60 = vmul.f32 %v3472_v59, %v1748_v14  ;;  %v1946_v61 = vpack.c.bf16 %v4151_v58, %v4151_v58 }
0x1e49   :  { %1948 = vrot.lane.b32.xlu0 %v1946_v61, %s3534_s7  ;;  %1752 = vrot.lane.b32.xlu1 %v1750_v60, %s3536_s8 }
0x1ebb   :  { %v1949_v27 = vpop.permute.xlu0 %1948  ;;  %v1753_v63 = vpop.permute.xlu1 %1752 }
0x1ebc   :  { %v1755_v62 = vadd.f32 %v1753_v63, %v1686_v49  ;;  %3252 = vmatmul.mubr.msk.bf16.vlgmr.msra.gmra.mrb[60].mxu0 %vm110_vm1, %v1949_v27 }
0x1ebd   :  { %3264 = vmatpush3.bf16.msra.mxu0 %v3952_v11  ;;  %3267 = vmatprep.mubr.msk.bf16.mxu0 %vm3533_vm0, %v3532_v0 }
0x1ebe   :  { %3473 = vtanh.f32 %v1755_v62  ;;  %3265 = vmatprep.subr.bf16.mxu0 %v3532_v0 }
0x1ec1   :  { %3266 = vmatpush3.bf16.msra.mxu0 %v3961_v54 }
0x1ec2   :  { %3279 = vmatprep.subr.bf16.mxu0 %v3532_v0 }
0x1ec4   :  { %3268 = vmatmul.mubr.msk.bf16.vlgmr.msra.gmra.mrb[64].mxu0 %vm110_vm1, %v1835_v40 }
0x1ec5   :  { %3280 = vmatpush3.bf16.msra.mxu0 %v4051_v39  ;;  %3283 = vmatprep.mubr.msk.bf16.mxu0 %vm3533_vm0, %v3532_v0 }
0x1ec6   :  { %3281 = vmatprep.subr.bf16.mxu0 %v3532_v0 }
0x1ec8   :  { %v3474_v24 = vpop.eup %3473 }
0x1ec9   :  { %3282 = vmatpush3.bf16.msra.mxu0 %v4060_v19  ;;  %1759 = vrot.lane.b32.xlu1 %v3474_v24, %s3534_s7 }
0x1eca   :  { %3295 = vmatprep.subr.bf16.mxu0 %v3532_v0 }
0x1ecc   :  { %3284 = vmatmul.mubr.msk.bf16.vlgmr.msra.gmra.mrb[68].mxu0 %vm110_vm1, %v1949_v27 }
0x1ecd   :  { %3296 = vmatpush3.bf16.msra.mxu0 %v4069_v20  ;;  %3299 = vmatprep.mubr.msk.bf16.mxu0 %vm3533_vm0, %v3532_v0 }
0x1ece   :  { %3297 = vmatprep.subr.bf16.mxu0 %v3532_v0 }
0x1ed1   :  { %3298 = vmatpush3.bf16.msra.mxu0 %v4078_v35 }
0x1ed2   :  { %3311 = vmatprep.subr.bf16.mxu0 %v3532_v0 }
0x1f3b   :  { %v1760_v4 = vpop.permute.xlu1 %1759 }
0x1f3c   :  { %v1762_v46 = vmul.f32 %v1760_v4, %v1757_v2 }
0x1f3e   :  { %v4180_v28 = vadd.f32 %v1763_v50, %v1762_v46 }
0x1f40   :  { %v1993_v1 = vpack.c.bf16 %v4180_v28, %v4180_v28 }
0x1f42   :  { %1995 = vrot.lane.b32.xlu1 %v1993_v1, %s3534_s7 }
0x1f8f   :  { %v4185_v6 = vpop.f32.mrb[60].mxu0 }
0x1f90   :  { %v3253_v17 = vpop.f32.mrb[61].mxu0 }
0x1f91   :  { %v1990_v40 = vpop.f32.mrb[62].mxu0 }
0x1f92   :  { %v3254_v32 = vpop.f32.mrb[63].mxu0 }
0x1f97   :  { %v2101_v41 = vpop.f32.mrb[64].mxu0 }
0x1f98   :  { %v2114_v34 = vadd.f32 %v2101_v41, %v3610_v9  ;;  %v3269_v36 = vpop.f32.mrb[65].mxu0  ;;  %v2107_v42 = vadd.f32 %v2101_v41, %v182_v21 }
0x1f99   :  { %v2104_v8 = vpop.f32.mrb[66].mxu0 }
0x1f9a   :  { %2116 = vrot.lane.b32.xlu0 %v2114_v34, %s3536_s8  ;;  %v3270_v25 = vpop.f32.mrb[67].mxu0  ;;  %v2863_v18 = vmul.f32 -1.442695, %v2107_v42 }
0x1f9c   :  { %3475 = vpow2.f32 %v2863_v18 }
0x1f9f   :  { %v2215_v23 = vpop.f32.mrb[68].mxu0 }
0x1fa0   :  { %v2228_v26 = vadd.f32 %v2215_v23, %v3684_v51  ;;  %v3285_v44 = vpop.f32.mrb[69].mxu0 }
0x1fa1   :  { %v2218_v30 = vpop.f32.mrb[70].mxu0 }
0x1fa2   :  { %v3286_v31 = vpop.f32.mrb[71].mxu0  ;;  %2230 = vrot.lane.b32.xlu1 %v2228_v26, %s3536_s8 }
0x1fa6   :  { %v3476_v57 = vpop.eup %3475 }
0x1fa7   :  { %v2111_v3 = vadd.f32 1.0, %v3476_v57 }
0x1fa9   :  { %3477 = vrcp.f32 %v2111_v3 }
0x1fb3   :  { %v3478_v49 = vpop.eup %3477 }
0x1fb4   :  { %v1996_v37 = vpop.permute.xlu1 %1995  ;;  %v2126_v43 = vsub.f32 1.0, %v3478_v49  ;;  %v2132_v60 = vmul.f32 %v3478_v49, %v4116_v15 }
0x1fb5   :  { %3260 = vmatmul.mubr.msk.bf16.vlgmr.msra.gmra.mrb[60].mxu1 %vm110_vm1, %v1996_v37 }
0x1fb6   :  { %3272 = vmatpush3.bf16.msra.mxu1 %v4098_v29  ;;  %3275 = vmatprep.mubr.msk.bf16.mxu1 %vm3533_vm0, %v3532_v0 }
0x1fb7   :  { %3273 = vmatprep.subr.bf16.mxu1 %v3532_v0 }
0x1fba   :  { %3274 = vmatpush3.bf16.msra.mxu1 %v4107_v22 }
0x1fbb   :  { %3287 = vmatprep.subr.bf16.mxu1 %v3532_v0 }
0x200c   :  { %v2117_v10 = vpop.permute.xlu0 %2116 }
0x200d   :  { %v2119_v52 = vmul.f32 %v3478_v49, %v2117_v10 }
0x200f   :  { %2121 = vrot.lane.b32.xlu0 %v2119_v52, %s3536_s8 }
0x2014   :  { %v2231_v41 = vpop.permute.xlu1 %2230 }
0x2081   :  { %v2122_v55 = vpop.permute.xlu0 %2121 }
0x2082   :  { %v2124_v13 = vadd.f32 %v2122_v55, %v182_v21 }
0x2084   :  { %3479 = vtanh.f32 %v2124_v13 }
0x2088   :  { %v2034_v33 = vpop.f32.mrb[60].mxu1 }
0x2089   :  { %v3261_v56 = vpop.f32.mrb[61].mxu1  ;;  %v2047_v26 = vadd.f32 %v2034_v33, %v3795_v53 }
0x208a   :  { %v2037_v7 = vpop.f32.mrb[62].mxu1 }
0x208b   :  { %v3262_v16 = vpop.f32.mrb[63].mxu1 }
0x208e   :  { %v3480_v59 = vpop.eup %3479 }
0x208f   :  { %2128 = vrot.lane.b32.xlu0 %v3480_v59, %s3534_s7 }
0x2101   :  { %v2129_v14 = vpop.permute.xlu0 %2128 }
0x2102   :  { %v2131_v61 = vmul.f32 %v2129_v14, %v2126_v43 }
0x2104   :  { %v4203_v27 = vadd.f32 %v2132_v60, %v2131_v61  ;;  %v185_v61 = vadd.f32 %v4002_v5, %v3680_v45 }
0x2106   :  { %v2134_v63 = vpack.c.bf16 %v4203_v27, %v4203_v27 }
0x2108   :  { %2136 = vrot.lane.b32.xlu0 %v2134_v63, %s3534_s7 }
0x217a   :  { %v2137_v62 = vpop.permute.xlu0 %2136 }
0x217b   :  { %3276 = vmatmul.mubr.msk.bf16.vlgmr.msra.gmra.mrb[64].mxu1 %vm110_vm1, %v2137_v62 }
0x217c   :  { %3288 = vmatpush3.bf16.msra.mxu1 %v4125_v12  ;;  %3291 = vmatprep.mubr.msk.bf16.mxu1 %vm3533_vm0, %v3532_v0 }
0x217d   :  { %3289 = vmatprep.subr.bf16.mxu1 %v3532_v0 }
0x2180   :  { %3290 = vmatpush3.bf16.msra.mxu1 %v4134_v38 }
0x2181   :  { %3303 = vmatprep.subr.bf16.mxu1 %v3532_v0 }
0x224e   :  { %v2175_v15 = vpop.f32.mrb[64].mxu1 }
0x224f   :  { %v2176_v24 = vadd.f32 %v4024_v47, %v2175_v15  ;;  %v3277_v2 = vpop.f32.mrb[65].mxu1 }
0x2250   :  { %v2178_v4 = vpop.f32.mrb[66].mxu1 }
0x2251   :  { %v2221_v50 = vadd.f32 %v2215_v23, %v2176_v24  ;;  %v3278_v46 = vpop.f32.mrb[67].mxu1  ;;  %v1988_v23 = vadd.f32 %v4146_v48, %v4185_v6 }
0x2253   :  { %v2866_v1 = vmul.f32 -1.442695, %v2221_v50  ;;  %v2040_v44 = vadd.f32 %v2034_v33, %v1988_v23 }
0x2255   :  { %3481 = vpow2.f32 %v2866_v1  ;;  %v2861_v30 = vmul.f32 -1.442695, %v2040_v44 }
0x225f   :  { %v3482_v17 = vpop.eup %3481 }
0x2260   :  { %v2225_v40 = vadd.f32 1.0, %v3482_v17 }
0x2262   :  { %3483 = vrcp.f32 %v2225_v40 }
0x226c   :  { %v3484_v32 = vpop.eup %3483 }
0x226d   :  { %v2233_v34 = vmul.f32 %v3484_v32, %v2231_v41  ;;  %v2240_v21 = vsub.f32 1.0, %v3484_v32  ;;  %v2246_v18 = vmul.f32 %v3484_v32, %v4151_v58 }
0x226f   :  { %2235 = vrot.lane.b32.xlu0 %v2233_v34, %s3536_s8 }
0x22e1   :  { %v2236_v36 = vpop.permute.xlu0 %2235 }
0x22e2   :  { %v2238_v8 = vadd.f32 %v2236_v36, %v2176_v24 }
0x22e4   :  { %3485 = vtanh.f32 %v2238_v8 }
0x22e5   :  { %3487 = vpow2.f32 %v2861_v30 }
0x22ee   :  { %v3486_v25 = vpop.eup %3485 }
0x22ef   :  { %2242 = vrot.lane.b32.xlu1 %v3486_v25, %s3534_s7  ;;  %v3488_v31 = vpop.eup %3487 }
0x22f0   :  { %v2044_v37 = vadd.f32 1.0, %v3488_v31 }
0x22f2   :  { %3489 = vrcp.f32 %v2044_v37 }
0x22f3   :  { %2049 = vrot.lane.b32.xlu1 %v2047_v26, %s3536_s8 }
0x22fc   :  { %v3490_v6 = vpop.eup %3489 }
0x22fd   :  { %v2059_v50 = vsub.f32 1.0, %v3490_v6  ;;  %v2065_v1 = vmul.f32 %v3490_v6, %v4180_v28 }
0x2361   :  { %v2243_v42 = vpop.permute.xlu1 %2242 }
0x2362   :  { %v2245_v57 = vmul.f32 %v2243_v42, %v2240_v21 }
0x2364   :  { %v4223_v3 = vadd.f32 %v2246_v18, %v2245_v57 }
0x2365   :  { %v2050_v10 = vpop.permute.xlu1 %2049 }
0x2366   :  { %v2248_v49 = vpack.c.bf16 %v4223_v3, %v4223_v3  ;;  %v2052_v52 = vmul.f32 %v3490_v6, %v2050_v10 }
0x2368   :  { %2250 = vrot.lane.b32.xlu0 %v2248_v49, %s3534_s7 }
0x236c   :  { %2054 = vrot.lane.b32.xlu0 %v2052_v52, %s3536_s8 }
0x23da   :  { %v2251_v55 = vpop.permute.xlu0 %2250 }
0x23db   :  { %3292 = vmatmul.mubr.msk.bf16.vlgmr.msra.gmra.mrb[68].mxu1 %vm110_vm1, %v2251_v55 }
0x23dc   :  { %3304 = vmatpush3.bf16.msra.mxu1 %v3952_v11  ;;  %3307 = vmatprep.mubr.msk.bf16.mxu1 %vm3533_vm0, %v3532_v0 }
0x23dd   :  { %3305 = vmatprep.subr.bf16.mxu1 %v3532_v0 }
0x23de   :  { %v2055_v11 = vpop.permute.xlu0 %2054 }
0x23e0   :  { %3306 = vmatpush3.bf16.msra.mxu1 %v3961_v54  ;;  %v2057_v54 = vadd.f32 %v2055_v11, %v1988_v23 }
0x23e1   :  { %3319 = vmatprep.subr.bf16.mxu1 %v3532_v0 }
0x23e2   :  { %3491 = vtanh.f32 %v2057_v54 }
0x23e3   :  { %3308 = vmatmul.mubr.msk.bf16.vlgmr.msra.gmra.mrb[72].mxu1 %vm110_vm1, %v2137_v62 }
0x23e4   :  { %3320 = vmatpush3.bf16.msra.mxu1 %v4051_v39  ;;  %3323 = vmatprep.mubr.msk.bf16.mxu1 %vm3533_vm0, %v3532_v0 }
0x23e5   :  { %3321 = vmatprep.subr.bf16.mxu1 %v3532_v0 }
0x23e8   :  { %3322 = vmatpush3.bf16.msra.mxu1 %v4060_v19 }
0x23e9   :  { %3335 = vmatprep.subr.bf16.mxu1 %v3532_v0 }
0x23eb   :  { %3324 = vmatmul.mubr.msk.bf16.vlgmr.msra.gmra.mrb[76].mxu1 %vm110_vm1, %v2251_v55 }
0x23ec   :  { %3336 = vmatpush3.bf16.msra.mxu1 %v4069_v20  ;;  %3339 = vmatprep.mubr.msk.bf16.mxu1 %vm3533_vm0, %v3532_v0  ;;  %v3492_v59 = vpop.eup %3491 }
0x23ed   :  { %3337 = vmatprep.subr.bf16.mxu1 %v3532_v0 }
0x23f0   :  { %3338 = vmatpush3.bf16.msra.mxu1 %v4078_v35 }
0x24ae   :  { %v4249_v39 = vpop.f32.mrb[68].mxu1 }
0x24af   :  { %v3293_v58 = vpop.f32.mrb[69].mxu1 }
0x24b0   :  { %v2292_v13 = vpop.f32.mrb[70].mxu1 }
0x24b1   :  { %v3294_v19 = vpop.f32.mrb[71].mxu1 }
0x24b6   :  { %v2403_v33 = vpop.f32.mrb[72].mxu1 }
0x24b7   :  { %v2416_v56 = vadd.f32 %v2403_v33, %v3610_v9  ;;  %v3309_v7 = vpop.f32.mrb[73].mxu1  ;;  %v2409_v63 = vadd.f32 %v2403_v33, %v185_v61 }
0x24b8   :  { %v2406_v20 = vpop.f32.mrb[74].mxu1 }
0x24b9   :  { %2418 = vrot.lane.b32.xlu1 %v2416_v56, %s3536_s8  ;;  %v3310_v16 = vpop.f32.mrb[75].mxu1  ;;  %v2871_v62 = vmul.f32 -1.442695, %v2409_v63 }
0x24bb   :  { %3493 = vpow2.f32 %v2871_v62 }
0x24bd   :  { %2061 = vrot.lane.b32.xlu1 %v3492_v59, %s3534_s7 }
0x24be   :  { %v4254_v35 = vpop.f32.mrb[76].mxu1 }
0x24bf   :  { %v3325_v43 = vpop.f32.mrb[77].mxu1 }
0x24c0   :  { %v2520_v14 = vpop.f32.mrb[78].mxu1 }
0x24c1   :  { %v3326_v60 = vpop.f32.mrb[79].mxu1 }
0x24c5   :  { %v3494_v9 = vpop.eup %3493 }
0x24c6   :  { %v2413_v15 = vadd.f32 1.0, %v3494_v9 }
0x24c8   :  { %3495 = vrcp.f32 %v2413_v15 }
0x24d2   :  { %v3496_v24 = vpop.eup %3495 }
0x24d3   :  { %v2428_v34 = vsub.f32 1.0, %v3496_v24  ;;  %v2434_v8 = vmul.f32 %v3496_v24, %v4203_v27 }
0x252b   :  { %v2419_v2 = vpop.permute.xlu1 %2418 }
0x252c   :  { %v2421_v4 = vmul.f32 %v3496_v24, %v2419_v2 }
0x252e   :  { %2423 = vrot.lane.b32.xlu0 %v2421_v4, %s3536_s8 }
0x252f   :  { %v2062_v46 = vpop.permute.xlu1 %2061 }
0x2530   :  { %v2064_v17 = vmul.f32 %v2062_v46, %v2059_v50 }
0x2532   :  { %v4260_v40 = vadd.f32 %v2065_v1, %v2064_v17 }
0x2534   :  { %v2295_v45 = vpack.c.bf16 %v4260_v40, %v4260_v40 }
0x2536   :  { %2297 = vrot.lane.b32.xlu1 %v2295_v45, %s3534_s7 }
0x25a0   :  { %v2424_v5 = vpop.permute.xlu0 %2423 }
0x25a1   :  { %v2426_v32 = vadd.f32 %v2424_v5, %v185_v61 }
0x25a3   :  { %3497 = vtanh.f32 %v2426_v32 }
0x25a8   :  { %v2298_v41 = vpop.permute.xlu1 %2297 }
0x25a9   :  { %3300 = vmatmul.mubr.msk.bf16.vlgmr.msra.gmra.mrb[72].mxu0 %vm110_vm1, %v2298_v41 }
0x25aa   :  { %3312 = vmatpush3.bf16.msra.mxu0 %v4098_v29  ;;  %3315 = vmatprep.mubr.msk.bf16.mxu0 %vm3533_vm0, %v3532_v0  ;;  %v2530_v29 = vadd.f32 %v4254_v35, %v3684_v51  ;;  %v2290_v51 = vadd.f32 %v4146_v48, %v4249_v39 }
0x25ab   :  { %3313 = vmatprep.subr.bf16.mxu0 %v3532_v0 }
0x25ad   :  { %v3498_v28 = vpop.eup %3497 }
0x25ae   :  { %2430 = vrot.lane.b32.xlu0 %v3498_v28, %s3534_s7  ;;  %3314 = vmatpush3.bf16.msra.mxu0 %v4107_v22 }
0x25af   :  { %3327 = vmatprep.subr.bf16.mxu0 %v3532_v0 }
0x2620   :  { %v2431_v36 = vpop.permute.xlu0 %2430 }
0x2621   :  { %v2433_v25 = vmul.f32 %v2431_v36, %v2428_v34 }
0x2623   :  { %v2435_v26 = vadd.f32 %v2434_v8, %v2433_v25 }
0x2625   :  { %v2436_v23 = vpack.c.bf16 %v2435_v26, %v2435_v26 }
0x2627   :  { %2438 = vrot.lane.b32.xlu0 %v2436_v23, %s3534_s7 }
0x262b   :  { %2532 = vrot.lane.b32.xlu0 %v2530_v29, %s3536_s8 }
0x267c   :  { %v2336_v44 = vpop.f32.mrb[72].mxu0 }
0x267d   :  { %v2349_v30 = vadd.f32 %v2336_v44, %v3795_v53  ;;  %v3301_v22 = vpop.f32.mrb[73].mxu0  ;;  %v2342_v27 = vadd.f32 %v2336_v44, %v2290_v51 }
0x267e   :  { %v2339_v31 = vpop.f32.mrb[74].mxu0 }
0x267f   :  { %2351 = vrot.lane.b32.xlu1 %v2349_v30, %s3536_s8  ;;  %v3302_v37 = vpop.f32.mrb[75].mxu0  ;;  %v2869_v42 = vmul.f32 -1.442695, %v2342_v27 }
0x2681   :  { %3499 = vpow2.f32 %v2869_v42 }
0x268b   :  { %v3500_v18 = vpop.eup %3499 }
0x268c   :  { %v2346_v57 = vadd.f32 1.0, %v3500_v18 }
0x268e   :  { %3501 = vrcp.f32 %v2346_v57  ;;  %v2878_v57 = vld [vmem:[%s4344_s4 + $0x20] ss:$0 sm:$0xff] }
0x2698   :  { %v3502_v49 = vpop.eup %3501 }
0x2699   :  { %v2439_v21 = vpop.permute.xlu0 %2438  ;;  %v2361_v59 = vsub.f32 1.0, %v3502_v49  ;;  %v2367_v43 = vmul.f32 %v3502_v49, %v4260_v40 }
0x269a   :  { %3316 = vmatmul.mubr.msk.bf16.vlgmr.msra.gmra.mrb[76].mxu0 %vm110_vm1, %v2439_v21 }
0x269b   :  { %3328 = vmatpush3.bf16.msra.mxu0 %v4125_v12  ;;  %3331 = vmatprep.mubr.msk.bf16.mxu0 %vm3533_vm0, %v3532_v0 }
0x269c   :  { %3329 = vmatprep.subr.bf16.mxu0 %v3532_v0 }
0x269d   :  { %v2533_v20 = vpop.permute.xlu0 %2532 }
0x269f   :  { %3330 = vmatpush3.bf16.msra.mxu0 %v4134_v38 }
0x26a0   :  { %3343 = vmatprep.subr.bf16.mxu0 %v3532_v0 }
0x26f1   :  { %v2352_v12 = vpop.permute.xlu1 %2351 }
0x26f2   :  { %v2354_v10 = vmul.f32 %v3502_v49, %v2352_v12 }
0x26f4   :  { %2356 = vrot.lane.b32.xlu1 %v2354_v10, %s3536_s8 }
0x2766   :  { %v2357_v6 = vpop.permute.xlu1 %2356 }
0x2767   :  { %v2359_v52 = vadd.f32 %v2357_v6, %v2290_v51 }
0x2769   :  { %3503 = vtanh.f32 %v2359_v52 }
0x276d   :  { %v2477_v38 = vpop.f32.mrb[76].mxu0 }
0x276e   :  { %v2478_v55 = vadd.f32 %v4024_v47, %v2477_v38  ;;  %v3317_v11 = vpop.f32.mrb[77].mxu0 }
0x276f   :  { %v2480_v54 = vpop.f32.mrb[78].mxu0  ;;  %v2713_v11 = vld [vmem:[%s4344_s4] sm:$0xff] }
0x2770   :  { %v2523_v39 = vadd.f32 %v4254_v35, %v2478_v55  ;;  %v3318_v58 = vpop.f32.mrb[79].mxu0  ;;  %v2714_v54 = vld [vmem:[%s4344_s4 + $0x8] sm:$0xff] }
0x2771   :  { %v2717_v58 = vpack.c.bf16 %v2714_v54, %v2713_v11 }
0x2772   :  { %v2874_v13 = vmul.f32 -1.442695, %v2523_v39  ;;  %v2715_v39 = vld [vmem:[%s4344_s4 + $0x10] sm:$0xff] }
0x2773   :  { %v3504_v19 = vpop.eup %3503 }
0x2774   :  { %3505 = vpow2.f32 %v2874_v13  ;;  %2363 = vrot.lane.b32.xlu1 %v3504_v19, %s3534_s7  ;;  %v2716_v13 = vld [vmem:[%s4344_s4 + $0x18] sm:$0xff] }
0x2775   :  { %v2718_v19 = vpack.c.bf16 %v2716_v13, %v2715_v39 }
0x277e   :  { %v3506_v33 = vpop.eup %3505 }
0x277f   :  { %v2527_v56 = vadd.f32 1.0, %v3506_v33 }
0x2781   :  { %3507 = vrcp.f32 %v2527_v56 }
0x278b   :  { %v3508_v7 = vpop.eup %3507 }
0x278c   :  { %v2535_v16 = vmul.f32 %v3508_v7, %v2533_v20  ;;  %v2542_v15 = vsub.f32 1.0, %v3508_v7  ;;  %v2548_v2 = vmul.f32 %v3508_v7, %v4223_v3 }
0x278e   :  { %2537 = vrot.lane.b32.xlu0 %v2535_v16, %s3536_s8 }
0x27e6   :  { %v2364_v47 = vpop.permute.xlu1 %2363 }
0x27e7   :  { %v2366_v14 = vmul.f32 %v2364_v47, %v2361_v59 }
0x27e9   :  { %v2368_v35 = vadd.f32 %v2367_v43, %v2366_v14 }
0x27eb   :  { %v2597_v60 = vpack.c.bf16 %v2368_v35, %v2368_v35 }
0x27ed   :  { %2599 = vrot.lane.b32.xlu1 %v2597_v60, %s3534_s7 }
0x2800   :  { %v2538_v61 = vpop.permute.xlu0 %2537 }
0x2801   :  { %v2540_v63 = vadd.f32 %v2538_v61, %v2478_v55  ;;  %v2879_v55 = vld [vmem:[%s4344_s4 + $0x21] ss:$0 sm:$0xff] }
0x2803   :  { %3509 = vtanh.f32 %v2540_v63 }
0x280d   :  { %v3510_v62 = vpop.eup %3509 }
0x280e   :  { %2544 = vrot.lane.b32.xlu0 %v3510_v62, %s3534_s7 }
0x285f   :  { %v2600_v9 = vpop.permute.xlu1 %2599 }
0x2860   :  { %3340 = vmatmul.mubr.msk.bf16.vlgmr.msra.gmra.mrb[80].mxu1 %vm110_vm1, %v2600_v9 }
0x2880   :  { %v2545_v24 = vpop.permute.xlu0 %2544 }
0x2881   :  { %v2547_v4 = vmul.f32 %v2545_v24, %v2542_v15 }
0x2883   :  { %v2549_v50 = vadd.f32 %v2548_v2, %v2547_v4 }
0x2885   :  { %v2550_v46 = vpack.c.bf16 %v2549_v50, %v2549_v50 }
0x2887   :  { %2552 = vrot.lane.b32.xlu0 %v2550_v46, %s3534_s7 }
0x28f9   :  { %v2553_v1 = vpop.permute.xlu0 %2552 }
0x28fa   :  { %3332 = vmatmul.mubr.msk.bf16.vlgmr.msra.gmra.mrb[80].mxu0 %vm110_vm1, %v2553_v1 }
0x28fb   :  { %3347 = vmatprep.mubr.msk.bf16.mxu0 %vm3533_vm0, %v3532_v0  ;;  %3344 = vmatpush3.bf16.msra.mxu0 %v2717_v58 }
0x28fc   :  { %3345 = vmatprep.subr.bf16.mxu0 %v3532_v0  ;;  %v2880_v0 = vld [vmem:[%s4344_s4 + $0x22] ss:$0 sm:$0xff] }
0x28ff   :  { %3346 = vmatpush3.bf16.msra.mxu0 %v2718_v19 }
0x2933   :  { %v2638_v17 = vpop.f32.mrb[80].mxu1 }
0x2934   :  { %v2651_v40 = vadd.f32 %v2638_v17, %v3795_v53  ;;  %v3341_v45 = vpop.f32.mrb[81].mxu1 }
0x2935   :  { %v2641_v5 = vpop.f32.mrb[82].mxu1 }
0x2936   :  { %2653 = vrot.lane.b32.xlu1 %v2651_v40, %s3536_s8  ;;  %v3342_v32 = vpop.f32.mrb[83].mxu1 }
0x29a8   :  { %v2654_v44 = vpop.permute.xlu1 %2653 }
0x29cd   :  { %v2591_v3 = vpop.f32.mrb[80].mxu0 }
0x29ce   :  { %v2592_v41 = vadd.f32 %v4146_v48, %v2591_v3  ;;  %v3333_v28 = vpop.f32.mrb[81].mxu0 }
0x29cf   :  { %v2594_v34 = vpop.f32.mrb[82].mxu0 }
0x29d0   :  { %v2644_v36 = vadd.f32 %v2638_v17, %v2592_v41  ;;  %v3334_v8 = vpop.f32.mrb[83].mxu0 }
0x29d2   :  { %v2877_v25 = vmul.f32 -1.442695, %v2644_v36 }
0x29d4   :  { %3511 = vpow2.f32 %v2877_v25 }
0x29de   :  { %v3512_v26 = vpop.eup %3511 }
0x29df   :  { %v2648_v23 = vadd.f32 1.0, %v3512_v26 }
0x29e1   :  { %3513 = vrcp.f32 %v2648_v23 }
0x29eb   :  { %v3514_v29 = vpop.eup %3513 }
0x29ec   :  { %v2656_v53 = vmul.f32 %v3514_v29, %v2654_v44  ;;  %v2663_v48 = vsub.f32 1.0, %v3514_v29  ;;  %v2669_v21 = vmul.f32 %v3514_v29, %v2368_v35 }
0x29ee   :  { %2658 = vrot.lane.b32.xlu0 %v2656_v53, %s3536_s8  ;;  %s3537_s8 = smov 32  }
0x2a60   :  { %v2659_v30 = vpop.permute.xlu0 %2658 }
0x2a61   :  { %v2661_v22 = vadd.f32 %v2659_v30, %v2592_v41 }
0x2a63   :  { %3515 = vtanh.f32 %v2661_v22 }
0x2a6d   :  { %v3516_v31 = vpop.eup %3515 }
0x2a6e   :  { %2665 = vrot.lane.b32.xlu1 %v3516_v31, %s3534_s7 }
0x2ae0   :  { %v2666_v37 = vpop.permute.xlu1 %2665 }
0x2ae1   :  { %v2668_v51 = vmul.f32 %v2666_v37, %v2663_v48 }
0x2ae3   :  { %v2670_v27 = vadd.f32 %v2669_v21, %v2668_v51 }
0x2ae5   :  { %2672 = vrot.lane.b32.xlu0 %v2670_v27, %s3534_s7 }
0x2b57   :  { %v2673_v42 = vpop.permute.xlu0 %2672 }
0x2b58   :  { %v2675_v18 = vsel %vm110_vm1, %v2673_v42, 0.0 }
0x2b59   :  { %2676 = vadd.xlane.f32.xlu1 %v2675_v18 }
0x2b6a   :  { %2699 = vrot.lane.b32.xlu1 %v2878_v57, %s3537_s8 }
0x2be6   :  { %v2677_v49 = vpop.xlane.xlu1 %2676 }
0x2be7   :  { %v2679_v12 = vmul.f32 0.03125, %v2677_v49 }
0x2be9   :  { %v2680_v10 = vsub.f32 %v2670_v27, %v2679_v12 }
0x2bea   :  { %v2700_v16 = vpop.permute.xlu1 %2699 }
0x2beb   :  { %v2681_v6 = vmul.f32 %v2680_v10, %v2680_v10 }
0x2bed   :  { %2683 = vrot.lane.b32.xlu0 %v2681_v6, %s3534_s7 }
0x2c5f   :  { %v2684_v52 = vpop.permute.xlu0 %2683 }
0x2c60   :  { %v2686_v38 = vsel %vm110_vm1, %v2684_v52, 0.0 }
0x2c61   :  { %2687 = vadd.xlane.f32.xlu0 %v2686_v38 }
0x2c77   :  { %2709 = vrot.lane.b32.xlu0 %v2879_v55, %s3537_s8 }
0x2cee   :  { %v2688_v33 = vpop.xlane.xlu0 %2687 }
0x2cef   :  { %v2689_v56 = vmul.f32 0.03125, %v2688_v33 }
0x2cf1   :  { %v2690_v7 = vadd.f32 1e-05, %v2689_v56 }
0x2cf2   :  { %v2710_v47 = vpop.permute.xlu0 %2709 }
0x2cf3   :  { %3517 = vrsqrt.f32 %v2690_v7 }
0x2cfd   :  { %v3518_v20 = vpop.eup %3517 }
0x2cfe   :  { %v2692_v59 = vmul.f32 %v3518_v20, %v2680_v10 }
0x2d00   :  { %v2702_v43 = vmul.f32 %v2700_v16, %v2692_v59 }
0x2d02   :  { %v2712_v14 = vadd.f32 %v2710_v47, %v2702_v43 }
0x2d04   :  { %v2719_v35 = vpack.c.bf16 %v2712_v14, %v2712_v14 }
0x2d06   :  { %2726 = vrot.lane.b32.xlu1 %v2719_v35, %s3534_s7 }
0x2d78   :  { %v2727_v60 = vpop.permute.xlu1 %2726 }
0x2d79   :  { %3348 = vmatmul.mubr.msk.bf16.vlgmr.msra.gmra.mrb[84].mxu0 %vm110_vm1, %v2727_v60 }
0x2e4c   :  { %v2765_v61 = vpop.f32.mrb[84].mxu0 }
0x2e4d   :  { %v2766_v63 = vadd.f32 %v2880_v0, %v2765_v61  ;;  %v3349_v62 = vpop.f32.mrb[85].mxu0 }
0x2e4e   :  { %v2768_v9 = vpop.f32.mrb[86].mxu0 }
0x2e4f   :  { %2771 = vst.msk [vmem:[%s4345_s5] sm:$0xff] %vm110_vm1, %v2766_v63  ;;  %v3350_v15 = vpop.f32.mrb[87].mxu0 }

</bundles_post_ra>
